<compile_context>
chip_gen: v7x
topology: tpu7x:2x2x1
jax: 0.10.0
libtpu: 0.0.40
codegen_flags: <defaults>
</compile_context>

<pallas_src>
import functools

import jax
import jax.numpy as jnp
from jax.experimental import pallas as pl
from jax.experimental.pallas import tpu as pltpu

# MXU operand precision (f32 accumulation either way). Set to jnp.float32 for
# bit-level validation against an all-f32 reference.
MXU_DTYPE = jnp.bfloat16
# Output rows (th * W) per grid step. 512-1024 is the HBM-roofline sweet spot;
# kept at 128 here so the tiny demo still exercises the multi-tile BN reduction.
TARGET_TILE_ROWS = 128
_BN_EPS = 1e-5
_VMEM_LIMIT_BYTES = 32 * 1024 * 1024  # safe on v5e/v6e/v7x scoped-VMEM budgets


def _round_up(x, m):
    return (x + m - 1) // m * m


def _pick_tile_h(h, w):
    """Largest th (multiple of 8, dividing h) with th*w <= TARGET_TILE_ROWS."""
    best = None
    for cand in range(8, h + 1, 8):
        if h % cand == 0 and cand * w <= TARGET_TILE_ROWS:
            best = cand
    if best is None:
        # TODO(synk): halo-tile W as well for very wide images (W*8 > budget).
        best = 8 if h % 8 == 0 else h
    return best


def _conv_tile(x_ref, w_ref, *, th, width, cp_in, cp_out):
    """3x3 conv of one (th x width) output tile as 9 accumulated MXU matmuls.

    x_ref : (1, 1, th+2, width+2, cp_in)  spatially pre-padded input tile
    w_ref : (9, cp_in, cp_out)            per-tap weight matrices (MXU_DTYPE)
    returns (th*width, cp_out) float32 accumulator.
    """
    # Widen the tile once to f32 so the shifted-window slicing below operates on
    # unpacked 32-bit values (robust sublane shifts); MXU operands are repacked
    # to MXU_DTYPE per tap.
    x = x_ref[0, 0].astype(jnp.float32)               # (th+2, width+2, cp_in)
    acc = jnp.zeros((th * width, cp_out), jnp.float32)
    for dy in range(3):
        for dx in range(3):
            patch = x[dy:dy + th, dx:dx + width, :].reshape(th * width, cp_in)
            acc = acc + jnp.dot(patch.astype(w_ref.dtype),
                                w_ref[3 * dy + dx],
                                preferred_element_type=jnp.float32)
    return acc


def _conv_stats_kernel(x_ref, w_ref, stats_ref, *, th, width, cp_in, cp_out):
    """Pass 1: conv tile + accumulate per-channel sum / sum-of-squares."""

    @pl.when(jnp.logical_and(pl.program_id(0) == 0, pl.program_id(1) == 0))
    def _():
        stats_ref[...] = jnp.zeros_like(stats_ref)

    y = _conv_tile(x_ref, w_ref, th=th, width=width, cp_in=cp_in, cp_out=cp_out)
    s = jnp.sum(y, axis=0, keepdims=True)              # (1, cp_out)
    sq = jnp.sum(y * y, axis=0, keepdims=True)         # (1, cp_out)
    upd = jnp.concatenate(
        [s, sq, jnp.zeros((6, cp_out), jnp.float32)], axis=0)   # (8, cp_out)
    stats_ref[...] = stats_ref[...] + upd


def _conv_apply_kernel(x_ref, w_ref, scale_ref, shift_ref, o_ref,
                       *, th, width, cp_in, cp_out):
    """Pass 2: conv tile + folded BN (scale/shift) + ReLU, lane-dense store."""
    y = _conv_tile(x_ref, w_ref, th=th, width=width, cp_in=cp_in, cp_out=cp_out)
    out = jnp.maximum(y * scale_ref[...] + shift_ref[...], jnp.float32(0.0))
    o_ref[...] = out.reshape(1, 1, th * width, cp_out).astype(o_ref.dtype)


def _build_tiles(x_nhwc, th, cp_in):
    """(N,H,W,C) -> spatially padded, channel-padded, H-tiled (1-row halos)
    array of shape (N, H//th, th+2, W+2, cp_in) in MXU_DTYPE."""
    n, h, w, c = x_nhwc.shape
    xp = jnp.pad(x_nhwc, ((0, 0), (1, 1), (1, 1), (0, cp_in - c)))
    n_h = h // th
    tiles = jnp.stack([xp[:, i * th:i * th + th + 2] for i in range(n_h)], axis=1)
    return tiles.astype(MXU_DTYPE)


def _conv_bn_relu_layer(x_nhwc, w_oihw, gamma, beta, *, out_dtype):
    """One Conv3x3 + BatchNorm(train) + ReLU stage.

    x_nhwc may carry zero-padded trailing channels; returns (N, H, W, cp_out)
    where channels >= c_out are exact zeros (safe to feed to the next stage).
    """
    n, h, w, c_in = x_nhwc.shape
    c_out, c_in_w = w_oihw.shape[0], w_oihw.shape[1]
    assert c_in_w <= c_in
    cp_in = _round_up(c_in, 128)
    cp_out = _round_up(c_out, 128)

    th = _pick_tile_h(h, w)
    n_h = h // th

    x_tiles = _build_tiles(x_nhwc, th, cp_in)

    # OIHW -> (ky, kx, cin, cout), zero-pad both channel dims, flatten taps.
    wt = jnp.transpose(w_oihw, (2, 3, 1, 0)).astype(jnp.float32)
    wt = jnp.pad(wt, ((0, 0), (0, 0), (0, cp_in - c_in_w), (0, cp_out - c_out)))
    wt = wt.reshape(9, cp_in, cp_out).astype(MXU_DTYPE)

    grid = (n, n_h)
    x_spec = pl.BlockSpec((1, 1, th + 2, w + 2, cp_in),
                          lambda i, j: (i, j, 0, 0, 0))
    w_spec = pl.BlockSpec((9, cp_in, cp_out), lambda i, j: (0, 0, 0))

    # ---- Pass 1: conv + global per-channel sum / sum-of-squares ------------
    stats = pl.pallas_call(
        functools.partial(_conv_stats_kernel,
                          th=th, width=w, cp_in=cp_in, cp_out=cp_out),
        out_shape=jax.ShapeDtypeStruct((8, cp_out), jnp.float32),
        grid=grid,
        in_specs=[x_spec, w_spec],
        out_specs=pl.BlockSpec((8, cp_out), lambda i, j: (0, 0)),
        compiler_params=pltpu.CompilerParams(
            dimension_semantics=("arbitrary", "arbitrary"),
            vmem_limit_bytes=_VMEM_LIMIT_BYTES),
    )(x_tiles, wt)

    # BatchNorm(train): biased stats over all N*H*W pixels; fold gamma/beta and
    # rsqrt into a single per-channel scale/shift (tiny per-channel math).
    m = jnp.float32(n * h * w)
    mean = stats[0] / m
    var = jnp.maximum(stats[1] / m - mean * mean, 0.0)
    gamma_p = jnp.pad(gamma.astype(jnp.float32), (0, cp_out - c_out))
    beta_p = jnp.pad(beta.astype(jnp.float32), (0, cp_out - c_out))
    scale = gamma_p * jax.lax.rsqrt(var + jnp.float32(_BN_EPS))
    shift = beta_p - mean * scale

    # ---- Pass 2: conv + normalize/affine/ReLU, lane-dense (th*w, 128) store -
    y = pl.pallas_call(
        functools.partial(_conv_apply_kernel,
                          th=th, width=w, cp_in=cp_in, cp_out=cp_out),
        out_shape=jax.ShapeDtypeStruct((n, n_h, th * w, cp_out), out_dtype),
        grid=grid,
        in_specs=[x_spec, w_spec,
                  pl.BlockSpec((1, cp_out), lambda i, j: (0, 0)),
                  pl.BlockSpec((1, cp_out), lambda i, j: (0, 0))],
        out_specs=pl.BlockSpec((1, 1, th * w, cp_out), lambda i, j: (i, j, 0, 0)),
        compiler_params=pltpu.CompilerParams(
            dimension_semantics=("parallel", "parallel"),
            vmem_limit_bytes=_VMEM_LIMIT_BYTES),
    )(x_tiles, wt, scale.reshape(1, cp_out), shift.reshape(1, cp_out))

    # (N, n_h, th*w, cp_out) -> (N, H, W, cp_out); contiguous, free reshape.
    return y.reshape(n, h, w, cp_out)


def conv_block_forward(x_nchw, params):
    """Forward pass matching conv_block(in_ch, out_ch) in training mode.

    Conv biases (params['b1'], params['b2']) are intentionally unused: a
    per-channel constant cancels exactly inside train-mode BatchNorm.
    """
    x = jnp.transpose(x_nchw, (0, 2, 3, 1))                    # NCHW -> NHWC
    y1 = _conv_bn_relu_layer(x, params["w1"], params["g1"], params["beta1"],
                             out_dtype=MXU_DTYPE)
    # y1's padded channels are exact zeros; layer 2's weights are zero-padded
    # along c_in to match, so no slice is needed between the two stages.
    y2 = _conv_bn_relu_layer(y1, params["w2"], params["g2"], params["beta2"],
                             out_dtype=jnp.float32)
    out_ch = params["w2"].shape[0]
    return jnp.transpose(y2[..., :out_ch], (0, 3, 1, 2))       # NHWC -> NCHW


def _reference_forward(x_nchw, params):
    """Pure-JAX f32 reference (includes the conv bias) for validation."""
    def layer(x, w, b, g, beta):
        y = jax.lax.conv_general_dilated(
            x, w, window_strides=(1, 1), padding=((1, 1), (1, 1)),
            dimension_numbers=("NCHW", "OIHW", "NCHW"))
        y = y + b.reshape(1, -1, 1, 1)
        mean = jnp.mean(y, axis=(0, 2, 3), keepdims=True)
        var = jnp.mean((y - mean) ** 2, axis=(0, 2, 3), keepdims=True)
        y = (y - mean) / jnp.sqrt(var + _BN_EPS)
        y = y * g.reshape(1, -1, 1, 1) + beta.reshape(1, -1, 1, 1)
        return jnp.maximum(y, 0.0)

    x = layer(x_nchw, params["w1"], params["b1"], params["g1"], params["beta1"])
    x = layer(x, params["w2"], params["b2"], params["g2"], params["beta2"])
    return x


if __name__ == "__main__":
    # Small deterministic problem: N=2, in_ch=4, out_ch=8, H=W=16.
    N, IN_CH, OUT_CH, H, W = 2, 4, 8, 16, 16
    key = jax.random.PRNGKey(0)
    ks = jax.random.split(key, 9)

    x = jax.random.normal(ks[0], (N, IN_CH, H, W), dtype=jnp.float32)
    params = {
        "w1": 0.1 * jax.random.normal(ks[1], (OUT_CH, IN_CH, 3, 3), jnp.float32),
        "b1": 0.1 * jax.random.normal(ks[2], (OUT_CH,), jnp.float32),
        "g1": 1.0 + 0.1 * jax.random.normal(ks[3], (OUT_CH,), jnp.float32),
        "beta1": 0.1 * jax.random.normal(ks[4], (OUT_CH,), jnp.float32),
        "w2": 0.1 * jax.random.normal(ks[5], (OUT_CH, OUT_CH, 3, 3), jnp.float32),
        "b2": 0.1 * jax.random.normal(ks[6], (OUT_CH,), jnp.float32),
        "g2": 1.0 + 0.1 * jax.random.normal(ks[7], (OUT_CH,), jnp.float32),
        "beta2": 0.1 * jax.random.normal(ks[8], (OUT_CH,), jnp.float32),
    }

    out = jax.block_until_ready(jax.jit(conv_block_forward)(x, params))
    ref = jax.block_until_ready(_reference_forward(x, params))

    assert out.shape == (N, OUT_CH, H, W), out.shape
    # bf16 MXU operands / bf16 inter-layer activations vs. an all-f32 reference.
    tol = 5e-2 if MXU_DTYPE == jnp.bfloat16 else 1e-4
    err = float(jnp.max(jnp.abs(out - ref)))
    assert jnp.allclose(out, ref, rtol=tol, atol=tol), err
    print("KERNEL_OK")
</pallas_src>

<mosaic_0001>
module attributes {stable_mosaic.version = 11 : i64} {
  func.func @_conv_stats_kernel(%arg0: i32, %arg1: i32, %arg2: memref<1x1x10x18x128xbf16, #tpu.memory_space<vmem>>, %arg3: memref<9x128x128xbf16, #tpu.memory_space<vmem>>, %arg4: memref<8x128xf32, #tpu.memory_space<vmem>>) attributes {dimension_semantics = [#tpu.dimension_semantics<arbitrary>, #tpu.dimension_semantics<arbitrary>], iteration_bounds = array<i64: 2, 2>, scalar_prefetch = 0 : i64, scratch_operands = 0 : i64, tpu.core_type = #tpu.core_type<tc>, window_params = [{transform_indices = @transform_0, window_bounds = array<i64: 1, 1, 10, 18, 128>}, {pipeline_mode = #tpu.pipeline_mode<synchronous>, transform_indices = @transform_1, window_bounds = array<i64: 9, 128, 128>}, {pipeline_mode = #tpu.pipeline_mode<synchronous>, transform_indices = @transform_2, window_bounds = array<i64: 8, 128>}]} {
    %c0_i32 = arith.constant 0 : i32
    %0 = arith.cmpi eq, %arg0, %c0_i32 : i32
    %c0_i32_0 = arith.constant 0 : i32
    %1 = arith.cmpi eq, %arg1, %c0_i32_0 : i32
    %2 = arith.andi %0, %1 : i1
    %3 = arith.extui %2 : i1 to i32
    %c0_i32_1 = arith.constant 0 : i32
    %4 = arith.cmpi ne, %3, %c0_i32_1 : i32
    scf.if %4 {
      %cst_41 = arith.constant 0.000000e+00 : f32
      %82 = vector.broadcast %cst_41 : f32 to vector<8x128xf32>
      %c0_42 = arith.constant 0 : index
      %c0_43 = arith.constant 0 : index
      %83 = vector.load %arg4[%c0_42, %c0_43] : memref<8x128xf32, #tpu.memory_space<vmem>>, vector<8x128xf32>
      tpu.vector_store %arg4[%c0_42, %c0_43], %82 {strides = array<i32>} : memref<8x128xf32, #tpu.memory_space<vmem>>, vector<8x128xf32>,
    } else {
    }
    %c0 = arith.constant 0 : index
    %c0_2 = arith.constant 0 : index
    %c0_3 = arith.constant 0 : index
    %c0_4 = arith.constant 0 : index
    %c0_5 = arith.constant 0 : index
    %5 = vector.load %arg2[%c0, %c0_2, %c0_3, %c0_4, %c0_5] : memref<1x1x10x18x128xbf16, #tpu.memory_space<vmem>>, vector<1x1x10x18x128xbf16>
    %6 = vector.shape_cast %5 : vector<1x1x10x18x128xbf16> to vector<10x18x128xbf16>
    %7 = arith.extf %6 : vector<10x18x128xbf16> to vector<10x18x128xf32>
    %cst = arith.constant 0.000000e+00 : f32
    %8 = vector.broadcast %cst : f32 to vector<128x128xf32>
    %9 = vector.extract_strided_slice %7 {offsets = [0, 0, 0], sizes = [8, 16, 128], strides = [1, 1, 1]} : vector<10x18x128xf32> to vector<8x16x128xf32>
    %10 = vector.shape_cast %9 : vector<8x16x128xf32> to vector<128x128xf32>
    %11 = arith.truncf %10 : vector<128x128xf32> to vector<128x128xbf16>
    %c0_6 = arith.constant 0 : index
    %c0_7 = arith.constant 0 : index
    %c0_8 = arith.constant 0 : index
    %12 = vector.load %arg3[%c0_6, %c0_7, %c0_8] : memref<9x128x128xbf16, #tpu.memory_space<vmem>>, vector<1x128x128xbf16>
    %13 = vector.shape_cast %12 : vector<1x128x128xbf16> to vector<128x128xbf16>
    %cst_9 = arith.constant dense<0.000000e+00> : vector<128x128xf32>
    %14 = tpu.matmul %11, %13, %cst_9 {dimension_numbers = #tpu.dot_dimension_numbers<[1], [0], [0], [1], [0, 0, 1, 1], [], []>} : vector<128x128xbf16>, vector<128x128xbf16>, vector<128x128xf32> -> vector<128x128xf32>
    %15 = arith.addf %8, %14 : vector<128x128xf32>
    %16 = vector.extract_strided_slice %7 {offsets = [0, 1, 0], sizes = [8, 16, 128], strides = [1, 1, 1]} : vector<10x18x128xf32> to vector<8x16x128xf32>
    %17 = vector.shape_cast %16 : vector<8x16x128xf32> to vector<128x128xf32>
    %18 = arith.truncf %17 : vector<128x128xf32> to vector<128x128xbf16>
    %c1 = arith.constant 1 : index
    %c0_10 = arith.constant 0 : index
    %c0_11 = arith.constant 0 : index
    %19 = vector.load %arg3[%c1, %c0_10, %c0_11] : memref<9x128x128xbf16, #tpu.memory_space<vmem>>, vector<1x128x128xbf16>
    %20 = vector.shape_cast %19 : vector<1x128x128xbf16> to vector<128x128xbf16>
    %cst_12 = arith.constant dense<0.000000e+00> : vector<128x128xf32>
    %21 = tpu.matmul %18, %20, %cst_12 {dimension_numbers = #tpu.dot_dimension_numbers<[1], [0], [0], [1], [0, 0, 1, 1], [], []>} : vector<128x128xbf16>, vector<128x128xbf16>, vector<128x128xf32> -> vector<128x128xf32>
    %22 = arith.addf %15, %21 : vector<128x128xf32>
    %23 = vector.extract_strided_slice %7 {offsets = [0, 2, 0], sizes = [8, 16, 128], strides = [1, 1, 1]} : vector<10x18x128xf32> to vector<8x16x128xf32>
    %24 = vector.shape_cast %23 : vector<8x16x128xf32> to vector<128x128xf32>
    %25 = arith.truncf %24 : vector<128x128xf32> to vector<128x128xbf16>
    %c2 = arith.constant 2 : index
    %c0_13 = arith.constant 0 : index
    %c0_14 = arith.constant 0 : index
    %26 = vector.load %arg3[%c2, %c0_13, %c0_14] : memref<9x128x128xbf16, #tpu.memory_space<vmem>>, vector<1x128x128xbf16>
    %27 = vector.shape_cast %26 : vector<1x128x128xbf16> to vector<128x128xbf16>
    %cst_15 = arith.constant dense<0.000000e+00> : vector<128x128xf32>
    %28 = tpu.matmul %25, %27, %cst_15 {dimension_numbers = #tpu.dot_dimension_numbers<[1], [0], [0], [1], [0, 0, 1, 1], [], []>} : vector<128x128xbf16>, vector<128x128xbf16>, vector<128x128xf32> -> vector<128x128xf32>
    %29 = arith.addf %22, %28 : vector<128x128xf32>
    %30 = vector.extract_strided_slice %7 {offsets = [1, 0, 0], sizes = [8, 16, 128], strides = [1, 1, 1]} : vector<10x18x128xf32> to vector<8x16x128xf32>
    %31 = vector.shape_cast %30 : vector<8x16x128xf32> to vector<128x128xf32>
    %32 = arith.truncf %31 : vector<128x128xf32> to vector<128x128xbf16>
    %c3 = arith.constant 3 : index
    %c0_16 = arith.constant 0 : index
    %c0_17 = arith.constant 0 : index
    %33 = vector.load %arg3[%c3, %c0_16, %c0_17] : memref<9x128x128xbf16, #tpu.memory_space<vmem>>, vector<1x128x128xbf16>
    %34 = vector.shape_cast %33 : vector<1x128x128xbf16> to vector<128x128xbf16>
    %cst_18 = arith.constant dense<0.000000e+00> : vector<128x128xf32>
    %35 = tpu.matmul %32, %34, %cst_18 {dimension_numbers = #tpu.dot_dimension_numbers<[1], [0], [0], [1], [0, 0, 1, 1], [], []>} : vector<128x128xbf16>, vector<128x128xbf16>, vector<128x128xf32> -> vector<128x128xf32>
    %36 = arith.addf %29, %35 : vector<128x128xf32>
    %37 = vector.extract_strided_slice %7 {offsets = [1, 1, 0], sizes = [8, 16, 128], strides = [1, 1, 1]} : vector<10x18x128xf32> to vector<8x16x128xf32>
    %38 = vector.shape_cast %37 : vector<8x16x128xf32> to vector<128x128xf32>
    %39 = arith.truncf %38 : vector<128x128xf32> to vector<128x128xbf16>
    %c4 = arith.constant 4 : index
    %c0_19 = arith.constant 0 : index
    %c0_20 = arith.constant 0 : index
    %40 = vector.load %arg3[%c4, %c0_19, %c0_20] : memref<9x128x128xbf16, #tpu.memory_space<vmem>>, vector<1x128x128xbf16>
    %41 = vector.shape_cast %40 : vector<1x128x128xbf16> to vector<128x128xbf16>
    %cst_21 = arith.constant dense<0.000000e+00> : vector<128x128xf32>
    %42 = tpu.matmul %39, %41, %cst_21 {dimension_numbers = #tpu.dot_dimension_numbers<[1], [0], [0], [1], [0, 0, 1, 1], [], []>} : vector<128x128xbf16>, vector<128x128xbf16>, vector<128x128xf32> -> vector<128x128xf32>
    %43 = arith.addf %36, %42 : vector<128x128xf32>
    %44 = vector.extract_strided_slice %7 {offsets = [1, 2, 0], sizes = [8, 16, 128], strides = [1, 1, 1]} : vector<10x18x128xf32> to vector<8x16x128xf32>
    %45 = vector.shape_cast %44 : vector<8x16x128xf32> to vector<128x128xf32>
    %46 = arith.truncf %45 : vector<128x128xf32> to vector<128x128xbf16>
    %c5 = arith.constant 5 : index
    %c0_22 = arith.constant 0 : index
    %c0_23 = arith.constant 0 : index
    %47 = vector.load %arg3[%c5, %c0_22, %c0_23] : memref<9x128x128xbf16, #tpu.memory_space<vmem>>, vector<1x128x128xbf16>
    %48 = vector.shape_cast %47 : vector<1x128x128xbf16> to vector<128x128xbf16>
    %cst_24 = arith.constant dense<0.000000e+00> : vector<128x128xf32>
    %49 = tpu.matmul %46, %48, %cst_24 {dimension_numbers = #tpu.dot_dimension_numbers<[1], [0], [0], [1], [0, 0, 1, 1], [], []>} : vector<128x128xbf16>, vector<128x128xbf16>, vector<128x128xf32> -> vector<128x128xf32>
    %50 = arith.addf %43, %49 : vector<128x128xf32>
    %51 = vector.extract_strided_slice %7 {offsets = [2, 0, 0], sizes = [8, 16, 128], strides = [1, 1, 1]} : vector<10x18x128xf32> to vector<8x16x128xf32>
    %52 = vector.shape_cast %51 : vector<8x16x128xf32> to vector<128x128xf32>
    %53 = arith.truncf %52 : vector<128x128xf32> to vector<128x128xbf16>
    %c6 = arith.constant 6 : index
    %c0_25 = arith.constant 0 : index
    %c0_26 = arith.constant 0 : index
    %54 = vector.load %arg3[%c6, %c0_25, %c0_26] : memref<9x128x128xbf16, #tpu.memory_space<vmem>>, vector<1x128x128xbf16>
    %55 = vector.shape_cast %54 : vector<1x128x128xbf16> to vector<128x128xbf16>
    %cst_27 = arith.constant dense<0.000000e+00> : vector<128x128xf32>
    %56 = tpu.matmul %53, %55, %cst_27 {dimension_numbers = #tpu.dot_dimension_numbers<[1], [0], [0], [1], [0, 0, 1, 1], [], []>} : vector<128x128xbf16>, vector<128x128xbf16>, vector<128x128xf32> -> vector<128x128xf32>
    %57 = arith.addf %50, %56 : vector<128x128xf32>
    %58 = vector.extract_strided_slice %7 {offsets = [2, 1, 0], sizes = [8, 16, 128], strides = [1, 1, 1]} : vector<10x18x128xf32> to vector<8x16x128xf32>
    %59 = vector.shape_cast %58 : vector<8x16x128xf32> to vector<128x128xf32>
    %60 = arith.truncf %59 : vector<128x128xf32> to vector<128x128xbf16>
    %c7 = arith.constant 7 : index
    %c0_28 = arith.constant 0 : index
    %c0_29 = arith.constant 0 : index
    %61 = vector.load %arg3[%c7, %c0_28, %c0_29] : memref<9x128x128xbf16, #tpu.memory_space<vmem>>, vector<1x128x128xbf16>
    %62 = vector.shape_cast %61 : vector<1x128x128xbf16> to vector<128x128xbf16>
    %cst_30 = arith.constant dense<0.000000e+00> : vector<128x128xf32>
    %63 = tpu.matmul %60, %62, %cst_30 {dimension_numbers = #tpu.dot_dimension_numbers<[1], [0], [0], [1], [0, 0, 1, 1], [], []>} : vector<128x128xbf16>, vector<128x128xbf16>, vector<128x128xf32> -> vector<128x128xf32>
    %64 = arith.addf %57, %63 : vector<128x128xf32>
    %65 = vector.extract_strided_slice %7 {offsets = [2, 2, 0], sizes = [8, 16, 128], strides = [1, 1, 1]} : vector<10x18x128xf32> to vector<8x16x128xf32>
    %66 = vector.shape_cast %65 : vector<8x16x128xf32> to vector<128x128xf32>
    %67 = arith.truncf %66 : vector<128x128xf32> to vector<128x128xbf16>
    %c8 = arith.constant 8 : index
    %c0_31 = arith.constant 0 : index
    %c0_32 = arith.constant 0 : index
    %68 = vector.load %arg3[%c8, %c0_31, %c0_32] : memref<9x128x128xbf16, #tpu.memory_space<vmem>>, vector<1x128x128xbf16>
    %69 = vector.shape_cast %68 : vector<1x128x128xbf16> to vector<128x128xbf16>
    %cst_33 = arith.constant dense<0.000000e+00> : vector<128x128xf32>
    %70 = tpu.matmul %67, %69, %cst_33 {dimension_numbers = #tpu.dot_dimension_numbers<[1], [0], [0], [1], [0, 0, 1, 1], [], []>} : vector<128x128xbf16>, vector<128x128xbf16>, vector<128x128xf32> -> vector<128x128xf32>
    %71 = arith.addf %64, %70 : vector<128x128xf32>
    %cst_34 = arith.constant dense<0.000000e+00> : vector<128xf32>
    %72 = vector.multi_reduction <add>, %71, %cst_34 [0] : vector<128x128xf32> to vector<128xf32>
    %73 = vector.shape_cast %72 : vector<128xf32> to vector<1x128xf32>
    %74 = arith.mulf %71, %71 : vector<128x128xf32>
    %cst_35 = arith.constant dense<0.000000e+00> : vector<128xf32>
    %75 = vector.multi_reduction <add>, %74, %cst_35 [0] : vector<128x128xf32> to vector<128xf32>
    %76 = vector.shape_cast %75 : vector<128xf32> to vector<1x128xf32>
    %cst_36 = arith.constant 0.000000e+00 : f32
    %77 = vector.broadcast %cst_36 : f32 to vector<6x128xf32>
    %78 = tpu.concatenate %73, %76, %77 in 0 : vector<1x128xf32>, vector<1x128xf32>, vector<6x128xf32> -> vector<8x128xf32>
    %c0_37 = arith.constant 0 : index
    %c0_38 = arith.constant 0 : index
    %79 = vector.load %arg4[%c0_37, %c0_38] : memref<8x128xf32, #tpu.memory_space<vmem>>, vector<8x128xf32>
    %80 = arith.addf %79, %78 : vector<8x128xf32>
    %c0_39 = arith.constant 0 : index
    %c0_40 = arith.constant 0 : index
    %81 = vector.load %arg4[%c0_39, %c0_40] : memref<8x128xf32, #tpu.memory_space<vmem>>, vector<8x128xf32>
    tpu.vector_store %arg4[%c0_39, %c0_40], %80 {strides = array<i32>} : memref<8x128xf32, #tpu.memory_space<vmem>>, vector<8x128xf32>,
    return
  }
  func.func @transform_0(%arg0: i32, %arg1: i32) -> (i32, i32, i32, i32, i32) {
    %c0_i32 = arith.constant 0 : i32
    %c0_i32_0 = arith.constant 0 : i32
    %c0_i32_1 = arith.constant 0 : i32
    %c0_i32_2 = arith.constant 0 : i32
    return %arg0, %arg1, %c0_i32, %c0_i32_0, %c0_i32_1 : i32, i32, i32, i32, i32
  }
  func.func @transform_1(%arg0: i32, %arg1: i32) -> (i32, i32, i32) {
    %c0_i32 = arith.constant 0 : i32
    %c0_i32_0 = arith.constant 0 : i32
    %c0_i32_1 = arith.constant 0 : i32
    %c0_i32_2 = arith.constant 0 : i32
    return %c0_i32, %c0_i32_0, %c0_i32_1 : i32, i32, i32
  }
  func.func @transform_2(%arg0: i32, %arg1: i32) -> (i32, i32) {
    %c0_i32 = arith.constant 0 : i32
    %c0_i32_0 = arith.constant 0 : i32
    %c0_i32_1 = arith.constant 0 : i32
    return %c0_i32, %c0_i32_0 : i32, i32
  }
}

module attributes {stable_mosaic.version = 11 : i64} {
  func.func @_conv_apply_kernel(%arg0: i32, %arg1: i32, %arg2: memref<1x1x10x18x128xbf16, #tpu.memory_space<vmem>>, %arg3: memref<9x128x128xbf16, #tpu.memory_space<vmem>>, %arg4: memref<1x128xf32, #tpu.memory_space<vmem>>, %arg5: memref<1x128xf32, #tpu.memory_space<vmem>>, %arg6: memref<1x1x128x128xbf16, #tpu.memory_space<vmem>>) attributes {dimension_semantics = [#tpu.dimension_semantics<parallel>, #tpu.dimension_semantics<parallel>], iteration_bounds = array<i64: 2, 2>, scalar_prefetch = 0 : i64, scratch_operands = 0 : i64, tpu.core_type = #tpu.core_type<tc>, window_params = [{transform_indices = @transform_0, window_bounds = array<i64: 1, 1, 10, 18, 128>}, {pipeline_mode = #tpu.pipeline_mode<synchronous>, transform_indices = @transform_1, window_bounds = array<i64: 9, 128, 128>}, {pipeline_mode = #tpu.pipeline_mode<synchronous>, transform_indices = @transform_2, window_bounds = array<i64: 1, 128>}, {pipeline_mode = #tpu.pipeline_mode<synchronous>, transform_indices = @transform_3, window_bounds = array<i64: 1, 128>}, {transform_indices = @transform_4, window_bounds = array<i64: 1, 1, 128, 128>}]} {
    %c0 = arith.constant 0 : index
    %c0_0 = arith.constant 0 : index
    %c0_1 = arith.constant 0 : index
    %c0_2 = arith.constant 0 : index
    %c0_3 = arith.constant 0 : index
    %0 = vector.load %arg2[%c0, %c0_0, %c0_1, %c0_2, %c0_3] : memref<1x1x10x18x128xbf16, #tpu.memory_space<vmem>>, vector<1x1x10x18x128xbf16>
    %1 = vector.shape_cast %0 : vector<1x1x10x18x128xbf16> to vector<10x18x128xbf16>
    %2 = arith.extf %1 : vector<10x18x128xbf16> to vector<10x18x128xf32>
    %cst = arith.constant 0.000000e+00 : f32
    %3 = vector.broadcast %cst : f32 to vector<128x128xf32>
    %4 = vector.extract_strided_slice %2 {offsets = [0, 0, 0], sizes = [8, 16, 128], strides = [1, 1, 1]} : vector<10x18x128xf32> to vector<8x16x128xf32>
    %5 = vector.shape_cast %4 : vector<8x16x128xf32> to vector<128x128xf32>
    %6 = arith.truncf %5 : vector<128x128xf32> to vector<128x128xbf16>
    %c0_4 = arith.constant 0 : index
    %c0_5 = arith.constant 0 : index
    %c0_6 = arith.constant 0 : index
    %7 = vector.load %arg3[%c0_4, %c0_5, %c0_6] : memref<9x128x128xbf16, #tpu.memory_space<vmem>>, vector<1x128x128xbf16>
    %8 = vector.shape_cast %7 : vector<1x128x128xbf16> to vector<128x128xbf16>
    %cst_7 = arith.constant dense<0.000000e+00> : vector<128x128xf32>
    %9 = tpu.matmul %6, %8, %cst_7 {dimension_numbers = #tpu.dot_dimension_numbers<[1], [0], [0], [1], [0, 0, 1, 1], [], []>} : vector<128x128xbf16>, vector<128x128xbf16>, vector<128x128xf32> -> vector<128x128xf32>
    %10 = arith.addf %3, %9 : vector<128x128xf32>
    %11 = vector.extract_strided_slice %2 {offsets = [0, 1, 0], sizes = [8, 16, 128], strides = [1, 1, 1]} : vector<10x18x128xf32> to vector<8x16x128xf32>
    %12 = vector.shape_cast %11 : vector<8x16x128xf32> to vector<128x128xf32>
    %13 = arith.truncf %12 : vector<128x128xf32> to vector<128x128xbf16>
    %c1 = arith.constant 1 : index
    %c0_8 = arith.constant 0 : index
    %c0_9 = arith.constant 0 : index
    %14 = vector.load %arg3[%c1, %c0_8, %c0_9] : memref<9x128x128xbf16, #tpu.memory_space<vmem>>, vector<1x128x128xbf16>
    %15 = vector.shape_cast %14 : vector<1x128x128xbf16> to vector<128x128xbf16>
    %cst_10 = arith.constant dense<0.000000e+00> : vector<128x128xf32>
    %16 = tpu.matmul %13, %15, %cst_10 {dimension_numbers = #tpu.dot_dimension_numbers<[1], [0], [0], [1], [0, 0, 1, 1], [], []>} : vector<128x128xbf16>, vector<128x128xbf16>, vector<128x128xf32> -> vector<128x128xf32>
    %17 = arith.addf %10, %16 : vector<128x128xf32>
    %18 = vector.extract_strided_slice %2 {offsets = [0, 2, 0], sizes = [8, 16, 128], strides = [1, 1, 1]} : vector<10x18x128xf32> to vector<8x16x128xf32>
    %19 = vector.shape_cast %18 : vector<8x16x128xf32> to vector<128x128xf32>
    %20 = arith.truncf %19 : vector<128x128xf32> to vector<128x128xbf16>
    %c2 = arith.constant 2 : index
    %c0_11 = arith.constant 0 : index
    %c0_12 = arith.constant 0 : index
    %21 = vector.load %arg3[%c2, %c0_11, %c0_12] : memref<9x128x128xbf16, #tpu.memory_space<vmem>>, vector<1x128x128xbf16>
    %22 = vector.shape_cast %21 : vector<1x128x128xbf16> to vector<128x128xbf16>
    %cst_13 = arith.constant dense<0.000000e+00> : vector<128x128xf32>
    %23 = tpu.matmul %20, %22, %cst_13 {dimension_numbers = #tpu.dot_dimension_numbers<[1], [0], [0], [1], [0, 0, 1, 1], [], []>} : vector<128x128xbf16>, vector<128x128xbf16>, vector<128x128xf32> -> vector<128x128xf32>
    %24 = arith.addf %17, %23 : vector<128x128xf32>
    %25 = vector.extract_strided_slice %2 {offsets = [1, 0, 0], sizes = [8, 16, 128], strides = [1, 1, 1]} : vector<10x18x128xf32> to vector<8x16x128xf32>
    %26 = vector.shape_cast %25 : vector<8x16x128xf32> to vector<128x128xf32>
    %27 = arith.truncf %26 : vector<128x128xf32> to vector<128x128xbf16>
    %c3 = arith.constant 3 : index
    %c0_14 = arith.constant 0 : index
    %c0_15 = arith.constant 0 : index
    %28 = vector.load %arg3[%c3, %c0_14, %c0_15] : memref<9x128x128xbf16, #tpu.memory_space<vmem>>, vector<1x128x128xbf16>
    %29 = vector.shape_cast %28 : vector<1x128x128xbf16> to vector<128x128xbf16>
    %cst_16 = arith.constant dense<0.000000e+00> : vector<128x128xf32>
    %30 = tpu.matmul %27, %29, %cst_16 {dimension_numbers = #tpu.dot_dimension_numbers<[1], [0], [0], [1], [0, 0, 1, 1], [], []>} : vector<128x128xbf16>, vector<128x128xbf16>, vector<128x128xf32> -> vector<128x128xf32>
    %31 = arith.addf %24, %30 : vector<128x128xf32>
    %32 = vector.extract_strided_slice %2 {offsets = [1, 1, 0], sizes = [8, 16, 128], strides = [1, 1, 1]} : vector<10x18x128xf32> to vector<8x16x128xf32>
    %33 = vector.shape_cast %32 : vector<8x16x128xf32> to vector<128x128xf32>
    %34 = arith.truncf %33 : vector<128x128xf32> to vector<128x128xbf16>
    %c4 = arith.constant 4 : index
    %c0_17 = arith.constant 0 : index
    %c0_18 = arith.constant 0 : index
    %35 = vector.load %arg3[%c4, %c0_17, %c0_18] : memref<9x128x128xbf16, #tpu.memory_space<vmem>>, vector<1x128x128xbf16>
    %36 = vector.shape_cast %35 : vector<1x128x128xbf16> to vector<128x128xbf16>
    %cst_19 = arith.constant dense<0.000000e+00> : vector<128x128xf32>
    %37 = tpu.matmul %34, %36, %cst_19 {dimension_numbers = #tpu.dot_dimension_numbers<[1], [0], [0], [1], [0, 0, 1, 1], [], []>} : vector<128x128xbf16>, vector<128x128xbf16>, vector<128x128xf32> -> vector<128x128xf32>
    %38 = arith.addf %31, %37 : vector<128x128xf32>
    %39 = vector.extract_strided_slice %2 {offsets = [1, 2, 0], sizes = [8, 16, 128], strides = [1, 1, 1]} : vector<10x18x128xf32> to vector<8x16x128xf32>
    %40 = vector.shape_cast %39 : vector<8x16x128xf32> to vector<128x128xf32>
    %41 = arith.truncf %40 : vector<128x128xf32> to vector<128x128xbf16>
    %c5 = arith.constant 5 : index
    %c0_20 = arith.constant 0 : index
    %c0_21 = arith.constant 0 : index
    %42 = vector.load %arg3[%c5, %c0_20, %c0_21] : memref<9x128x128xbf16, #tpu.memory_space<vmem>>, vector<1x128x128xbf16>
    %43 = vector.shape_cast %42 : vector<1x128x128xbf16> to vector<128x128xbf16>
    %cst_22 = arith.constant dense<0.000000e+00> : vector<128x128xf32>
    %44 = tpu.matmul %41, %43, %cst_22 {dimension_numbers = #tpu.dot_dimension_numbers<[1], [0], [0], [1], [0, 0, 1, 1], [], []>} : vector<128x128xbf16>, vector<128x128xbf16>, vector<128x128xf32> -> vector<128x128xf32>
    %45 = arith.addf %38, %44 : vector<128x128xf32>
    %46 = vector.extract_strided_slice %2 {offsets = [2, 0, 0], sizes = [8, 16, 128], strides = [1, 1, 1]} : vector<10x18x128xf32> to vector<8x16x128xf32>
    %47 = vector.shape_cast %46 : vector<8x16x128xf32> to vector<128x128xf32>
    %48 = arith.truncf %47 : vector<128x128xf32> to vector<128x128xbf16>
    %c6 = arith.constant 6 : index
    %c0_23 = arith.constant 0 : index
    %c0_24 = arith.constant 0 : index
    %49 = vector.load %arg3[%c6, %c0_23, %c0_24] : memref<9x128x128xbf16, #tpu.memory_space<vmem>>, vector<1x128x128xbf16>
    %50 = vector.shape_cast %49 : vector<1x128x128xbf16> to vector<128x128xbf16>
    %cst_25 = arith.constant dense<0.000000e+00> : vector<128x128xf32>
    %51 = tpu.matmul %48, %50, %cst_25 {dimension_numbers = #tpu.dot_dimension_numbers<[1], [0], [0], [1], [0, 0, 1, 1], [], []>} : vector<128x128xbf16>, vector<128x128xbf16>, vector<128x128xf32> -> vector<128x128xf32>
    %52 = arith.addf %45, %51 : vector<128x128xf32>
    %53 = vector.extract_strided_slice %2 {offsets = [2, 1, 0], sizes = [8, 16, 128], strides = [1, 1, 1]} : vector<10x18x128xf32> to vector<8x16x128xf32>
    %54 = vector.shape_cast %53 : vector<8x16x128xf32> to vector<128x128xf32>
    %55 = arith.truncf %54 : vector<128x128xf32> to vector<128x128xbf16>
    %c7 = arith.constant 7 : index
    %c0_26 = arith.constant 0 : index
    %c0_27 = arith.constant 0 : index
    %56 = vector.load %arg3[%c7, %c0_26, %c0_27] : memref<9x128x128xbf16, #tpu.memory_space<vmem>>, vector<1x128x128xbf16>
    %57 = vector.shape_cast %56 : vector<1x128x128xbf16> to vector<128x128xbf16>
    %cst_28 = arith.constant dense<0.000000e+00> : vector<128x128xf32>
    %58 = tpu.matmul %55, %57, %cst_28 {dimension_numbers = #tpu.dot_dimension_numbers<[1], [0], [0], [1], [0, 0, 1, 1], [], []>} : vector<128x128xbf16>, vector<128x128xbf16>, vector<128x128xf32> -> vector<128x128xf32>
    %59 = arith.addf %52, %58 : vector<128x128xf32>
    %60 = vector.extract_strided_slice %2 {offsets = [2, 2, 0], sizes = [8, 16, 128], strides = [1, 1, 1]} : vector<10x18x128xf32> to vector<8x16x128xf32>
    %61 = vector.shape_cast %60 : vector<8x16x128xf32> to vector<128x128xf32>
    %62 = arith.truncf %61 : vector<128x128xf32> to vector<128x128xbf16>
    %c8 = arith.constant 8 : index
    %c0_29 = arith.constant 0 : index
    %c0_30 = arith.constant 0 : index
    %63 = vector.load %arg3[%c8, %c0_29, %c0_30] : memref<9x128x128xbf16, #tpu.memory_space<vmem>>, vector<1x128x128xbf16>
    %64 = vector.shape_cast %63 : vector<1x128x128xbf16> to vector<128x128xbf16>
    %cst_31 = arith.constant dense<0.000000e+00> : vector<128x128xf32>
    %65 = tpu.matmul %62, %64, %cst_31 {dimension_numbers = #tpu.dot_dimension_numbers<[1], [0], [0], [1], [0, 0, 1, 1], [], []>} : vector<128x128xbf16>, vector<128x128xbf16>, vector<128x128xf32> -> vector<128x128xf32>
    %66 = arith.addf %59, %65 : vector<128x128xf32>
    %c0_32 = arith.constant 0 : index
    %c0_33 = arith.constant 0 : index
    %67 = vector.load %arg4[%c0_32, %c0_33] : memref<1x128xf32, #tpu.memory_space<vmem>>, vector<1x128xf32>
    %68 = vector.broadcast %67 : vector<1x128xf32> to vector<128x128xf32>
    %69 = arith.mulf %66, %68 : vector<128x128xf32>
    %c0_34 = arith.constant 0 : index
    %c0_35 = arith.constant 0 : index
    %70 = vector.load %arg5[%c0_34, %c0_35] : memref<1x128xf32, #tpu.memory_space<vmem>>, vector<1x128xf32>
    %71 = vector.broadcast %70 : vector<1x128xf32> to vector<128x128xf32>
    %72 = arith.addf %69, %71 : vector<128x128xf32>
    %cst_36 = arith.constant 0.000000e+00 : f32
    %73 = vector.broadcast %cst_36 : f32 to vector<128x128xf32>
    %74 = arith.maximumf %72, %73 : vector<128x128xf32>
    %75 = vector.shape_cast %74 : vector<128x128xf32> to vector<1x1x128x128xf32>
    %76 = arith.truncf %75 : vector<1x1x128x128xf32> to vector<1x1x128x128xbf16>
    %c0_37 = arith.constant 0 : index
    %c0_38 = arith.constant 0 : index
    %c0_39 = arith.constant 0 : index
    %c0_40 = arith.constant 0 : index
    %77 = vector.load %arg6[%c0_37, %c0_38, %c0_39, %c0_40] : memref<1x1x128x128xbf16, #tpu.memory_space<vmem>>, vector<1x1x128x128xbf16>
    tpu.vector_store %arg6[%c0_37, %c0_38, %c0_39, %c0_40], %76 {strides = array<i32>} : memref<1x1x128x128xbf16, #tpu.memory_space<vmem>>, vector<1x1x128x128xbf16>,
    return
  }
  func.func @transform_0(%arg0: i32, %arg1: i32) -> (i32, i32, i32, i32, i32) {
    %c0_i32 = arith.constant 0 : i32
    %c0_i32_0 = arith.constant 0 : i32
    %c0_i32_1 = arith.constant 0 : i32
    %c0_i32_2 = arith.constant 0 : i32
    return %arg0, %arg1, %c0_i32, %c0_i32_0, %c0_i32_1 : i32, i32, i32, i32, i32
  }
  func.func @transform_1(%arg0: i32, %arg1: i32) -> (i32, i32, i32) {
    %c0_i32 = arith.constant 0 : i32
    %c0_i32_0 = arith.constant 0 : i32
    %c0_i32_1 = arith.constant 0 : i32
    %c0_i32_2 = arith.constant 0 : i32
    return %c0_i32, %c0_i32_0, %c0_i32_1 : i32, i32, i32
  }
  func.func @transform_2(%arg0: i32, %arg1: i32) -> (i32, i32) {
    %c0_i32 = arith.constant 0 : i32
    %c0_i32_0 = arith.constant 0 : i32
    %c0_i32_1 = arith.constant 0 : i32
    return %c0_i32, %c0_i32_0 : i32, i32
  }
  func.func @transform_3(%arg0: i32, %arg1: i32) -> (i32, i32) {
    %c0_i32 = arith.constant 0 : i32
    %c0_i32_0 = arith.constant 0 : i32
    %c0_i32_1 = arith.constant 0 : i32
    return %c0_i32, %c0_i32_0 : i32, i32
  }
  func.func @transform_4(%arg0: i32, %arg1: i32) -> (i32, i32, i32, i32) {
    %c0_i32 = arith.constant 0 : i32
    %c0_i32_0 = arith.constant 0 : i32
    %c0_i32_1 = arith.constant 0 : i32
    return %arg0, %arg1, %c0_i32, %c0_i32_0 : i32, i32, i32, i32
  }
}

module attributes {stable_mosaic.version = 11 : i64} {
  func.func @_conv_apply_kernel(%arg0: i32, %arg1: i32, %arg2: memref<1x1x10x18x128xbf16, #tpu.memory_space<vmem>>, %arg3: memref<9x128x128xbf16, #tpu.memory_space<vmem>>, %arg4: memref<1x128xf32, #tpu.memory_space<vmem>>, %arg5: memref<1x128xf32, #tpu.memory_space<vmem>>, %arg6: memref<1x1x128x128xf32, #tpu.memory_space<vmem>>) attributes {dimension_semantics = [#tpu.dimension_semantics<parallel>, #tpu.dimension_semantics<parallel>], iteration_bounds = array<i64: 2, 2>, scalar_prefetch = 0 : i64, scratch_operands = 0 : i64, tpu.core_type = #tpu.core_type<tc>, window_params = [{transform_indices = @transform_0, window_bounds = array<i64: 1, 1, 10, 18, 128>}, {pipeline_mode = #tpu.pipeline_mode<synchronous>, transform_indices = @transform_1, window_bounds = array<i64: 9, 128, 128>}, {pipeline_mode = #tpu.pipeline_mode<synchronous>, transform_indices = @transform_2, window_bounds = array<i64: 1, 128>}, {pipeline_mode = #tpu.pipeline_mode<synchronous>, transform_indices = @transform_3, window_bounds = array<i64: 1, 128>}, {transform_indices = @transform_4, window_bounds = array<i64: 1, 1, 128, 128>}]} {
    %c0 = arith.constant 0 : index
    %c0_0 = arith.constant 0 : index
    %c0_1 = arith.constant 0 : index
    %c0_2 = arith.constant 0 : index
    %c0_3 = arith.constant 0 : index
    %0 = vector.load %arg2[%c0, %c0_0, %c0_1, %c0_2, %c0_3] : memref<1x1x10x18x128xbf16, #tpu.memory_space<vmem>>, vector<1x1x10x18x128xbf16>
    %1 = vector.shape_cast %0 : vector<1x1x10x18x128xbf16> to vector<10x18x128xbf16>
    %2 = arith.extf %1 : vector<10x18x128xbf16> to vector<10x18x128xf32>
    %cst = arith.constant 0.000000e+00 : f32
    %3 = vector.broadcast %cst : f32 to vector<128x128xf32>
    %4 = vector.extract_strided_slice %2 {offsets = [0, 0, 0], sizes = [8, 16, 128], strides = [1, 1, 1]} : vector<10x18x128xf32> to vector<8x16x128xf32>
    %5 = vector.shape_cast %4 : vector<8x16x128xf32> to vector<128x128xf32>
    %6 = arith.truncf %5 : vector<128x128xf32> to vector<128x128xbf16>
    %c0_4 = arith.constant 0 : index
    %c0_5 = arith.constant 0 : index
    %c0_6 = arith.constant 0 : index
    %7 = vector.load %arg3[%c0_4, %c0_5, %c0_6] : memref<9x128x128xbf16, #tpu.memory_space<vmem>>, vector<1x128x128xbf16>
    %8 = vector.shape_cast %7 : vector<1x128x128xbf16> to vector<128x128xbf16>
    %cst_7 = arith.constant dense<0.000000e+00> : vector<128x128xf32>
    %9 = tpu.matmul %6, %8, %cst_7 {dimension_numbers = #tpu.dot_dimension_numbers<[1], [0], [0], [1], [0, 0, 1, 1], [], []>} : vector<128x128xbf16>, vector<128x128xbf16>, vector<128x128xf32> -> vector<128x128xf32>
    %10 = arith.addf %3, %9 : vector<128x128xf32>
    %11 = vector.extract_strided_slice %2 {offsets = [0, 1, 0], sizes = [8, 16, 128], strides = [1, 1, 1]} : vector<10x18x128xf32> to vector<8x16x128xf32>
    %12 = vector.shape_cast %11 : vector<8x16x128xf32> to vector<128x128xf32>
    %13 = arith.truncf %12 : vector<128x128xf32> to vector<128x128xbf16>
    %c1 = arith.constant 1 : index
    %c0_8 = arith.constant 0 : index
    %c0_9 = arith.constant 0 : index
    %14 = vector.load %arg3[%c1, %c0_8, %c0_9] : memref<9x128x128xbf16, #tpu.memory_space<vmem>>, vector<1x128x128xbf16>
    %15 = vector.shape_cast %14 : vector<1x128x128xbf16> to vector<128x128xbf16>
    %cst_10 = arith.constant dense<0.000000e+00> : vector<128x128xf32>
    %16 = tpu.matmul %13, %15, %cst_10 {dimension_numbers = #tpu.dot_dimension_numbers<[1], [0], [0], [1], [0, 0, 1, 1], [], []>} : vector<128x128xbf16>, vector<128x128xbf16>, vector<128x128xf32> -> vector<128x128xf32>
    %17 = arith.addf %10, %16 : vector<128x128xf32>
    %18 = vector.extract_strided_slice %2 {offsets = [0, 2, 0], sizes = [8, 16, 128], strides = [1, 1, 1]} : vector<10x18x128xf32> to vector<8x16x128xf32>
    %19 = vector.shape_cast %18 : vector<8x16x128xf32> to vector<128x128xf32>
    %20 = arith.truncf %19 : vector<128x128xf32> to vector<128x128xbf16>
    %c2 = arith.constant 2 : index
    %c0_11 = arith.constant 0 : index
    %c0_12 = arith.constant 0 : index
    %21 = vector.load %arg3[%c2, %c0_11, %c0_12] : memref<9x128x128xbf16, #tpu.memory_space<vmem>>, vector<1x128x128xbf16>
    %22 = vector.shape_cast %21 : vector<1x128x128xbf16> to vector<128x128xbf16>
    %cst_13 = arith.constant dense<0.000000e+00> : vector<128x128xf32>
    %23 = tpu.matmul %20, %22, %cst_13 {dimension_numbers = #tpu.dot_dimension_numbers<[1], [0], [0], [1], [0, 0, 1, 1], [], []>} : vector<128x128xbf16>, vector<128x128xbf16>, vector<128x128xf32> -> vector<128x128xf32>
    %24 = arith.addf %17, %23 : vector<128x128xf32>
    %25 = vector.extract_strided_slice %2 {offsets = [1, 0, 0], sizes = [8, 16, 128], strides = [1, 1, 1]} : vector<10x18x128xf32> to vector<8x16x128xf32>
    %26 = vector.shape_cast %25 : vector<8x16x128xf32> to vector<128x128xf32>
    %27 = arith.truncf %26 : vector<128x128xf32> to vector<128x128xbf16>
    %c3 = arith.constant 3 : index
    %c0_14 = arith.constant 0 : index
    %c0_15 = arith.constant 0 : index
    %28 = vector.load %arg3[%c3, %c0_14, %c0_15] : memref<9x128x128xbf16, #tpu.memory_space<vmem>>, vector<1x128x128xbf16>
    %29 = vector.shape_cast %28 : vector<1x128x128xbf16> to vector<128x128xbf16>
    %cst_16 = arith.constant dense<0.000000e+00> : vector<128x128xf32>
    %30 = tpu.matmul %27, %29, %cst_16 {dimension_numbers = #tpu.dot_dimension_numbers<[1], [0], [0], [1], [0, 0, 1, 1], [], []>} : vector<128x128xbf16>, vector<128x128xbf16>, vector<128x128xf32> -> vector<128x128xf32>
    %31 = arith.addf %24, %30 : vector<128x128xf32>
    %32 = vector.extract_strided_slice %2 {offsets = [1, 1, 0], sizes = [8, 16, 128], strides = [1, 1, 1]} : vector<10x18x128xf32> to vector<8x16x128xf32>
    %33 = vector.shape_cast %32 : vector<8x16x128xf32> to vector<128x128xf32>
    %34 = arith.truncf %33 : vector<128x128xf32> to vector<128x128xbf16>
    %c4 = arith.constant 4 : index
    %c0_17 = arith.constant 0 : index
    %c0_18 = arith.constant 0 : index
    %35 = vector.load %arg3[%c4, %c0_17, %c0_18] : memref<9x128x128xbf16, #tpu.memory_space<vmem>>, vector<1x128x128xbf16>
    %36 = vector.shape_cast %35 : vector<1x128x128xbf16> to vector<128x128xbf16>
    %cst_19 = arith.constant dense<0.000000e+00> : vector<128x128xf32>
    %37 = tpu.matmul %34, %36, %cst_19 {dimension_numbers = #tpu.dot_dimension_numbers<[1], [0], [0], [1], [0, 0, 1, 1], [], []>} : vector<128x128xbf16>, vector<128x128xbf16>, vector<128x128xf32> -> vector<128x128xf32>
    %38 = arith.addf %31, %37 : vector<128x128xf32>
    %39 = vector.extract_strided_slice %2 {offsets = [1, 2, 0], sizes = [8, 16, 128], strides = [1, 1, 1]} : vector<10x18x128xf32> to vector<8x16x128xf32>
    %40 = vector.shape_cast %39 : vector<8x16x128xf32> to vector<128x128xf32>
    %41 = arith.truncf %40 : vector<128x128xf32> to vector<128x128xbf16>
    %c5 = arith.constant 5 : index
    %c0_20 = arith.constant 0 : index
    %c0_21 = arith.constant 0 : index
    %42 = vector.load %arg3[%c5, %c0_20, %c0_21] : memref<9x128x128xbf16, #tpu.memory_space<vmem>>, vector<1x128x128xbf16>
    %43 = vector.shape_cast %42 : vector<1x128x128xbf16> to vector<128x128xbf16>
    %cst_22 = arith.constant dense<0.000000e+00> : vector<128x128xf32>
    %44 = tpu.matmul %41, %43, %cst_22 {dimension_numbers = #tpu.dot_dimension_numbers<[1], [0], [0], [1], [0, 0, 1, 1], [], []>} : vector<128x128xbf16>, vector<128x128xbf16>, vector<128x128xf32> -> vector<128x128xf32>
    %45 = arith.addf %38, %44 : vector<128x128xf32>
    %46 = vector.extract_strided_slice %2 {offsets = [2, 0, 0], sizes = [8, 16, 128], strides = [1, 1, 1]} : vector<10x18x128xf32> to vector<8x16x128xf32>
    %47 = vector.shape_cast %46 : vector<8x16x128xf32> to vector<128x128xf32>
    %48 = arith.truncf %47 : vector<128x128xf32> to vector<128x128xbf16>
    %c6 = arith.constant 6 : index
    %c0_23 = arith.constant 0 : index
    %c0_24 = arith.constant 0 : index
    %49 = vector.load %arg3[%c6, %c0_23, %c0_24] : memref<9x128x128xbf16, #tpu.memory_space<vmem>>, vector<1x128x128xbf16>
    %50 = vector.shape_cast %49 : vector<1x128x128xbf16> to vector<128x128xbf16>
    %cst_25 = arith.constant dense<0.000000e+00> : vector<128x128xf32>
    %51 = tpu.matmul %48, %50, %cst_25 {dimension_numbers = #tpu.dot_dimension_numbers<[1], [0], [0], [1], [0, 0, 1, 1], [], []>} : vector<128x128xbf16>, vector<128x128xbf16>, vector<128x128xf32> -> vector<128x128xf32>
    %52 = arith.addf %45, %51 : vector<128x128xf32>
    %53 = vector.extract_strided_slice %2 {offsets = [2, 1, 0], sizes = [8, 16, 128], strides = [1, 1, 1]} : vector<10x18x128xf32> to vector<8x16x128xf32>
    %54 = vector.shape_cast %53 : vector<8x16x128xf32> to vector<128x128xf32>
    %55 = arith.truncf %54 : vector<128x128xf32> to vector<128x128xbf16>
    %c7 = arith.constant 7 : index
    %c0_26 = arith.constant 0 : index
    %c0_27 = arith.constant 0 : index
    %56 = vector.load %arg3[%c7, %c0_26, %c0_27] : memref<9x128x128xbf16, #tpu.memory_space<vmem>>, vector<1x128x128xbf16>
    %57 = vector.shape_cast %56 : vector<1x128x128xbf16> to vector<128x128xbf16>
    %cst_28 = arith.constant dense<0.000000e+00> : vector<128x128xf32>
    %58 = tpu.matmul %55, %57, %cst_28 {dimension_numbers = #tpu.dot_dimension_numbers<[1], [0], [0], [1], [0, 0, 1, 1], [], []>} : vector<128x128xbf16>, vector<128x128xbf16>, vector<128x128xf32> -> vector<128x128xf32>
    %59 = arith.addf %52, %58 : vector<128x128xf32>
    %60 = vector.extract_strided_slice %2 {offsets = [2, 2, 0], sizes = [8, 16, 128], strides = [1, 1, 1]} : vector<10x18x128xf32> to vector<8x16x128xf32>
    %61 = vector.shape_cast %60 : vector<8x16x128xf32> to vector<128x128xf32>
    %62 = arith.truncf %61 : vector<128x128xf32> to vector<128x128xbf16>
    %c8 = arith.constant 8 : index
    %c0_29 = arith.constant 0 : index
    %c0_30 = arith.constant 0 : index
    %63 = vector.load %arg3[%c8, %c0_29, %c0_30] : memref<9x128x128xbf16, #tpu.memory_space<vmem>>, vector<1x128x128xbf16>
    %64 = vector.shape_cast %63 : vector<1x128x128xbf16> to vector<128x128xbf16>
    %cst_31 = arith.constant dense<0.000000e+00> : vector<128x128xf32>
    %65 = tpu.matmul %62, %64, %cst_31 {dimension_numbers = #tpu.dot_dimension_numbers<[1], [0], [0], [1], [0, 0, 1, 1], [], []>} : vector<128x128xbf16>, vector<128x128xbf16>, vector<128x128xf32> -> vector<128x128xf32>
    %66 = arith.addf %59, %65 : vector<128x128xf32>
    %c0_32 = arith.constant 0 : index
    %c0_33 = arith.constant 0 : index
    %67 = vector.load %arg4[%c0_32, %c0_33] : memref<1x128xf32, #tpu.memory_space<vmem>>, vector<1x128xf32>
    %68 = vector.broadcast %67 : vector<1x128xf32> to vector<128x128xf32>
    %69 = arith.mulf %66, %68 : vector<128x128xf32>
    %c0_34 = arith.constant 0 : index
    %c0_35 = arith.constant 0 : index
    %70 = vector.load %arg5[%c0_34, %c0_35] : memref<1x128xf32, #tpu.memory_space<vmem>>, vector<1x128xf32>
    %71 = vector.broadcast %70 : vector<1x128xf32> to vector<128x128xf32>
    %72 = arith.addf %69, %71 : vector<128x128xf32>
    %cst_36 = arith.constant 0.000000e+00 : f32
    %73 = vector.broadcast %cst_36 : f32 to vector<128x128xf32>
    %74 = arith.maximumf %72, %73 : vector<128x128xf32>
    %75 = vector.shape_cast %74 : vector<128x128xf32> to vector<1x1x128x128xf32>
    %c0_37 = arith.constant 0 : index
    %c0_38 = arith.constant 0 : index
    %c0_39 = arith.constant 0 : index
    %c0_40 = arith.constant 0 : index
    %76 = vector.load %arg6[%c0_37, %c0_38, %c0_39, %c0_40] : memref<1x1x128x128xf32, #tpu.memory_space<vmem>>, vector<1x1x128x128xf32>
    tpu.vector_store %arg6[%c0_37, %c0_38, %c0_39, %c0_40], %75 {strides = array<i32>} : memref<1x1x128x128xf32, #tpu.memory_space<vmem>>, vector<1x1x128x128xf32>,
    return
  }
  func.func @transform_0(%arg0: i32, %arg1: i32) -> (i32, i32, i32, i32, i32) {
    %c0_i32 = arith.constant 0 : i32
    %c0_i32_0 = arith.constant 0 : i32
    %c0_i32_1 = arith.constant 0 : i32
    %c0_i32_2 = arith.constant 0 : i32
    return %arg0, %arg1, %c0_i32, %c0_i32_0, %c0_i32_1 : i32, i32, i32, i32, i32
  }
  func.func @transform_1(%arg0: i32, %arg1: i32) -> (i32, i32, i32) {
    %c0_i32 = arith.constant 0 : i32
    %c0_i32_0 = arith.constant 0 : i32
    %c0_i32_1 = arith.constant 0 : i32
    %c0_i32_2 = arith.constant 0 : i32
    return %c0_i32, %c0_i32_0, %c0_i32_1 : i32, i32, i32
  }
  func.func @transform_2(%arg0: i32, %arg1: i32) -> (i32, i32) {
    %c0_i32 = arith.constant 0 : i32
    %c0_i32_0 = arith.constant 0 : i32
    %c0_i32_1 = arith.constant 0 : i32
    return %c0_i32, %c0_i32_0 : i32, i32
  }
  func.func @transform_3(%arg0: i32, %arg1: i32) -> (i32, i32) {
    %c0_i32 = arith.constant 0 : i32
    %c0_i32_0 = arith.constant 0 : i32
    %c0_i32_1 = arith.constant 0 : i32
    return %c0_i32, %c0_i32_0 : i32, i32
  }
  func.func @transform_4(%arg0: i32, %arg1: i32) -> (i32, i32, i32, i32) {
    %c0_i32 = arith.constant 0 : i32
    %c0_i32_0 = arith.constant 0 : i32
    %c0_i32_1 = arith.constant 0 : i32
    return %arg0, %arg1, %c0_i32, %c0_i32_0 : i32, i32, i32, i32
  }
}

</mosaic_0001>

<bundles_post_ra>
// kernel: conv_block_forward.5
= control target key start
LH: loop header
LB: loop body
LE: loop exit
PB: predicated region body
PF: predicated region fallthrough
CT: control target
= control target key end

     0   :  { %s3380_s15 = smov 0   ;;  %s3382_s16 = smov 0   ;;  %s4085_s0 = inlined_call_operand.vmem [shape: bf16[2,2,10,18,128], index: 0, kind: input, shape index: {}]   ;;  %s4086_s1 = inlined_call_operand.vmem [shape: bf16[9,128,128], index: 1, kind: input, shape index: {}]   ;;  %s4087_s2 = inlined_call_operand.vmem [shape: f32[1,128], index: 2, kind: input, shape index: {}]   ;;  %s4088_s3 = inlined_call_operand.vmem [shape: f32[1,128], index: 3, kind: input, shape index: {}]   ;;  %s4089_s4 = inlined_call_operand.vmem [shape: bf16[2,2,128,128], index: 4, kind: output, shape index: {}]  }
   0x1   :  { %s3384_s17 = smov 0   ;;  %s3386_s18 = smov 0  }
   0x2   :  { %s3388_s19 = smov 0  }
   0x3 LB: > { %s23_s20 = sadd.s32 1, %s3345_s17  ;;  %s26_s21 = sadd.s32 1, %s3349_s18  ;;  %s3353_s19 = sphi %s3388_s19, %s14_s19   ;;  %s3349_s18 = sphi %s3386_s18, %s4093_s18   ;;  %s3345_s17 = sphi %s3384_s17, %s4092_s17   ;;  %s3341_s16 = sphi %s3382_s16, %s4091_s16   ;;  %s3337_s15 = sphi %s3380_s15, %s4090_s15  }
   0x4   : > { %p24_p0 = scmp.ge.s32.totalorder %s23_s20, 2  ;;  %p2307_p1 = scmp.ge.s32.totalorder %s3353_s19, 1 }
   0x5   : > { %p182_p2 = scmp.lt.s32.totalorder %s3353_s19, 5 }
   0x6   : > { %s4095_s20 = smov (%p24_p0, %s23_s20), 0  ;;  %s4097_s21 = smov (!%p24_p0, %s26_s21), %s3349_s18 }
   0x7   : > { %p183_p3 = pnand %p2307_p1, %p182_p2  ;;  %p28_p4 = scmp.ge.s32.totalorder %s4097_s21, 2 }
   0x8   : > { %v3223_v0 = vld [vmem:[%s4086_s1 + $0x40] sm:$0xff] (!%p183_p3)   ;;  %p216_p5 = scmp.lt.s32.totalorder (!%p183_p3), %s3341_s16, 1  ;;  %p218_p6 = scmp.lt.s32.totalorder (!%p183_p3), %s3337_s15, 1  ;;  %v3225_v2 = vld [vmem:[%s4086_s1 + $0x48] sm:$0xff] (!%p183_p3)   ;;  %v3227_v4 = vld [vmem:[%s4086_s1 + $0x50] sm:$0xff] (!%p183_p3)   ;;  %vm343_vm0 = vcmask (!%p183_p3), 1046528  }
   0x9   : > { %s4099_s21 = smov (%p28_p4, %s4097_s21), 0  ;;  %186 = sbr.rel (%p183_p3) target bundleno = 406 (0x196), region = 36 }
   0xa   : > { %v3224_v1 = vld [vmem:[%s4086_s1 + $0x100] sm:$0xff] (!%p183_p3)   ;;  %2749 = vmatprep.subr.bf16.mxu1 (!%p183_p3), %v3223_v0  ;;  %v3226_v3 = vld [vmem:[%s4086_s1 + $0x108] sm:$0xff] (!%p183_p3)   ;;  %v3228_v5 = vld [vmem:[%s4086_s1 + $0x110] sm:$0xff] (!%p183_p3)   ;;  %vm715_vm1 = vcmask (!%p183_p3), 1045504  }
   0xb   : > { %2877 = vmatprep.subr.bf16.mxu0 (!%p183_p3), %v3224_v1  ;;  %2750 = vmatpush3.bf16.msra.mxu1 (!%p183_p3), %v3223_v0  ;;  %v3229_v6 = vld [vmem:[%s4086_s1 + $0x58] sm:$0xff] (!%p183_p3)   ;;  %v3231_v8 = vld [vmem:[%s4086_s1 + $0x60] sm:$0xff] (!%p183_p3)   ;;  %v3233_v10 = vld [vmem:[%s4086_s1 + $0x68] sm:$0xff] (!%p183_p3)  }
   0xc   : > { %2878 = vmatpush3.bf16.msra.mxu0 (!%p183_p3), %v3224_v1  ;;  %2751 = vmatprep.subr.bf16.mxu1 (!%p183_p3), %v3225_v2  ;;  %v3230_v7 = vld [vmem:[%s4086_s1 + $0x118] sm:$0xff] (!%p183_p3)   ;;  %v3232_v9 = vld [vmem:[%s4086_s1 + $0x120] sm:$0xff] (!%p183_p3)   ;;  %v3234_v11 = vld [vmem:[%s4086_s1 + $0x128] sm:$0xff] (!%p183_p3)  }
   0xd   : > { %2879 = vmatprep.subr.bf16.mxu0 (!%p183_p3), %v3226_v3  ;;  %v3235_v28 = vld [vmem:[%s4086_s1 + $0x70] sm:$0xff] (!%p183_p3)   ;;  %v3237_v42 = vld [vmem:[%s4086_s1 + $0x78] sm:$0xff] (!%p183_p3)   ;;  %v3240_v58 = vld [vmem:[%s4086_s1] sm:$0xff] (!%p183_p3)  }
   0xe   : > { %v3236_v29 = vld [vmem:[%s4086_s1 + $0x130] sm:$0xff] (!%p183_p3)   ;;  %v3238_v47 = vld [vmem:[%s4086_s1 + $0x138] sm:$0xff] (!%p183_p3)   ;;  %v3241_v0 = vld [vmem:[%s4086_s1 + $0x140] sm:$0xff] (!%p183_p3)  }
   0xf   : > { %2752 = vmatpush3.bf16.msra.mxu1 (!%p183_p3), %v3225_v2 }
  0x10   : > { %s4101_s16 = smov (!%p216_p5, %s3341_s16), 1  ;;  %s4103_s15 = smov (!%p218_p6, %s3337_s15), 1  ;;  %2880 = vmatpush3.bf16.msra.mxu0 %v3226_v3  ;;  %2753 = vmatprep.subr.bf16.mxu1 %v3227_v4 }
  0x11   : > { %s3182_s6 = smul.u32 60, %s4101_s16  ;;  %2881 = vmatprep.subr.bf16.mxu0 %v3228_v5  ;;  %s2309_s25 = sshll.u32 %s4103_s15, 4 }
  0x12   : > { %s3181_s9 = smul.u32 30, %s4103_s15  ;;  %s2310_s26 = sshll.u32 %s4101_s16, 5 }
  0x13   : > { %2754 = vmatpush3.bf16.msra.mxu1 %v3227_v4  ;;  %s231_s15 = sadd.s32 %s2310_s26, %s2309_s25 }
  0x14   : > { %s222_s10 = sadd.s32 %s3182_s6, %s3181_s9  ;;  %2882 = vmatpush3.bf16.msra.mxu0 %v3228_v5  ;;  %2755 = vmatprep.subr.bf16.mxu1 %v3229_v6  ;;  %s2311_s16 = sshll.u32 %s231_s15, 2 }
  0x15   : > { %s2308_s22 = sshll.u32 %s222_s10, 2  ;;  %2883 = vmatprep.subr.bf16.mxu0 %v3230_v7  ;;  %s4038_s6 = scalar_lea.vmem %s4089_s4, %s2311_s16 }
  0x16   : > { %s3449_s29 = scalar_lea.vmem %s4085_s0, %s2308_s22 }
  0x17   : > { %2756 = vmatpush3.bf16.msra.mxu1 %v3229_v6  ;;  %v3458_v12 = vld [vmem:[%s3449_s29] sm:$0xff]   ;;  %v3461_v13 = vld [vmem:[%s3449_s29 + $0x8] sm:$0x1]  ;;  %v3464_v14 = vld [vmem:[%s3449_s29 + $0xc] sm:$0xff]  }
  0x18   : > { %2884 = vmatpush3.bf16.msra.mxu0 %v3230_v7  ;;  %2757 = vmatprep.subr.bf16.mxu1 %v3231_v8  ;;  %v265_v15 = vunpack.c.l.bf16 %v3458_v12  ;;  %v266_v16 = vunpack.c.h.bf16 %v3458_v12  ;;  %v267_v17 = vunpack.c.l.bf16 %v3461_v13  ;;  %v3470_v18 = vld [vmem:[%s3449_s29 + $0x14] sm:$0x1]  ;;  %v268_v19 = vunpack.c.l.bf16 %v3464_v14  ;;  %v3476_v22 = vld [vmem:[%s3449_s29 + $0x18] sm:$0xff]   ;;  %v3479_v23 = vld [vmem:[%s3449_s29 + $0x20] sm:$0x1] }
  0x19   : > { %2885 = vmatprep.subr.bf16.mxu0 %v3232_v9  ;;  %v269_v20 = vunpack.c.h.bf16 %v3464_v14  ;;  %v270_v21 = vunpack.c.l.bf16 %v3470_v18  ;;  %v271_v32 = vunpack.c.l.bf16 %v3476_v22  ;;  %v272_v33 = vunpack.c.h.bf16 %v3476_v22  ;;  %v3509_v41 = vld [vmem:[%s3449_s29 + $0x24] sm:$0xff]   ;;  %v3519_v46 = vld [vmem:[%s3449_s29 + $0x2c] sm:$0x1]  ;;  %v3529_v52 = vld [vmem:[%s3449_s29 + $0x30] sm:$0xff]  }
  0x1a   : > { %v344_v24 = vrot.slane %v265_v15, 1  ;;  %v345_v25 = vrot.slane %v266_v16, 1  ;;  %v347_v26 = vrot.slane %v267_v17, 1  ;;  %v349_v27 = vrot.slane %v268_v19, 1  ;;  %v3532_v53 = vld [vmem:[%s3449_s29 + $0x38] sm:$0x1] }
  0x1b   : > { %2758 = vmatpush3.bf16.msra.mxu1 %v3231_v8  ;;  %v350_v30 = vrot.slane %v269_v20, 1  ;;  %v352_v31 = vrot.slane %v270_v21, 1  ;;  %v273_v36 = vunpack.c.l.bf16 %v3479_v23  ;;  %v354_v40 = vrot.slane %v271_v32, 1  ;;  %v3548_v62 = vld [vmem:[%s3449_s29 + $0x3c] sm:$0xff]   ;;  %v3556_v1 = vld [vmem:[%s3449_s29 + $0x44] sm:$0x1] }
  0x1c   : > { %2886 = vmatpush3.bf16.msra.mxu0 %v3232_v9  ;;  %2759 = vmatprep.subr.bf16.mxu1 %v3233_v10  ;;  %v346_v34 = vsel %vm343_vm0, %v344_v24, %v345_v25  ;;  %v348_v35 = vsel %vm343_vm0, %v345_v25, %v347_v26  ;;  %v355_v44 = vrot.slane %v272_v33, 1  ;;  %v274_v48 = vunpack.c.l.bf16 %v3509_v41  ;;  %v3242_v6 = vld [vmem:[%s4086_s1 + $0x8] sm:$0xff]   ;;  %v3579_v25 = vld [vmem:[%s3449_s29 + $0x50] sm:$0x1] }
  0x1d   : > { %2887 = vmatprep.subr.bf16.mxu0 %v3234_v11  ;;  %v400_v37 = vpack.c.bf16 %v348_v35, %v346_v34  ;;  %v351_v38 = vsel %vm343_vm0, %v349_v27, %v350_v30  ;;  %v353_v39 = vsel %vm343_vm0, %v350_v30, %v352_v31  ;;  %v357_v45 = vrot.slane %v273_v36, 1  ;;  %v3243_v24 = vld [vmem:[%s4086_s1 + $0x148] sm:$0xff]   ;;  %v3253_v18 = vld [vmem:[%s4086_s1 + $0x170] sm:$0xff]  }
  0x1e   : > { %v401_v43 = vpack.c.bf16 %v353_v39, %v351_v38  ;;  %v275_v49 = vunpack.c.h.bf16 %v3509_v41  ;;  %v356_v50 = vsel %vm343_vm0, %v354_v40, %v355_v44  ;;  %v276_v51 = vunpack.c.l.bf16 %v3519_v46  ;;  %v3244_v38 = vld [vmem:[%s4086_s1 + $0x10] sm:$0xff]   ;;  %v3602_v40 = vld [vmem:[%s3449_s29 + $0x5c] sm:$0x1]  ;;  %v3258_v46 = vld [vmem:[%s4086_s1 + $0x180] sm:$0xff]  }
  0x1f   : > { %2760 = vmatpush3.bf16.msra.mxu1 %v3233_v10  ;;  %2765 = vmatprep.mubr.bf16.mxu1 %v400_v37  ;;  %v358_v54 = vsel %vm343_vm0, %v355_v44, %v357_v45  ;;  %v359_v55 = vrot.slane %v274_v48, 1  ;;  %v277_v57 = vunpack.c.l.bf16 %v3529_v52  ;;  %v278_v60 = vunpack.c.h.bf16 %v3529_v52  ;;  %v3595_v37 = vld [vmem:[%s3449_s29 + $0x54] sm:$0xff]  }
  0x20   : > { %2888 = vmatpush3.bf16.msra.mxu0 %v3234_v11  ;;  %2761 = vmatprep.subr.bf16.mxu1 %v3235_v28  ;;  %v360_v56 = vrot.slane %v275_v49, 1  ;;  %v362_v59 = vrot.slane %v276_v51, 1  ;;  %v279_v61 = vunpack.c.l.bf16 %v3532_v53  ;;  %v3550_v63 = vpack.c.bf16 %v358_v54, %v356_v50  ;;  %v3573_v11 = vld [vmem:[%s3449_s29 + $0x48] sm:$0xff]   ;;  %v3246_v44 = vld [vmem:[%s4086_s1 + $0x18] sm:$0xff]   ;;  %v3263_v53 = vld [vmem:[%s4086_s1 + $0x90] sm:$0xff]  }
  0x21   : > { %2889 = vmatprep.subr.bf16.mxu0 %v3236_v29  ;;  %2893 = vmatprep.mubr.bf16.mxu0 %v401_v43  ;;  %v364_v3 = vrot.slane %v277_v57, 1  ;;  %v280_v4 = vunpack.c.l.bf16 %v3548_v62  ;;  %v281_v5 = vunpack.c.h.bf16 %v3548_v62  ;;  %v365_v8 = vrot.slane %v278_v60, 1  ;;  %v3247_v54 = vld [vmem:[%s4086_s1 + $0x158] sm:$0xff]  }
  0x22   : > { %v361_v2 = vsel %vm343_vm0, %v359_v55, %v360_v56  ;;  %v363_v7 = vsel %vm343_vm0, %v360_v56, %v362_v59  ;;  %v367_v9 = vrot.slane %v279_v61, 1  ;;  %v282_v10 = vunpack.c.l.bf16 %v3556_v1 }
  0x23   : > { %2762 = vmatpush3.bf16.msra.mxu1 %v3235_v28  ;;  %v3581_v26 = vpack.c.bf16 %v363_v7, %v361_v2  ;;  %v369_v27 = vrot.slane %v280_v4, 1  ;;  %v370_v28 = vrot.slane %v281_v5, 1  ;;  %v366_v30 = vsel %vm343_vm0, %v364_v3, %v365_v8  ;;  %v3629_v2 = vld [vmem:[%s3449_s29 + $0x60] sm:$0xff]   ;;  %v3632_v3 = vld [vmem:[%s3449_s29 + $0x68] sm:$0x1] }
  0x24   : > { %2890 = vmatpush3.bf16.msra.mxu0 %v3236_v29  ;;  %2763 = vmatprep.subr.bf16.mxu1 %v3237_v42  ;;  %v283_v29 = vunpack.c.l.bf16 %v3573_v11  ;;  %v368_v31 = vsel %vm343_vm0, %v365_v8, %v367_v9  ;;  %v372_v34 = vrot.slane %v282_v10, 1  ;;  %v284_v35 = vunpack.c.h.bf16 %v3573_v11 }
  0x25   : > { %2891 = vmatprep.subr.bf16.mxu0 %v3238_v47  ;;  %v285_v39 = vunpack.c.l.bf16 %v3579_v25  ;;  %v371_v45 = vsel %vm343_vm0, %v369_v27, %v370_v28  ;;  %v286_v50 = vunpack.c.l.bf16 %v3595_v37  ;;  %v288_v59 = vunpack.c.l.bf16 %v3602_v40  ;;  %v3248_v27 = vld [vmem:[%s4086_s1 + $0x20] sm:$0xff]  }
  0x26   : > { %v373_v55 = vsel %vm343_vm0, %v370_v28, %v372_v34  ;;  %v375_v56 = vrot.slane %v284_v35, 1  ;;  %v291_v34 = vunpack.c.l.bf16 %v3632_v3  ;;  %v717_v23 = vrot.slane %v266_v16, 2  ;;  %v3270_v40 = vld [vmem:[%s4086_s1 + $0x1a0] sm:$0xff]   ;;  %v3275_v3 = vld [vmem:[%s4086_s1 + $0xb0] sm:$0xff]  }
  0x27   : > { %2764 = vmatpush3.bf16.msra.mxu1 %v3237_v42  ;;  %v3245_v42 = vld [vmem:[%s4086_s1 + $0x150] sm:$0xff]   ;;  %v379_v7 = vrot.slane %v286_v50, 1  ;;  %v732_v13 = vrot.slane %v275_v49, 2  ;;  %v749_v1 = vrot.slane %v285_v39, 2  ;;  %v751_v25 = vrot.slane %v286_v50, 2 }
  0x28   : > { %2892 = vmatpush3.bf16.msra.mxu0 %v3238_v47  ;;  %2781 = vmatprep.subr.bf16.mxu1 %v3240_v58  ;;  %v374_v47 = vrot.slane %v283_v29, 1 }
  0x29   : > { %2909 = vmatprep.subr.bf16.mxu0 %v3241_v0 }
  0x2a   : > { %2766 = vmatmul.mubr.bf16.vlgmr.msra.gmra.mrb[0].mxu1 %v401_v43  ;;  %v3609_v43 = vpack.c.bf16 %v368_v31, %v366_v30  ;;  %v376_v8 = vsel %vm343_vm0, %v374_v47, %v375_v56  ;;  %v289_v30 = vunpack.c.l.bf16 %v3629_v2  ;;  %v290_v31 = vunpack.c.h.bf16 %v3629_v2 }
  0x2b   : > { %2894 = vmatmul.mubr.bf16.vlgmr.msra.gmra.mrb[0].mxu0 %v3550_v63  ;;  %2782 = vmatpush3.bf16.msra.mxu1 %v3240_v58  ;;  %v287_v58 = vunpack.c.h.bf16 %v3595_v37 }
  0x2c   : > { %2910 = vmatpush3.bf16.msra.mxu0 %v3241_v0  ;;  %2783 = vmatprep.subr.bf16.mxu1 %v3242_v6  ;;  %v377_v0 = vrot.slane %v285_v39, 1  ;;  %v3266_v39 = vld [vmem:[%s4086_s1 + $0x198] sm:$0xff]  }
  0x2d   : > { %2911 = vmatprep.subr.bf16.mxu0 %v3243_v24  ;;  %2769 = vmatprep.mubr.bf16.mxu1 %v3550_v63  ;;  %v380_v9 = vrot.slane %v287_v58, 1  ;;  %v752_v50 = vrot.slane %v287_v58, 2 }
  0x2e   : > { %2897 = vmatprep.mubr.bf16.mxu0 %v3581_v26  ;;  %v378_v28 = vsel %vm343_vm0, %v375_v56, %v377_v0  ;;  %v1140_v56 = vrot.slane %v289_v30, 1  ;;  %v1141_v0 = vrot.slane %v290_v31, 1 }
  0x2f   : > { %2784 = vmatpush3.bf16.msra.mxu1 %v3242_v6  ;;  %v3635_v6 = vpack.c.bf16 %v373_v55, %v371_v45  ;;  %v381_v45 = vsel %vm343_vm0, %v379_v7, %v380_v9  ;;  %v3250_v55 = vld [vmem:[%s4086_s1 + $0x28] sm:$0xff]  }
  0x30   : > { %2912 = vmatpush3.bf16.msra.mxu0 %v3243_v24  ;;  %2785 = vmatprep.subr.bf16.mxu1 %v3244_v38  ;;  %v382_v24 = vrot.slane %v288_v59, 1  ;;  %v3251_v7 = vld [vmem:[%s4086_s1 + $0x168] sm:$0xff]  }
  0x31   : > { %2913 = vmatprep.subr.bf16.mxu0 %v3245_v42 }
  0x32   : > { %2770 = vmatmul.mubr.bf16.gmra.mrb[4].mxu1 %v3581_v26  ;;  %v383_v47 = vsel %vm343_vm0, %v380_v9, %v382_v24  ;;  %v722_v9 = vrot.slane %v269_v20, 2  ;;  %v724_v24 = vrot.slane %v270_v21, 2  ;;  %v727_v20 = vrot.slane %v272_v33, 2  ;;  %v3254_v33 = vld [vmem:[%s4086_s1 + $0x38] sm:$0xff]  }
  0x33   : > { %2898 = vmatmul.mubr.bf16.gmra.mrb[4].mxu0 %v3609_v43  ;;  %2786 = vmatpush3.bf16.msra.mxu1 %v3244_v38  ;;  %v3249_v38 = vld [vmem:[%s4086_s1 + $0x160] sm:$0xff]   ;;  %v729_v21 = vrot.slane %v273_v36, 2  ;;  %v3255_v36 = vld [vmem:[%s4086_s1 + $0x178] sm:$0xff]  }
  0x34   : > { %2914 = vmatpush3.bf16.msra.mxu0 %v3245_v42  ;;  %2787 = vmatprep.subr.bf16.mxu1 %v3246_v44  ;;  %v3657_v42 = vpack.c.bf16 %v378_v28, %v376_v8  ;;  %v3676_v8 = vpack.c.bf16 %v383_v47, %v381_v45  ;;  %v3252_v28 = vld [vmem:[%s4086_s1 + $0x30] sm:$0xff]   ;;  %v725_v47 = vsel %vm715_vm1, %v722_v9, %v724_v24 }
  0x35   : > { %2915 = vmatprep.subr.bf16.mxu0 %v3247_v54  ;;  %2773 = vmatprep.mubr.bf16.mxu1 %v3609_v43  ;;  %v730_v16 = vsel %vm715_vm1, %v727_v20, %v729_v21  ;;  %v744_v21 = vrot.slane %v282_v10, 2  ;;  %v3788_v10 = vld [vmem:[%s3449_s29 + $0x6c] sm:$0xff]  }
  0x36   : > { %2901 = vmatprep.mubr.bf16.mxu0 %v3635_v6 }
  0x37   : > { %2788 = vmatpush3.bf16.msra.mxu1 %v3246_v44  ;;  %v1143_v44 = vrot.slane %v291_v34, 1 }
  0x38   : > { %2916 = vmatpush3.bf16.msra.mxu0 %v3247_v54  ;;  %2789 = vmatprep.subr.bf16.mxu1 %v3248_v27  ;;  %v721_v54 = vrot.slane %v268_v19, 2  ;;  %v1142_v19 = vsel %vm343_vm0, %v1140_v56, %v1141_v0  ;;  %v716_v56 = vrot.slane %v265_v15, 2 }
  0x39   : > { %2917 = vmatprep.subr.bf16.mxu0 %v3249_v38  ;;  %v1144_v45 = vsel %vm343_vm0, %v1141_v0, %v1143_v44  ;;  %v731_v44 = vrot.slane %v274_v48, 2  ;;  %v3257_v48 = vld [vmem:[%s4086_s1 + $0x80] sm:$0xff]  }
  0x3a   : > { %2774 = vmatmul.mubr.bf16.gmra.mrb[8].mxu1 %v3635_v6 }
  0x3b   : > { %2902 = vmatmul.mubr.bf16.gmra.mrb[8].mxu0 %v3657_v42  ;;  %2790 = vmatpush3.bf16.msra.mxu1 %v3248_v27  ;;  %v726_v27 = vrot.slane %v271_v32, 2  ;;  %v723_v32 = vsel %vm715_vm1, %v721_v54, %v722_v9  ;;  %v733_v24 = vsel %vm715_vm1, %v731_v44, %v732_v13 }
  0x3c   : > { %2918 = vmatpush3.bf16.msra.mxu0 %v3249_v38  ;;  %2791 = vmatprep.subr.bf16.mxu1 %v3250_v55  ;;  %v3699_v38 = vpack.c.bf16 %v1144_v45, %v1142_v19  ;;  %v3716_v15 = vpack.c.bf16 %v725_v47, %v723_v32  ;;  %v737_v19 = vrot.slane %v278_v60, 2  ;;  %v3259_v45 = vld [vmem:[%s4086_s1 + $0x88] sm:$0xff]   ;;  %v741_v60 = vrot.slane %v280_v4, 2  ;;  %v3264_v4 = vld [vmem:[%s4086_s1 + $0x190] sm:$0xff]  }
  0x3d   : > { %2919 = vmatprep.subr.bf16.mxu0 %v3251_v7  ;;  %2777 = vmatprep.mubr.bf16.mxu1 %v3657_v42  ;;  %v728_v0 = vsel %vm715_vm1, %v726_v27, %v727_v20  ;;  %v742_v20 = vrot.slane %v281_v5, 2  ;;  %v746_v32 = vrot.slane %v283_v29, 2  ;;  %v747_v47 = vrot.slane %v284_v35, 2  ;;  %v3265_v35 = vld [vmem:[%s4086_s1 + $0x98] sm:$0xff]  }
  0x3e   : > { %2905 = vmatprep.mubr.bf16.mxu0 %v3676_v8  ;;  %v3743_v49 = vpack.c.bf16 %v730_v16, %v728_v0  ;;  %v293_v29 = vunpack.c.h.bf16 %v3788_v10 }
  0x3f   : > { %2792 = vmatpush3.bf16.msra.mxu1 %v3250_v55  ;;  %v719_v55 = vrot.slane %v267_v17, 2  ;;  %v734_v17 = vrot.slane %v276_v51, 2  ;;  %v736_v51 = vrot.slane %v277_v57, 2  ;;  %v3260_v57 = vld [vmem:[%s4086_s1 + $0x188] sm:$0xff]  }
  0x40   : > { %2920 = vmatpush3.bf16.msra.mxu0 %v3251_v7  ;;  %2793 = vmatprep.subr.bf16.mxu1 %v3252_v28  ;;  %v3722_v7 = vsel %vm715_vm1, %v716_v56, %v717_v23  ;;  %v743_v56 = vsel %vm715_vm1, %v741_v60, %v742_v20  ;;  %v1881_v44 = vrot.slane %v293_v29, 2 }
  0x41   : > { %2921 = vmatprep.subr.bf16.mxu0 %v3253_v18  ;;  %v3731_v54 = vsel %vm715_vm1, %v717_v23, %v719_v55  ;;  %v292_v23 = vunpack.c.l.bf16 %v3788_v10  ;;  %v1695_v55 = vrot.slane %v293_v29, 1  ;;  %v3279_v29 = vld [vmem:[%s4086_s1 + $0xc0] sm:$0xff]  }
  0x42   : > { %2778 = vmatmul.mubr.bf16.gmra.mrb[12].mxu1 %v3676_v8  ;;  %v772_v9 = vpack.c.bf16 %v3731_v54, %v3722_v7  ;;  %v3283_v7 = vld [vmem:[%s4086_s1 + $0xd0] sm:$0xff]  }
  0x43   : > { %2906 = vmatmul.mubr.bf16.gmra.mrb[12].mxu0 %v3699_v38  ;;  %2794 = vmatpush3.bf16.msra.mxu1 %v3252_v28  ;;  %v735_v28 = vsel %vm715_vm1, %v732_v13, %v734_v17  ;;  %v1880_v0 = vrot.slane %v292_v23, 2  ;;  %v748_v13 = vsel %vm715_vm1, %v746_v32, %v747_v47  ;;  %v750_v17 = vsel %vm715_vm1, %v747_v47, %v749_v1  ;;  %v3276_v32 = vld [vmem:[%s4086_s1 + $0x1b0] sm:$0xff]  }
  0x44   : > { %2922 = vmatpush3.bf16.msra.mxu0 %v3253_v18  ;;  %2795 = vmatprep.subr.bf16.mxu1 %v3254_v33  ;;  %v3760_v27 = vpack.c.bf16 %v735_v28, %v733_v24  ;;  %v3269_v24 = vld [vmem:[%s4086_s1 + $0xa0] sm:$0xff]   ;;  %v3826_v58 = vpack.c.bf16 %v750_v17, %v748_v13  ;;  %v3284_v54 = vld [vmem:[%s4086_s1 + $0x1d0] sm:$0xff]  }
  0x45   : > { %2923 = vmatprep.subr.bf16.mxu0 %v3255_v36  ;;  %2797 = vmatprep.mubr.bf16.mxu1 %v3458_v12  ;;  %v739_v12 = vrot.slane %v279_v61, 2  ;;  %v738_v61 = vsel %vm715_vm1, %v736_v51, %v737_v19  ;;  %v3816_v51 = vsel %vm715_vm1, %v1880_v0, %v1881_v44  ;;  %v3289_v0 = vld [vmem:[%s4086_s1 + $0xe8] sm:$0xff]   ;;  %v3292_v13 = vld [vmem:[%s4086_s1 + $0xf0] sm:$0xff]  }
  0x46   : > { %2925 = vmatprep.mubr.bf16.mxu0 %v3716_v15  ;;  %v3294_v17 = vld [vmem:[%s4086_s1 + $0x1f0] sm:$0xff]  }
  0x47   : > { %2796 = vmatpush3.bf16.msra.mxu1 %v3254_v33  ;;  %v740_v18 = vsel %vm715_vm1, %v737_v19, %v739_v12  ;;  %v745_v33 = vsel %vm715_vm1, %v742_v20, %v744_v21  ;;  %v1326_v19 = vrot.slane %v289_v30, 2  ;;  %v1327_v12 = vrot.slane %v290_v31, 2 }
  0x48   : > { %2924 = vmatpush3.bf16.msra.mxu0 %v3255_v36  ;;  %2813 = vmatprep.subr.bf16.mxu1 %v3257_v48  ;;  %v3783_v5 = vpack.c.bf16 %v740_v18, %v738_v61  ;;  %v1694_v36 = vrot.slane %v292_v23, 1  ;;  %v3803_v16 = vpack.c.bf16 %v745_v33, %v743_v56  ;;  %v3272_v61 = vld [vmem:[%s4086_s1 + $0x1a8] sm:$0xff]   ;;  %v3277_v33 = vld [vmem:[%s4086_s1 + $0xb8] sm:$0xff]  }
  0x49   : > { %2941 = vmatprep.subr.bf16.mxu0 %v3258_v46  ;;  %v1328_v20 = vsel %vm715_vm1, %v1326_v19, %v1327_v12  ;;  %v3278_v23 = vld [vmem:[%s4086_s1 + $0x1b8] sm:$0xff]  }
  0x4a   : > { %2798 = vmatmul.mubr.bf16.vlgmr.msra.gmra.mrb[0].mxu1 %v3464_v14 }
  0x4b   : > { %2926 = vmatmul.mubr.bf16.vlgmr.msra.gmra.mrb[0].mxu0 %v3743_v49  ;;  %2814 = vmatpush3.bf16.msra.mxu1 %v3257_v48  ;;  %v754_v48 = vrot.slane %v288_v59, 2  ;;  %v753_v59 = vsel %vm715_vm1, %v751_v25, %v752_v50  ;;  %v3281_v25 = vld [vmem:[%s4086_s1 + $0xc8] sm:$0xff]  }
  0x4c   : > { %2942 = vmatpush3.bf16.msra.mxu0 %v3258_v46  ;;  %2815 = vmatprep.subr.bf16.mxu1 %v3259_v45  ;;  %v3813_v46 = vsel %vm343_vm0, %v1694_v36, %v1695_v55  ;;  %v3287_v36 = vld [vmem:[%s4086_s1 + $0xe0] sm:$0xff]  }
  0x4d   : > { %2943 = vmatprep.subr.bf16.mxu0 %v3260_v57  ;;  %2801 = vmatprep.mubr.bf16.mxu1 %v3476_v22  ;;  %v755_v28 = vsel %vm715_vm1, %v752_v50, %v754_v48  ;;  %v3295_v50 = vld [vmem:[%s4086_s1 + $0xf8] sm:$0xff]  }
  0x4e   : > { %2929 = vmatprep.mubr.bf16.mxu0 %v3760_v27  ;;  %v3844_v30 = vpack.c.bf16 %v755_v28, %v753_v59  ;;  %v3296_v48 = vld [vmem:[%s4086_s1 + $0x1f8] sm:$0xff]  }
  0x4f   : > { %2816 = vmatpush3.bf16.msra.mxu1 %v3259_v45  ;;  %v264_v45 = vld [vmem:[%s3449_s29 + $0x74] sm:$0x1] }
  0x50   : > { %2944 = vmatpush3.bf16.msra.mxu0 %v3260_v57  ;;  %2817 = vmatprep.subr.bf16.mxu1 %v3263_v53  ;;  %v3271_v57 = vld [vmem:[%s4086_s1 + $0xa8] sm:$0xff]   ;;  %v294_v60 = vunpack.c.l.bf16 %v264_v45 }
  0x51   : > { %2945 = vmatprep.subr.bf16.mxu0 %v3264_v4 }
  0x52   : > { %2802 = vmatmul.mubr.bf16.gmra.mrb[4].mxu1 %v3509_v41  ;;  %v1697_v31 = vrot.slane %v294_v60, 1  ;;  %v1883_v18 = vrot.slane %v294_v60, 2 }
  0x53   : > { %2930 = vmatmul.mubr.bf16.gmra.mrb[4].mxu0 %v3783_v5  ;;  %2818 = vmatpush3.bf16.msra.mxu1 %v3263_v53  ;;  %v1329_v53 = vrot.slane %v291_v34, 2 }
  0x54   : > { %2946 = vmatpush3.bf16.msra.mxu0 %v3264_v4  ;;  %2819 = vmatprep.subr.bf16.mxu1 %v3265_v35  ;;  %v3853_v21 = vsel %vm343_vm0, %v1695_v55, %v1697_v31  ;;  %v3856_v4 = vsel %vm715_vm1, %v1881_v44, %v1883_v18  ;;  %v3288_v55 = vld [vmem:[%s4086_s1 + $0x1e0] sm:$0xff]   ;;  %v3290_v44 = vld [vmem:[%s4086_s1 + $0x1e8] sm:$0xff]  }
  0x55   : > { %2947 = vmatprep.subr.bf16.mxu0 %v3266_v39  ;;  %2805 = vmatprep.mubr.bf16.mxu1 %v3529_v52  ;;  %v1330_v34 = vsel %vm715_vm1, %v1327_v12, %v1329_v53  ;;  %v1701_v47 = vpack.c.bf16 %v3853_v21, %v3813_v46  ;;  %v1887_v1 = vpack.c.bf16 %v3856_v4, %v3816_v51  ;;  %v4010_v21 = vld [vmem:[%s4087_s2] ss:$0 sm:$0xff] }
  0x56   : > { %2933 = vmatprep.mubr.bf16.mxu0 %v3803_v16  ;;  %v3867_v56 = vpack.c.bf16 %v1330_v34, %v1328_v20 }
  0x57   : > { %2820 = vmatpush3.bf16.msra.mxu1 %v3265_v35  ;;  %v3280_v35 = vld [vmem:[%s4086_s1 + $0x1c0] sm:$0xff]  }
  0x58   : > { %2948 = vmatpush3.bf16.msra.mxu0 %v3266_v39  ;;  %2821 = vmatprep.subr.bf16.mxu1 %v3269_v24  ;;  %v3282_v39 = vld [vmem:[%s4086_s1 + $0x1c8] sm:$0xff]  }
  0x59   : > { %2949 = vmatprep.subr.bf16.mxu0 %v3270_v40 }
  0x5a   : > { %2806 = vmatmul.mubr.bf16.gmra.mrb[8].mxu1 %v3548_v62 }
  0x5b   : > { %2934 = vmatmul.mubr.bf16.gmra.mrb[8].mxu0 %v3826_v58  ;;  %2822 = vmatpush3.bf16.msra.mxu1 %v3269_v24  ;;  %v3297_v24 = vld [vmem:[%s4086_s1 + $0x200] sm:$0xff]  }
  0x5c   : > { %2950 = vmatpush3.bf16.msra.mxu0 %v3270_v40  ;;  %2823 = vmatprep.subr.bf16.mxu1 %v3271_v57  ;;  %v3298_v40 = vld [vmem:[%s4086_s1 + $0x208] sm:$0xff]  }
  0x5d   : > { %2951 = vmatprep.subr.bf16.mxu0 %v3272_v61  ;;  %2809 = vmatprep.mubr.bf16.mxu1 %v3573_v11 }
  0x5e   : > { %2937 = vmatprep.mubr.bf16.mxu0 %v3844_v30 }
  0x5f   : > { %2824 = vmatpush3.bf16.msra.mxu1 %v3271_v57 }
  0x60   : > { %2952 = vmatpush3.bf16.msra.mxu0 %v3272_v61  ;;  %2825 = vmatprep.subr.bf16.mxu1 %v3275_v3 }
  0x61   : > { %2953 = vmatprep.subr.bf16.mxu0 %v3276_v32 }
  0x62   : > { %2810 = vmatmul.mubr.bf16.gmra.mrb[12].mxu1 %v3595_v37 }
  0x63   : > { %2938 = vmatmul.mubr.bf16.gmra.mrb[12].mxu0 %v3867_v56  ;;  %2826 = vmatpush3.bf16.msra.mxu1 %v3275_v3 }
  0x64   : > { %2954 = vmatpush3.bf16.msra.mxu0 %v3276_v32  ;;  %2827 = vmatprep.subr.bf16.mxu1 %v3277_v33 }
  0x65   : > { %2955 = vmatprep.subr.bf16.mxu0 %v3278_v23  ;;  %2829 = vmatprep.mubr.bf16.mxu1 %v772_v9  ;;  %v3286_v9 = vld [vmem:[%s4086_s1 + $0x1d8] sm:$0xff]  }
  0x66   : > { %2957 = vmatprep.mubr.bf16.mxu0 %v3476_v22 }
  0x67   : > { %2828 = vmatpush3.bf16.msra.mxu1 %v3277_v33  ;;  %v4017_v33 = vld [vmem:[%s4088_s3] ss:$0 sm:$0xff] }
  0x68   : > { %2956 = vmatpush3.bf16.msra.mxu0 %v3278_v23  ;;  %2845 = vmatprep.subr.bf16.mxu1 %v3279_v29 }
  0x69   : > { %2973 = vmatprep.subr.bf16.mxu0 %v3280_v35 }
  0x6a   : > { %2830 = vmatmul.mubr.bf16.vlgmr.msra.gmra.mrb[0].mxu1 %v3716_v15  ;;  %v3285_v15 = vld [vmem:[%s4086_s1 + $0xd8] sm:$0xff]  }
  0x6b   : > { %2958 = vmatmul.mubr.bf16.vlgmr.msra.gmra.mrb[0].mxu0 %v3509_v41  ;;  %2846 = vmatpush3.bf16.msra.mxu1 %v3279_v29 }
  0x6c   : > { %2974 = vmatpush3.bf16.msra.mxu0 %v3280_v35  ;;  %2847 = vmatprep.subr.bf16.mxu1 %v3281_v25 }
  0x6d   : > { %2975 = vmatprep.subr.bf16.mxu0 %v3282_v39  ;;  %2833 = vmatprep.mubr.bf16.mxu1 %v3743_v49 }
  0x6e   : > { %2961 = vmatprep.mubr.bf16.mxu0 %v3529_v52 }
  0x6f   : > { %2848 = vmatpush3.bf16.msra.mxu1 %v3281_v25 }
  0x70   : > { %2976 = vmatpush3.bf16.msra.mxu0 %v3282_v39  ;;  %2849 = vmatprep.subr.bf16.mxu1 %v3283_v7 }
  0x71   : > { %2977 = vmatprep.subr.bf16.mxu0 %v3284_v54 }
  0x72   : > { %2834 = vmatmul.mubr.bf16.gmra.mrb[4].mxu1 %v3760_v27 }
  0x73   : > { %2962 = vmatmul.mubr.bf16.gmra.mrb[4].mxu0 %v3548_v62  ;;  %2850 = vmatpush3.bf16.msra.mxu1 %v3283_v7 }
  0x74   : > { %2978 = vmatpush3.bf16.msra.mxu0 %v3284_v54  ;;  %2851 = vmatprep.subr.bf16.mxu1 %v3285_v15 }
  0x75   : > { %2979 = vmatprep.subr.bf16.mxu0 %v3286_v9  ;;  %2837 = vmatprep.mubr.bf16.mxu1 %v3783_v5 }
  0x76   : > { %2965 = vmatprep.mubr.bf16.mxu0 %v3573_v11 }
  0x77   : > { %2852 = vmatpush3.bf16.msra.mxu1 %v3285_v15 }
  0x78   : > { %2980 = vmatpush3.bf16.msra.mxu0 %v3286_v9  ;;  %2853 = vmatprep.subr.bf16.mxu1 %v3287_v36 }
  0x79   : > { %2981 = vmatprep.subr.bf16.mxu0 %v3288_v55 }
  0x7a   : > { %2838 = vmatmul.mubr.bf16.gmra.mrb[8].mxu1 %v3803_v16 }
  0x7b   : > { %2966 = vmatmul.mubr.bf16.gmra.mrb[8].mxu0 %v3595_v37  ;;  %2854 = vmatpush3.bf16.msra.mxu1 %v3287_v36 }
  0x7c   : > { %2982 = vmatpush3.bf16.msra.mxu0 %v3288_v55  ;;  %2855 = vmatprep.subr.bf16.mxu1 %v3289_v0 }
  0x7d   : > { %2983 = vmatprep.subr.bf16.mxu0 %v3290_v44  ;;  %2841 = vmatprep.mubr.bf16.mxu1 %v3826_v58 }
  0x7e   : > { %2969 = vmatprep.mubr.bf16.mxu0 %v3629_v2 }
  0x7f   : > { %2856 = vmatpush3.bf16.msra.mxu1 %v3289_v0 }
  0x80   : > { %2984 = vmatpush3.bf16.msra.mxu0 %v3290_v44  ;;  %2857 = vmatprep.subr.bf16.mxu1 %v3292_v13 }
  0x81   : > { %2985 = vmatprep.subr.bf16.mxu0 %v3294_v17 }
  0x82   : > { %2842 = vmatmul.mubr.bf16.gmra.mrb[12].mxu1 %v3844_v30 }
  0x83   : > { %2970 = vmatmul.mubr.bf16.gmra.mrb[12].mxu0 %v3788_v10  ;;  %2858 = vmatpush3.bf16.msra.mxu1 %v3292_v13 }
  0x84   : > { %2986 = vmatpush3.bf16.msra.mxu0 %v3294_v17  ;;  %2859 = vmatprep.subr.bf16.mxu1 %v3295_v50 }
  0x85   : > { %2987 = vmatprep.subr.bf16.mxu0 %v3296_v48  ;;  %2861 = vmatprep.mubr.bf16.mxu1 %v3464_v14  ;;  %v3299_v14 = vld [vmem:[%s4086_s1 + $0x210] sm:$0xff]  }
  0x86   : > { %2989 = vmatprep.mubr.bf16.mxu0 %v3550_v63  ;;  %v3304_v63 = vld [vmem:[%s4086_s1 + $0x238] sm:$0xff]  }
  0x87   : > { %2860 = vmatpush3.bf16.msra.mxu1 %v3295_v50 }
  0x88   : > { %2988 = vmatpush3.bf16.msra.mxu0 %v3296_v48  ;;  %3037 = vmatprep.subr.bf16.mxu1 %v3297_v24 }
  0x89   : > { %3005 = vmatprep.subr.bf16.mxu0 %v3297_v24 }
  0x8a   : > { %2862 = vmatmul.mubr.bf16.vlgmr.msra.gmra.mrb[0].mxu1 %v3476_v22  ;;  %v3300_v22 = vld [vmem:[%s4086_s1 + $0x218] sm:$0xff]  }
  0x8b   : > { %2990 = vmatmul.mubr.bf16.vlgmr.msra.gmra.mrb[0].mxu0 %v3581_v26  ;;  %3045 = vmatpush3.bf16.msra.mxu1 %v3297_v24 }
  0x8c   : > { %3006 = vmatpush3.bf16.msra.mxu0 %v3297_v24  ;;  %3038 = vmatprep.subr.bf16.mxu1 %v3298_v40 }
  0x8d   : > { %3007 = vmatprep.subr.bf16.mxu0 %v3298_v40  ;;  %2865 = vmatprep.mubr.bf16.mxu1 %v3509_v41  ;;  %v3301_v41 = vld [vmem:[%s4086_s1 + $0x220] sm:$0xff]  }
  0x8e   : > { %2993 = vmatprep.mubr.bf16.mxu0 %v3609_v43 }
  0x8f   : > { %3046 = vmatpush3.bf16.msra.mxu1 %v3298_v40 }
  0x90   : > { %3008 = vmatpush3.bf16.msra.mxu0 %v3298_v40  ;;  %3039 = vmatprep.subr.bf16.mxu1 %v3299_v14 }
  0x91   : > { %3009 = vmatprep.subr.bf16.mxu0 %v3299_v14 }
  0x92   : > { %2866 = vmatmul.mubr.bf16.gmra.mrb[4].mxu1 %v3529_v52  ;;  %v3302_v52 = vld [vmem:[%s4086_s1 + $0x228] sm:$0xff]  }
  0x93   : > { %2994 = vmatmul.mubr.bf16.gmra.mrb[4].mxu0 %v3635_v6  ;;  %3047 = vmatpush3.bf16.msra.mxu1 %v3299_v14 }
  0x94   : > { %3010 = vmatpush3.bf16.msra.mxu0 %v3299_v14  ;;  %3040 = vmatprep.subr.bf16.mxu1 %v3300_v22 }
  0x95   : > { %3011 = vmatprep.subr.bf16.mxu0 %v3300_v22  ;;  %2869 = vmatprep.mubr.bf16.mxu1 %v3548_v62  ;;  %v3303_v62 = vld [vmem:[%s4086_s1 + $0x230] sm:$0xff]  }
  0x96   : > { %2997 = vmatprep.mubr.bf16.mxu0 %v3657_v42 }
  0x97   : > { %3048 = vmatpush3.bf16.msra.mxu1 %v3300_v22 }
  0x98   : > { %3012 = vmatpush3.bf16.msra.mxu0 %v3300_v22  ;;  %3041 = vmatprep.subr.bf16.mxu1 %v3301_v41 }
  0x99   : > { %3013 = vmatprep.subr.bf16.mxu0 %v3301_v41 }
  0x9a   : > { %2870 = vmatmul.mubr.bf16.gmra.mrb[8].mxu1 %v3573_v11 }
  0x9b   : > { %2998 = vmatmul.mubr.bf16.gmra.mrb[8].mxu0 %v3676_v8  ;;  %3049 = vmatpush3.bf16.msra.mxu1 %v3301_v41 }
  0x9c   : > { %3014 = vmatpush3.bf16.msra.mxu0 %v3301_v41  ;;  %3042 = vmatprep.subr.bf16.mxu1 %v3302_v52 }
  0x9d   : > { %3015 = vmatprep.subr.bf16.mxu0 %v3302_v52  ;;  %2873 = vmatprep.mubr.bf16.mxu1 %v3595_v37 }
  0x9e   : > { %3001 = vmatprep.mubr.bf16.mxu0 %v3699_v38 }
  0x9f   : > { %3050 = vmatpush3.bf16.msra.mxu1 %v3302_v52 }
  0xa0   : > { %3016 = vmatpush3.bf16.msra.mxu0 %v3302_v52  ;;  %3043 = vmatprep.subr.bf16.mxu1 %v3303_v62 }
  0xa1   : > { %3017 = vmatprep.subr.bf16.mxu0 %v3303_v62 }
  0xa2   : > { %2874 = vmatmul.mubr.bf16.gmra.mrb[12].mxu1 %v3629_v2 }
  0xa3   : > { %3002 = vmatmul.mubr.bf16.gmra.mrb[12].mxu0 %v1701_v47  ;;  %3051 = vmatpush3.bf16.msra.mxu1 %v3303_v62 }
  0xa4   : > { %3018 = vmatpush3.bf16.msra.mxu0 %v3303_v62  ;;  %3044 = vmatprep.subr.bf16.mxu1 %v3304_v63 }
  0xa5   : > { %3019 = vmatprep.subr.bf16.mxu0 %v3304_v63  ;;  %3021 = vmatprep.mubr.bf16.mxu0 %v3743_v49 }
  0xa6   : > { %3029 = vmatprep.mubr.bf16.mxu1 %v3826_v58 }
  0xa7   : > { %3052 = vmatpush3.bf16.msra.mxu1 %v3304_v63 }
  0xa8   : > { %3020 = vmatpush3.bf16.msra.mxu0 %v3304_v63 }
  0xaa   : > { %3030 = vmatmul.mubr.bf16.vlgmr.msra.gmra.mrb[16].mxu1 %v3844_v30 }
  0xab   : > { %3022 = vmatmul.mubr.bf16.vlgmr.msra.gmra.mrb[0].mxu0 %v3760_v27  ;;  %3033 = vmatprep.mubr.bf16.mxu1 %v3867_v56 }
  0xac   : > { %3025 = vmatprep.mubr.bf16.mxu0 %v3783_v5 }
  0xb2   : > { %3034 = vmatmul.mubr.bf16.gmra.mrb[20].mxu1 %v1887_v1 }
  0xb3   : > { %3026 = vmatmul.mubr.bf16.gmra.mrb[4].mxu0 %v3803_v16 }
 0x15d   : > { %v2863_v11 = vpop.f32.mrb[0].mxu1 }
 0x15e   : > { %v1058_v26 = vpop.f32.mrb[1].mxu1 }
 0x15f   : > { %v2864_v37 = vpop.f32.mrb[2].mxu1 }
 0x160   : > { %v1061_v43 = vpop.f32.mrb[3].mxu1 }
 0x165   : > { %v3995_v2 = vpop.f32.mrb[4].mxu1 }
 0x166   : > { %v3997_v6 = vpop.f32.mrb[5].mxu1 }
 0x167   : > { %v3999_v42 = vpop.f32.mrb[6].mxu1 }
 0x168   : > { %v4001_v8 = vpop.f32.mrb[7].mxu1 }
 0x16d   : > { %v2871_v38 = vpop.f32.mrb[8].mxu1 }
 0x16e   : > { %v2999_v49 = vpop.f32.mrb[8].mxu0  ;;  %v1090_v27 = vpop.f32.mrb[9].mxu1 }
 0x16f   : > { %v3061_v5 = vadd.f32 %v2999_v49, %v2871_v38  ;;  %v1833_v10 = vpop.f32.mrb[9].mxu0  ;;  %v2872_v46 = vpop.f32.mrb[10].mxu1 }
 0x170   : > { %v3063_v51 = vadd.f32 %v1833_v10, %v1090_v27  ;;  %v3000_v16 = vpop.f32.mrb[10].mxu0  ;;  %v1093_v58 = vpop.f32.mrb[11].mxu1 }
 0x171   : > { %v3065_v59 = vadd.f32 %v3000_v16, %v2872_v46  ;;  %v1836_v28 = vpop.f32.mrb[11].mxu0 }
 0x172   : > { %v3067_v19 = vadd.f32 %v1836_v28, %v1093_v58 }
 0x175   : > { %v2875_v12 = vpop.f32.mrb[12].mxu1 }
 0x176   : > { %v3003_v45 = vpop.f32.mrb[12].mxu0  ;;  %v1106_v57 = vpop.f32.mrb[13].mxu1 }
 0x177   : > { %v3069_v53 = vadd.f32 %v3003_v45, %v2875_v12  ;;  %v1849_v60 = vpop.f32.mrb[13].mxu0  ;;  %v2876_v61 = vpop.f32.mrb[14].mxu1 }
 0x178   : > { %v3071_v30 = vadd.f32 %v1849_v60, %v1106_v57  ;;  %v3004_v31 = vpop.f32.mrb[14].mxu0  ;;  %v1109_v18 = vpop.f32.mrb[15].mxu1 }
 0x179   : > { %v4003_v20 = vadd.f32 %v3004_v31, %v2876_v61  ;;  %v1852_v3 = vpop.f32.mrb[15].mxu0 }
 0x17a   : > { %v4005_v34 = vadd.f32 %v1852_v3, %v1109_v18 }
 0x17d   : > { %v3031_v4 = vpop.f32.mrb[16].mxu1 }
 0x17e   : > { %v3023_v32 = vpop.f32.mrb[0].mxu0  ;;  %v3062_v47 = vadd.f32 %v3061_v5, %v3031_v4  ;;  %v2019_v1 = vpop.f32.mrb[17].mxu1 }
 0x17f   : > { %v3053_v56 = vadd.f32 %v3023_v32, %v2863_v11  ;;  %v1987_v23 = vpop.f32.mrb[1].mxu0  ;;  %v3064_v29 = vadd.f32 %v3063_v51, %v2019_v1  ;;  %v3032_v35 = vpop.f32.mrb[18].mxu1 }
 0x180   : > { %v2083_v25 = vmul.f32 %v3062_v47, %v4010_v21  ;;  %v3054_v39 = vadd.f32 %v1987_v23, %v1058_v26  ;;  %v3024_v7 = vpop.f32.mrb[2].mxu0  ;;  %v3066_v54 = vadd.f32 %v3065_v59, %v3032_v35  ;;  %v2022_v15 = vpop.f32.mrb[19].mxu1 }
 0x181   : > { %v2075_v9 = vmul.f32 %v3053_v56, %v4010_v21  ;;  %v2081_v36 = vmul.f32 %v3064_v29, %v4010_v21  ;;  %v3055_v55 = vadd.f32 %v3024_v7, %v2864_v37  ;;  %v1990_v0 = vpop.f32.mrb[3].mxu0  ;;  %v3068_v44 = vadd.f32 %v3067_v19, %v2022_v15 }
 0x182   : > { %v2106_v13 = vadd.f32 %v4017_v33, %v2083_v25  ;;  %v2073_v17 = vmul.f32 %v3054_v39, %v4010_v21  ;;  %v2084_v50 = vmul.f32 %v3066_v54, %v4010_v21  ;;  %v3056_v48 = vadd.f32 %v1990_v0, %v1061_v43 }
 0x183   : > { %v2098_v24 = vadd.f32 %v4017_v33, %v2075_v9  ;;  %v2104_v40 = vadd.f32 %v4017_v33, %v2081_v36  ;;  %v2076_v14 = vmul.f32 %v3055_v55, %v4010_v21  ;;  %v2082_v22 = vmul.f32 %v3068_v44, %v4010_v21 }
 0x184   : > { %v2096_v41 = vadd.f32 %v4017_v33, %v2073_v17  ;;  %v2107_v52 = vadd.f32 %v4017_v33, %v2084_v50  ;;  %v2074_v62 = vmul.f32 %v3056_v48, %v4010_v21  ;;  %v2122_v11 = vmax.f32 %v2106_v13, 0.0 }
 0x185   : > { %v2114_v63 = vmax.f32 %v2098_v24, 0.0  ;;  %v2099_v26 = vadd.f32 %v4017_v33, %v2076_v14  ;;  %v2105_v37 = vadd.f32 %v4017_v33, %v2082_v22  ;;  %v3035_v43 = vpop.f32.mrb[20].mxu1  ;;  %v2120_v38 = vmax.f32 %v2104_v40, 0.0 }
 0x186   : > { %v2123_v49 = vmax.f32 %v2107_v52, 0.0  ;;  %v2097_v27 = vadd.f32 %v4017_v33, %v2074_v62  ;;  %v3027_v5 = vpop.f32.mrb[4].mxu0  ;;  %v3070_v10 = vadd.f32 %v3069_v53, %v3035_v43  ;;  %v2035_v46 = vpop.f32.mrb[21].mxu1  ;;  %v2112_v12 = vmax.f32 %v2096_v41, 0.0 }
 0x187   : > { %v2115_v51 = vmax.f32 %v2099_v26, 0.0  ;;  %v2121_v16 = vmax.f32 %v2105_v37, 0.0  ;;  %v3057_v58 = vadd.f32 %v3027_v5, %v3995_v2  ;;  %v2003_v59 = vpop.f32.mrb[5].mxu0  ;;  %v3072_v28 = vadd.f32 %v3071_v30, %v2035_v46  ;;  %v3036_v19 = vpop.f32.mrb[22].mxu1 }
 0x188   : > { %v2586_v45 = vpack.c.bf16 %v2123_v49, %v2122_v11  ;;  %v2113_v57 = vmax.f32 %v2097_v27, 0.0  ;;  %v3058_v53 = vadd.f32 %v2003_v59, %v3997_v6  ;;  %v3028_v60 = vpop.f32.mrb[6].mxu0  ;;  %v2038_v61 = vpop.f32.mrb[23].mxu1  ;;  %v2087_v4 = vmul.f32 %v3070_v10, %v4010_v21 }
 0x189   : > { %v2566_v31 = vpack.c.bf16 %v2115_v51, %v2114_v63  ;;  %v2581_v18 = vpack.c.bf16 %v2121_v16, %v2120_v38  ;;  %v2079_v3 = vmul.f32 %v3057_v58, %v4010_v21  ;;  %v2006_v2 = vpop.f32.mrb[7].mxu0  ;;  %v2085_v47 = vmul.f32 %v3072_v28, %v4010_v21 }
 0x18a   : > { %2602 = vst [vmem:[%s4038_s6 + $0x28] sm:$0xff] %v2586_v45   ;;  %v2561_v30 = vpack.c.bf16 %v2113_v57, %v2112_v12  ;;  %v2077_v32 = vmul.f32 %v3058_v53, %v4010_v21  ;;  %v3059_v1 = vadd.f32 %v3028_v60, %v3999_v42  ;;  %v3074_v6 = vadd.f32 %v4003_v20, %v3036_v19 }
 0x18b   : > { %2598 = vst [vmem:[%s4038_s6 + $0x8] sm:$0xff] %v2566_v31   ;;  %2601 = vst [vmem:[%s4038_s6 + $0x20] sm:$0xff] %v2581_v18   ;;  %v3060_v56 = vadd.f32 %v2006_v2, %v4001_v8  ;;  %v2102_v23 = vadd.f32 %v4017_v33, %v2079_v3  ;;  %v3076_v35 = vadd.f32 %v4005_v34, %v2038_v61 }
 0x18c   : > { %2562 = vst [vmem:[%s4038_s6] sm:$0xff] %v2561_v30   ;;  %v2080_v29 = vmul.f32 %v3059_v1, %v4010_v21  ;;  %v2110_v25 = vadd.f32 %v4017_v33, %v2087_v4  ;;  %v2100_v39 = vadd.f32 %v4017_v33, %v2077_v32  ;;  %v2088_v7 = vmul.f32 %v3074_v6, %v4010_v21 }
 0x18d   : > { %v2078_v42 = vmul.f32 %v3060_v56, %v4010_v21  ;;  %v2108_v54 = vadd.f32 %v4017_v33, %v2085_v47  ;;  %v2086_v8 = vmul.f32 %v3076_v35, %v4010_v21  ;;  %v2118_v9 = vmax.f32 %v2102_v23, 0.0 }
 0x18e   : > { %v2103_v20 = vadd.f32 %v4017_v33, %v2080_v29  ;;  %v2111_v15 = vadd.f32 %v4017_v33, %v2088_v7  ;;  %v2126_v0 = vmax.f32 %v2110_v25, 0.0  ;;  %v2116_v44 = vmax.f32 %v2100_v39, 0.0 }
 0x18f   : > { %v2101_v34 = vadd.f32 %v4017_v33, %v2078_v42  ;;  %v2109_v55 = vadd.f32 %v4017_v33, %v2086_v8  ;;  %v2124_v50 = vmax.f32 %v2108_v54, 0.0 }
 0x190   : > { %v2119_v36 = vmax.f32 %v2103_v20, 0.0  ;;  %v2127_v13 = vmax.f32 %v2111_v15, 0.0 }
 0x191   : > { %v2117_v17 = vmax.f32 %v2101_v34, 0.0  ;;  %v2125_v24 = vmax.f32 %v2109_v55, 0.0 }
 0x192   : > { %v2576_v48 = vpack.c.bf16 %v2119_v36, %v2118_v9  ;;  %v2596_v40 = vpack.c.bf16 %v2127_v13, %v2126_v0 }
 0x193   : > { %v2571_v21 = vpack.c.bf16 %v2117_v17, %v2116_v44  ;;  %v2591_v14 = vpack.c.bf16 %v2125_v24, %v2124_v50 }
 0x194   : > { %2600 = vst [vmem:[%s4038_s6 + $0x18] sm:$0xff] %v2576_v48   ;;  %2604 = vst [vmem:[%s4038_s6 + $0x38] sm:$0xff] %v2596_v40  }
 0x195   : > { %2599 = vst [vmem:[%s4038_s6 + $0x10] sm:$0xff] %v2571_v21   ;;  %2603 = vst [vmem:[%s4038_s6 + $0x30] sm:$0xff] %v2591_v14  }
 0x196 PF: > { %s14_s19 = sadd.s32 1, %s3353_s19   ;;  %s4090_s15 = smov %s3345_s17 }
 0x197   : > { %p11_p7 = scmp.ge.s32.totalorder %s14_s19, 6   ;;  %s4091_s16 = smov %s3349_s18 }
 0x198   : > { %s4092_s17 = smov %s4095_s20  ;;  %s4093_s18 = smov %s4099_s21 }
 0x199   :  { %13 = sbr.rel (!%p11_p7) target bundleno = 3 (0x3), region = 74 }

// kernel: conv_block_forward.4
= control target key start
LH: loop header
LB: loop body
LE: loop exit
PB: predicated region body
PF: predicated region fallthrough
CT: control target
= control target key end

     0   :  { %s3091_s9 = smov 0   ;;  %s3093_s10 = smov 0   ;;  %s3709_s0 = inlined_call_operand.vmem [shape: bf16[2,2,10,18,128], index: 0, kind: input, shape index: {}]   ;;  %s3710_s1 = inlined_call_operand.vmem [shape: bf16[9,128,128], index: 1, kind: input, shape index: {}]   ;;  %s3711_s2 = inlined_call_operand.vmem [shape: f32[8,128], index: 2, kind: output, shape index: {}]  }
   0x1   :  { %s3095_s11 = smov 0   ;;  %s3097_s12 = smov 0  }
   0x2   :  { %s3099_s13 = smov 0  }
   0x3 LB: > { %s21_s14 = sadd.s32 1, %s3065_s11  ;;  %s24_s15 = sadd.s32 1, %s3069_s12  ;;  %s3073_s13 = sphi %s3099_s13, %s12_s13   ;;  %s3069_s12 = sphi %s3097_s12, %s3715_s12   ;;  %s3065_s11 = sphi %s3095_s11, %s3714_s11   ;;  %s3061_s10 = sphi %s3093_s10, %s3713_s10   ;;  %s3057_s9 = sphi %s3091_s9, %s3712_s9  }
   0x4   : > { %p22_p0 = scmp.ge.s32.totalorder %s21_s14, 2  ;;  %p2110_p1 = scmp.ge.s32.totalorder %s3073_s13, 1 }
   0x5   : > { %p125_p2 = scmp.lt.s32.totalorder %s3073_s13, 5 }
   0x6   : > { %s3717_s14 = smov (%p22_p0, %s21_s14), 0  ;;  %s3719_s15 = smov (!%p22_p0, %s24_s15), %s3069_s12 }
   0x7   : > { %p126_p3 = pnand %p2110_p1, %p125_p2  ;;  %p26_p4 = scmp.ge.s32.totalorder %s3719_s15, 2 }
   0x8   : > { %p146_p5 = scmp.lt.s32.totalorder (!%p126_p3), %s3061_s10, 1  ;;  %p148_p6 = scmp.lt.s32.totalorder (!%p126_p3), %s3057_s9, 1 }
   0x9   : > { %s3721_s15 = smov (%p26_p4, %s3719_s15), 0  ;;  %129 = sbr.rel (%p126_p3) target bundleno = 454 (0x1c6), region = 28 }
   0xa   : > { %p156_p7 = scmp.eq.s32.totalorder (!%p126_p3), %s3061_s10, 0  ;;  %p157_p8 = scmp.eq.s32.totalorder (!%p126_p3), %s3057_s9, 0 }
   0xc   : > { %p158_p9 = pnand (!%p126_p3), %p157_p8, %p156_p7 }
  0x10   : > { %s3723_s10 = smov (!%p146_p5, %s3061_s10), 1  ;;  %s3725_s9 = smov (!%p148_p6, %s3057_s9), 1 }
  0x11   : > { %s2901_s16 = smul.u32 60, %s3723_s10  ;;  %v3075_v0 = vmov (!%p158_p9), 0.0  }
  0x12   : > { %s2900_s17 = smul.u32 30, %s3725_s9  ;;  %162 = vst [vmem:[%s3711_s2] sm:$0xff] (!%p158_p9), %v3075_v0 }
  0x13   : > { %161 = sbr.rel (%p158_p9) target bundleno = 26 (0x1a), region = 32 }
  0x14   : > { %s152_s18 = sadd.s32 %s2901_s16, %s2900_s17 }
  0x15   : > { %s2111_s19 = sshll.u32 %s152_s18, 2 }
  0x16   : > { %s3124_s22 = scalar_lea.vmem %s3709_s0, %s2111_s19 }
  0x1a PF: > { %v2943_v1 = vld [vmem:[%s3710_s1 + $0x40] sm:$0xff]   ;;  %v2945_v3 = vld [vmem:[%s3710_s1 + $0x48] sm:$0xff]   ;;  %v2947_v5 = vld [vmem:[%s3710_s1 + $0x50] sm:$0xff]   ;;  %vm271_vm0 = vcmask 1046528   ;;  %vm643_vm1 = vcmask 1045504   ;;  %vm2052_vm2 = vcmask 1040384  }
  0x1b   : > { %v2944_v2 = vld [vmem:[%s3710_s1 + $0x100] sm:$0xff]   ;;  %2468 = vmatprep.subr.bf16.mxu1 %v2943_v1  ;;  %v2946_v4 = vld [vmem:[%s3710_s1 + $0x108] sm:$0xff]   ;;  %v2948_v6 = vld [vmem:[%s3710_s1 + $0x110] sm:$0xff]   ;;  %vm2054_vm3 = vcmask 1041408  }
  0x1c   : > { %2596 = vmatprep.subr.bf16.mxu0 %v2944_v2  ;;  %2469 = vmatpush3.bf16.msra.mxu1 %v2943_v1  ;;  %v2949_v7 = vld [vmem:[%s3710_s1 + $0x58] sm:$0xff]   ;;  %v2951_v9 = vld [vmem:[%s3710_s1 + $0x60] sm:$0xff]   ;;  %v2953_v11 = vld [vmem:[%s3710_s1 + $0x68] sm:$0xff]  }
  0x1d   : > { %2597 = vmatpush3.bf16.msra.mxu0 %v2944_v2  ;;  %2470 = vmatprep.subr.bf16.mxu1 %v2945_v3  ;;  %v2950_v8 = vld [vmem:[%s3710_s1 + $0x118] sm:$0xff]   ;;  %v2952_v10 = vld [vmem:[%s3710_s1 + $0x120] sm:$0xff]   ;;  %v2954_v12 = vld [vmem:[%s3710_s1 + $0x128] sm:$0xff]  }
  0x1e   : > { %2598 = vmatprep.subr.bf16.mxu0 %v2946_v4  ;;  %v3166_v13 = vld [vmem:[%s3124_s22] sm:$0xff]   ;;  %v3169_v14 = vld [vmem:[%s3124_s22 + $0x8] sm:$0x1]  ;;  %v3172_v15 = vld [vmem:[%s3124_s22 + $0xc] sm:$0xff]  }
  0x1f   : > { %v193_v16 = vunpack.c.l.bf16 %v3166_v13  ;;  %v194_v17 = vunpack.c.h.bf16 %v3166_v13  ;;  %v195_v18 = vunpack.c.l.bf16 %v3169_v14  ;;  %v3178_v19 = vld [vmem:[%s3124_s22 + $0x14] sm:$0x1]  ;;  %v196_v20 = vunpack.c.l.bf16 %v3172_v15  ;;  %v3184_v23 = vld [vmem:[%s3124_s22 + $0x18] sm:$0xff]   ;;  %v3187_v24 = vld [vmem:[%s3124_s22 + $0x20] sm:$0x1] }
  0x20   : > { %2471 = vmatpush3.bf16.msra.mxu1 %v2945_v3  ;;  %v197_v21 = vunpack.c.h.bf16 %v3172_v15  ;;  %v198_v22 = vunpack.c.l.bf16 %v3178_v19  ;;  %v2955_v29 = vld [vmem:[%s3710_s1 + $0x70] sm:$0xff]   ;;  %v199_v33 = vunpack.c.l.bf16 %v3184_v23  ;;  %v200_v34 = vunpack.c.h.bf16 %v3184_v23  ;;  %v3217_v42 = vld [vmem:[%s3124_s22 + $0x24] sm:$0xff]   ;;  %v2957_v43 = vld [vmem:[%s3710_s1 + $0x78] sm:$0xff]  }
  0x21   : > { %2599 = vmatpush3.bf16.msra.mxu0 %v2946_v4  ;;  %2472 = vmatprep.subr.bf16.mxu1 %v2947_v5  ;;  %v272_v25 = vrot.slane %v193_v16, 1  ;;  %v273_v26 = vrot.slane %v194_v17, 1  ;;  %v275_v27 = vrot.slane %v195_v18, 1  ;;  %v277_v28 = vrot.slane %v196_v20, 1  ;;  %v2956_v30 = vld [vmem:[%s3710_s1 + $0x130] sm:$0xff]   ;;  %v2958_v48 = vld [vmem:[%s3710_s1 + $0x138] sm:$0xff]  }
  0x22   : > { %2600 = vmatprep.subr.bf16.mxu0 %v2948_v6  ;;  %v278_v31 = vrot.slane %v197_v21, 1  ;;  %v280_v32 = vrot.slane %v198_v22, 1  ;;  %v201_v37 = vunpack.c.l.bf16 %v3187_v24  ;;  %v282_v41 = vrot.slane %v199_v33, 1  ;;  %v3227_v47 = vld [vmem:[%s3124_s22 + $0x2c] sm:$0x1]  ;;  %v3237_v53 = vld [vmem:[%s3124_s22 + $0x30] sm:$0xff]  }
  0x23   : > { %v274_v35 = vsel %vm271_vm0, %v272_v25, %v273_v26  ;;  %v276_v36 = vsel %vm271_vm0, %v273_v26, %v275_v27  ;;  %v283_v45 = vrot.slane %v200_v34, 1  ;;  %v202_v49 = vunpack.c.l.bf16 %v3217_v42  ;;  %v3240_v54 = vld [vmem:[%s3124_s22 + $0x38] sm:$0x1]  ;;  %v2960_v59 = vld [vmem:[%s3710_s1] sm:$0xff]   ;;  %v2963_v25 = vld [vmem:[%s3710_s1 + $0x148] sm:$0xff]  }
  0x24   : > { %2473 = vmatpush3.bf16.msra.mxu1 %v2947_v5  ;;  %v328_v38 = vpack.c.bf16 %v276_v36, %v274_v35  ;;  %v279_v39 = vsel %vm271_vm0, %v277_v28, %v278_v31  ;;  %v281_v40 = vsel %vm271_vm0, %v278_v31, %v280_v32  ;;  %v285_v46 = vrot.slane %v201_v37, 1  ;;  %v3256_v63 = vld [vmem:[%s3124_s22 + $0x3c] sm:$0xff]   ;;  %v3264_v2 = vld [vmem:[%s3124_s22 + $0x44] sm:$0x1]  ;;  %v3287_v26 = vld [vmem:[%s3124_s22 + $0x50] sm:$0x1] }
  0x25   : > { %2601 = vmatpush3.bf16.msra.mxu0 %v2948_v6  ;;  %2474 = vmatprep.subr.bf16.mxu1 %v2949_v7  ;;  %v329_v44 = vpack.c.bf16 %v281_v40, %v279_v39  ;;  %v203_v50 = vunpack.c.h.bf16 %v3217_v42  ;;  %v284_v51 = vsel %vm271_vm0, %v282_v41, %v283_v45  ;;  %v204_v52 = vunpack.c.l.bf16 %v3227_v47  ;;  %v2961_v1 = vld [vmem:[%s3710_s1 + $0x140] sm:$0xff]   ;;  %v2964_v39 = vld [vmem:[%s3710_s1 + $0x10] sm:$0xff]   ;;  %v3310_v41 = vld [vmem:[%s3124_s22 + $0x5c] sm:$0x1] }
  0x26   : > { %2602 = vmatprep.subr.bf16.mxu0 %v2950_v8  ;;  %2484 = vmatprep.mubr.bf16.mxu1 %v328_v38  ;;  %v286_v55 = vsel %vm271_vm0, %v283_v45, %v285_v46  ;;  %v287_v56 = vrot.slane %v202_v49, 1  ;;  %v205_v58 = vunpack.c.l.bf16 %v3237_v53  ;;  %v206_v61 = vunpack.c.h.bf16 %v3237_v53  ;;  %v3303_v38 = vld [vmem:[%s3124_s22 + $0x54] sm:$0xff]   ;;  %v2978_v47 = vld [vmem:[%s3710_s1 + $0x180] sm:$0xff]  }
  0x27   : > { %2612 = vmatprep.mubr.bf16.mxu0 %v329_v44  ;;  %v288_v57 = vrot.slane %v203_v50, 1  ;;  %v290_v60 = vrot.slane %v204_v52, 1  ;;  %v207_v62 = vunpack.c.l.bf16 %v3240_v54  ;;  %v3258_v0 = vpack.c.bf16 %v286_v55, %v284_v51  ;;  %v2966_v45 = vld [vmem:[%s3710_s1 + $0x18] sm:$0xff]   ;;  %v2973_v19 = vld [vmem:[%s3710_s1 + $0x170] sm:$0xff]  }
  0x28   : > { %2475 = vmatpush3.bf16.msra.mxu1 %v2949_v7  ;;  %v292_v4 = vrot.slane %v205_v58, 1  ;;  %v208_v5 = vunpack.c.l.bf16 %v3256_v63  ;;  %v209_v6 = vunpack.c.h.bf16 %v3256_v63  ;;  %v2962_v7 = vld [vmem:[%s3710_s1 + $0x8] sm:$0xff]   ;;  %v213_v40 = vunpack.c.l.bf16 %v3287_v26  ;;  %v2967_v55 = vld [vmem:[%s3710_s1 + $0x158] sm:$0xff]  }
  0x29   : > { %2603 = vmatpush3.bf16.msra.mxu0 %v2950_v8  ;;  %2476 = vmatprep.subr.bf16.mxu1 %v2951_v9  ;;  %v289_v3 = vsel %vm271_vm0, %v287_v56, %v288_v57  ;;  %v291_v8 = vsel %vm271_vm0, %v288_v57, %v290_v60  ;;  %v214_v51 = vunpack.c.l.bf16 %v3303_v38  ;;  %v216_v60 = vunpack.c.l.bf16 %v3310_v41 }
  0x2a   : > { %2604 = vmatprep.subr.bf16.mxu0 %v2952_v10  ;;  %v3289_v27 = vpack.c.bf16 %v291_v8, %v289_v3  ;;  %v297_v28 = vrot.slane %v208_v5, 1  ;;  %v3337_v3 = vld [vmem:[%s3124_s22 + $0x60] sm:$0xff]   ;;  %v645_v24 = vrot.slane %v194_v17, 2  ;;  %v660_v17 = vrot.slane %v203_v50, 2 }
  0x2b   : > { %v307_v8 = vrot.slane %v214_v51, 1  ;;  %v662_v14 = vrot.slane %v204_v52, 2  ;;  %v2979_v52 = vld [vmem:[%s3710_s1 + $0x88] sm:$0xff]   ;;  %v682_v26 = vrot.slane %v216_v60, 2 }
  0x2c   : > { %2477 = vmatpush3.bf16.msra.mxu1 %v2951_v9  ;;  %v293_v9 = vrot.slane %v206_v61, 1 }
  0x2d   : > { %2605 = vmatpush3.bf16.msra.mxu0 %v2952_v10  ;;  %2478 = vmatprep.subr.bf16.mxu1 %v2953_v11  ;;  %v295_v10 = vrot.slane %v207_v62, 1 }
  0x2e   : > { %2606 = vmatprep.subr.bf16.mxu0 %v2954_v12  ;;  %v294_v31 = vsel %vm271_vm0, %v292_v4, %v293_v9  ;;  %v3340_v4 = vld [vmem:[%s3124_s22 + $0x68] sm:$0x1] }
  0x2f   : > { %v296_v32 = vsel %vm271_vm0, %v293_v9, %v295_v10 }
  0x30   : > { %2479 = vmatpush3.bf16.msra.mxu1 %v2953_v11  ;;  %v210_v11 = vunpack.c.l.bf16 %v3264_v2 }
  0x31   : > { %2607 = vmatpush3.bf16.msra.mxu0 %v2954_v12  ;;  %2480 = vmatprep.subr.bf16.mxu1 %v2955_v29  ;;  %v3281_v12 = vld [vmem:[%s3124_s22 + $0x48] sm:$0xff]  }
  0x32   : > { %2608 = vmatprep.subr.bf16.mxu0 %v2956_v30  ;;  %v300_v35 = vrot.slane %v210_v11, 1  ;;  %v212_v36 = vunpack.c.h.bf16 %v3281_v12  ;;  %v672_v54 = vrot.slane %v210_v11, 2 }
  0x34   : > { %2481 = vmatpush3.bf16.msra.mxu1 %v2955_v29  ;;  %v298_v29 = vrot.slane %v209_v6, 1  ;;  %v303_v57 = vrot.slane %v212_v36, 1 }
  0x35   : > { %2609 = vmatpush3.bf16.msra.mxu0 %v2956_v30  ;;  %2482 = vmatprep.subr.bf16.mxu1 %v2957_v43  ;;  %v211_v30 = vunpack.c.l.bf16 %v3281_v12 }
  0x36   : > { %2610 = vmatprep.subr.bf16.mxu0 %v2958_v48  ;;  %v299_v46 = vsel %vm271_vm0, %v297_v28, %v298_v29  ;;  %v301_v56 = vsel %vm271_vm0, %v298_v29, %v300_v35  ;;  %v2968_v28 = vld [vmem:[%s3710_s1 + $0x20] sm:$0xff]   ;;  %v219_v35 = vunpack.c.l.bf16 %v3340_v4 }
  0x38   : > { %2483 = vmatpush3.bf16.msra.mxu1 %v2957_v43  ;;  %v2965_v43 = vld [vmem:[%s3710_s1 + $0x150] sm:$0xff]  }
  0x39   : > { %2611 = vmatpush3.bf16.msra.mxu0 %v2958_v48  ;;  %2500 = vmatprep.subr.bf16.mxu1 %v2960_v59  ;;  %v302_v48 = vrot.slane %v211_v30, 1 }
  0x3a   : > { %2628 = vmatprep.subr.bf16.mxu0 %v2961_v1 }
  0x3b   : > { %2485 = vmatmul.mubr.bf16.vlgmr.msra.gmra.mrb[0].mxu1 %v329_v44  ;;  %v3317_v44 = vpack.c.bf16 %v296_v32, %v294_v31  ;;  %v304_v9 = vsel %vm271_vm0, %v302_v48, %v303_v57  ;;  %v217_v31 = vunpack.c.l.bf16 %v3337_v3  ;;  %v218_v32 = vunpack.c.h.bf16 %v3337_v3 }
  0x3c   : > { %2613 = vmatmul.mubr.bf16.vlgmr.msra.gmra.mrb[0].mxu0 %v3258_v0  ;;  %2501 = vmatpush3.bf16.msra.mxu1 %v2960_v59  ;;  %v215_v59 = vunpack.c.h.bf16 %v3303_v38 }
  0x3d   : > { %2629 = vmatpush3.bf16.msra.mxu0 %v2961_v1  ;;  %2502 = vmatprep.subr.bf16.mxu1 %v2962_v7  ;;  %v305_v1 = vrot.slane %v213_v40, 1 }
  0x3e   : > { %2630 = vmatprep.subr.bf16.mxu0 %v2963_v25  ;;  %2488 = vmatprep.mubr.bf16.mxu1 %v3258_v0  ;;  %v308_v10 = vrot.slane %v215_v59, 1 }
  0x3f   : > { %2616 = vmatprep.mubr.bf16.mxu0 %v3289_v27  ;;  %v306_v29 = vsel %vm271_vm0, %v303_v57, %v305_v1  ;;  %v1068_v57 = vrot.slane %v217_v31, 1  ;;  %v1069_v1 = vrot.slane %v218_v32, 1 }
  0x40   : > { %2503 = vmatpush3.bf16.msra.mxu1 %v2962_v7  ;;  %v3343_v7 = vpack.c.bf16 %v301_v56, %v299_v46  ;;  %v309_v46 = vsel %vm271_vm0, %v307_v8, %v308_v10  ;;  %v2970_v56 = vld [vmem:[%s3710_s1 + $0x28] sm:$0xff]  }
  0x41   : > { %2631 = vmatpush3.bf16.msra.mxu0 %v2963_v25  ;;  %2504 = vmatprep.subr.bf16.mxu1 %v2964_v39  ;;  %v310_v25 = vrot.slane %v216_v60, 1  ;;  %v2971_v8 = vld [vmem:[%s3710_s1 + $0x168] sm:$0xff]  }
  0x42   : > { %2632 = vmatprep.subr.bf16.mxu0 %v2965_v43  ;;  %v2991_v60 = vld [vmem:[%s3710_s1 + $0xa8] sm:$0xff]  }
  0x43   : > { %2489 = vmatmul.mubr.bf16.gmra.mrb[4].mxu1 %v3289_v27  ;;  %v311_v48 = vsel %vm271_vm0, %v308_v10, %v310_v25  ;;  %v650_v10 = vrot.slane %v197_v21, 2  ;;  %v652_v25 = vrot.slane %v198_v22, 2  ;;  %v655_v21 = vrot.slane %v200_v34, 2  ;;  %v2974_v34 = vld [vmem:[%s3710_s1 + $0x38] sm:$0xff]  }
  0x44   : > { %2617 = vmatmul.mubr.bf16.gmra.mrb[4].mxu0 %v3317_v44  ;;  %2505 = vmatpush3.bf16.msra.mxu1 %v2964_v39  ;;  %v2969_v39 = vld [vmem:[%s3710_s1 + $0x160] sm:$0xff]   ;;  %v657_v22 = vrot.slane %v201_v37, 2  ;;  %v2975_v37 = vld [vmem:[%s3710_s1 + $0x178] sm:$0xff]  }
  0x45   : > { %2633 = vmatpush3.bf16.msra.mxu0 %v2965_v43  ;;  %2506 = vmatprep.subr.bf16.mxu1 %v2966_v45  ;;  %v3365_v43 = vpack.c.bf16 %v306_v29, %v304_v9  ;;  %v3384_v9 = vpack.c.bf16 %v311_v48, %v309_v46  ;;  %v2972_v29 = vld [vmem:[%s3710_s1 + $0x30] sm:$0xff]   ;;  %v653_v48 = vsel %vm643_vm1, %v650_v10, %v652_v25 }
  0x46   : > { %2634 = vmatprep.subr.bf16.mxu0 %v2967_v55  ;;  %2492 = vmatprep.mubr.bf16.mxu1 %v3317_v44 }
  0x47   : > { %2620 = vmatprep.mubr.bf16.mxu0 %v3343_v7 }
  0x48   : > { %2507 = vmatpush3.bf16.msra.mxu1 %v2966_v45  ;;  %v1071_v45 = vrot.slane %v219_v35, 1 }
  0x49   : > { %2635 = vmatpush3.bf16.msra.mxu0 %v2967_v55  ;;  %2508 = vmatprep.subr.bf16.mxu1 %v2968_v28  ;;  %v649_v55 = vrot.slane %v196_v20, 2  ;;  %v1070_v20 = vsel %vm271_vm0, %v1068_v57, %v1069_v1  ;;  %v644_v57 = vrot.slane %v193_v16, 2 }
  0x4a   : > { %2636 = vmatprep.subr.bf16.mxu0 %v2969_v39  ;;  %v1072_v46 = vsel %vm271_vm0, %v1069_v1, %v1071_v45  ;;  %v659_v1 = vrot.slane %v202_v49, 2  ;;  %v2977_v49 = vld [vmem:[%s3710_s1 + $0x80] sm:$0xff]  }
  0x4b   : > { %2493 = vmatmul.mubr.bf16.gmra.mrb[8].mxu1 %v3343_v7  ;;  %v3429_v45 = vsel %vm643_vm1, %v644_v57, %v645_v24  ;;  %v675_v57 = vrot.slane %v212_v36, 2  ;;  %v2989_v36 = vld [vmem:[%s3710_s1 + $0xa0] sm:$0xff]  }
  0x4c   : > { %2621 = vmatmul.mubr.bf16.gmra.mrb[8].mxu0 %v3365_v43  ;;  %2509 = vmatpush3.bf16.msra.mxu1 %v2968_v28  ;;  %v654_v28 = vrot.slane %v199_v33, 2  ;;  %v651_v33 = vsel %vm643_vm1, %v649_v55, %v650_v10  ;;  %v658_v55 = vsel %vm643_vm1, %v655_v21, %v657_v22  ;;  %v661_v25 = vsel %vm643_vm1, %v659_v1, %v660_v17 }
  0x4d   : > { %2637 = vmatpush3.bf16.msra.mxu0 %v2969_v39  ;;  %2510 = vmatprep.subr.bf16.mxu1 %v2970_v56  ;;  %v3407_v39 = vpack.c.bf16 %v1072_v46, %v1070_v20  ;;  %v3424_v16 = vpack.c.bf16 %v653_v48, %v651_v33  ;;  %v665_v20 = vrot.slane %v206_v61, 2  ;;  %v667_v46 = vrot.slane %v207_v62, 2  ;;  %v2983_v62 = vld [vmem:[%s3710_s1 + $0x90] sm:$0xff]  }
  0x4e   : > { %2638 = vmatprep.subr.bf16.mxu0 %v2971_v8  ;;  %2496 = vmatprep.mubr.bf16.mxu1 %v3365_v43  ;;  %v670_v61 = vrot.slane %v209_v6, 2  ;;  %v2985_v6 = vld [vmem:[%s3710_s1 + $0x98] sm:$0xff]   ;;  %v674_v48 = vrot.slane %v211_v30, 2  ;;  %v680_v30 = vrot.slane %v215_v59, 2  ;;  %v2990_v59 = vld [vmem:[%s3710_s1 + $0x1a0] sm:$0xff]  }
  0x4f   : > { %2624 = vmatprep.mubr.bf16.mxu0 %v3384_v9  ;;  %v668_v22 = vsel %vm643_vm1, %v665_v20, %v667_v46  ;;  %v3001_v46 = vld [vmem:[%s3710_s1 + $0xc8] sm:$0xff]  }
  0x50   : > { %2511 = vmatpush3.bf16.msra.mxu1 %v2970_v56  ;;  %v647_v56 = vrot.slane %v195_v18, 2  ;;  %v673_v33 = vsel %vm643_vm1, %v670_v61, %v672_v54  ;;  %v3009_v54 = vld [vmem:[%s3710_s1 + $0xe8] sm:$0xff]  }
  0x51   : > { %2639 = vmatpush3.bf16.msra.mxu0 %v2971_v8  ;;  %2512 = vmatprep.subr.bf16.mxu1 %v2972_v29  ;;  %v656_v8 = vsel %vm643_vm1, %v654_v28, %v655_v21  ;;  %v2980_v28 = vld [vmem:[%s3710_s1 + $0x188] sm:$0xff]  }
  0x52   : > { %2640 = vmatprep.subr.bf16.mxu0 %v2973_v19  ;;  %v3437_v18 = vsel %vm643_vm1, %v645_v24, %v647_v56  ;;  %v3451_v50 = vpack.c.bf16 %v658_v55, %v656_v8  ;;  %v2986_v24 = vld [vmem:[%s3710_s1 + $0x198] sm:$0xff]   ;;  %v1257_v8 = vrot.slane %v219_v35, 2  ;;  %v2992_v55 = vld [vmem:[%s3710_s1 + $0x1a8] sm:$0xff]   ;;  %v2996_v35 = vld [vmem:[%s3710_s1 + $0x1b0] sm:$0xff]  }
  0x53   : > { %2497 = vmatmul.mubr.bf16.gmra.mrb[12].mxu1 %v3384_v9  ;;  %v700_v10 = vpack.c.bf16 %v3437_v18, %v3429_v45  ;;  %v3003_v45 = vld [vmem:[%s3710_s1 + $0xd0] sm:$0xff]  }
  0x54   : > { %2625 = vmatmul.mubr.bf16.gmra.mrb[12].mxu0 %v3407_v39  ;;  %2513 = vmatpush3.bf16.msra.mxu1 %v2972_v29  ;;  %v663_v29 = vsel %vm643_vm1, %v660_v17, %v662_v14  ;;  %v683_v17 = vsel %vm643_vm1, %v680_v30, %v682_v26  ;;  %v1254_v14 = vrot.slane %v217_v31, 2  ;;  %v2995_v31 = vld [vmem:[%s3710_s1 + $0xb0] sm:$0xff]  }
  0x55   : > { %2641 = vmatpush3.bf16.msra.mxu0 %v2973_v19  ;;  %2514 = vmatprep.subr.bf16.mxu1 %v2974_v34  ;;  %v3468_v19 = vpack.c.bf16 %v663_v29, %v661_v25  ;;  %v2997_v25 = vld [vmem:[%s3710_s1 + $0xb8] sm:$0xff]   ;;  %v3004_v18 = vld [vmem:[%s3710_s1 + $0x1d0] sm:$0xff]  }
  0x56   : > { %2642 = vmatprep.subr.bf16.mxu0 %v2975_v37  ;;  %2516 = vmatprep.mubr.bf16.mxu1 %v3166_v13  ;;  %v664_v13 = vrot.slane %v205_v58, 2  ;;  %v669_v58 = vrot.slane %v208_v5, 2  ;;  %v2984_v5 = vld [vmem:[%s3710_s1 + $0x190] sm:$0xff]   ;;  %v2998_v29 = vld [vmem:[%s3710_s1 + $0x1b8] sm:$0xff]  }
  0x57   : > { %2644 = vmatprep.mubr.bf16.mxu0 %v3424_v16 }
  0x58   : > { %2515 = vmatpush3.bf16.msra.mxu1 %v2974_v34  ;;  %v666_v21 = vsel %vm643_vm1, %v664_v13, %v665_v20  ;;  %v671_v11 = vsel %vm643_vm1, %v669_v58, %v670_v61  ;;  %v677_v34 = vrot.slane %v213_v40, 2  ;;  %v676_v40 = vsel %vm643_vm1, %v674_v48, %v675_v57  ;;  %v2999_v13 = vld [vmem:[%s3710_s1 + $0xc0] sm:$0xff]   ;;  %v3018_v48 = vld [vmem:[%s3710_s1 + $0x208] sm:$0xff]  }
  0x59   : > { %2643 = vmatpush3.bf16.msra.mxu0 %v2975_v37  ;;  %2532 = vmatprep.subr.bf16.mxu1 %v2977_v49  ;;  %v3487_v2 = vpack.c.bf16 %v668_v22, %v666_v21  ;;  %v679_v37 = vrot.slane %v214_v51, 2  ;;  %v3506_v56 = vpack.c.bf16 %v673_v33, %v671_v11  ;;  %v3000_v20 = vld [vmem:[%s3710_s1 + $0x1c0] sm:$0xff]   ;;  %v3012_v21 = vld [vmem:[%s3710_s1 + $0xf0] sm:$0xff]   ;;  %v3016_v11 = vld [vmem:[%s3710_s1 + $0x1f8] sm:$0xff]  }
  0x5a   : > { %2660 = vmatprep.subr.bf16.mxu0 %v2978_v47  ;;  %v678_v51 = vsel %vm643_vm1, %v675_v57, %v677_v34  ;;  %v3007_v58 = vld [vmem:[%s3710_s1 + $0xe0] sm:$0xff]   ;;  %v3617_v22 = vld [vmem:[%s3124_s22 + $0x6c] sm:$0xff]  }
  0x5b   : > { %2517 = vmatmul.mubr.bf16.vlgmr.msra.gmra.mrb[0].mxu1 %v3172_v15  ;;  %v3523_v41 = vpack.c.bf16 %v678_v51, %v676_v40  ;;  %v681_v1 = vsel %vm643_vm1, %v679_v37, %v680_v30  ;;  %v3008_v61 = vld [vmem:[%s3710_s1 + $0x1e0] sm:$0xff]   ;;  %v3022_v34 = vld [vmem:[%s3710_s1 + $0x228] sm:$0xff]   ;;  %v3023_v37 = vld [vmem:[%s3710_s1 + $0x230] sm:$0xff]  }
  0x5c   : > { %2645 = vmatmul.mubr.bf16.vlgmr.msra.gmra.mrb[0].mxu0 %v3451_v50  ;;  %2533 = vmatpush3.bf16.msra.mxu1 %v2977_v49  ;;  %v1255_v49 = vrot.slane %v218_v32, 2  ;;  %v3017_v33 = vld [vmem:[%s3710_s1 + $0x200] sm:$0xff]  }
  0x5d   : > { %2661 = vmatpush3.bf16.msra.mxu0 %v2978_v47  ;;  %2534 = vmatprep.subr.bf16.mxu1 %v2979_v52  ;;  %v3540_v47 = vpack.c.bf16 %v683_v17, %v681_v1 }
  0x5e   : > { %2662 = vmatprep.subr.bf16.mxu0 %v2980_v28  ;;  %2520 = vmatprep.mubr.bf16.mxu1 %v3184_v23  ;;  %v1256_v4 = vsel %vm643_vm1, %v1254_v14, %v1255_v49  ;;  %v1258_v32 = vsel %vm643_vm1, %v1255_v49, %v1257_v8 }
  0x5f   : > { %2648 = vmatprep.mubr.bf16.mxu0 %v3468_v19 }
  0x60   : > { %2535 = vmatpush3.bf16.msra.mxu1 %v2979_v52  ;;  %v3553_v52 = vpack.c.bf16 %v1258_v32, %v1256_v4 }
  0x61   : > { %2663 = vmatpush3.bf16.msra.mxu0 %v2980_v28  ;;  %2536 = vmatprep.subr.bf16.mxu1 %v2983_v62  ;;  %v3002_v28 = vld [vmem:[%s3710_s1 + $0x1c8] sm:$0xff]  }
  0x62   : > { %2664 = vmatprep.subr.bf16.mxu0 %v2984_v5 }
  0x63   : > { %2521 = vmatmul.mubr.bf16.gmra.mrb[4].mxu1 %v3217_v42 }
  0x64   : > { %2649 = vmatmul.mubr.bf16.gmra.mrb[4].mxu0 %v3487_v2  ;;  %2537 = vmatpush3.bf16.msra.mxu1 %v2983_v62  ;;  %v3010_v62 = vld [vmem:[%s3710_s1 + $0x1e8] sm:$0xff]  }
  0x65   : > { %2665 = vmatpush3.bf16.msra.mxu0 %v2984_v5  ;;  %2538 = vmatprep.subr.bf16.mxu1 %v2985_v6  ;;  %v3014_v5 = vld [vmem:[%s3710_s1 + $0x1f0] sm:$0xff]  }
  0x66   : > { %2666 = vmatprep.subr.bf16.mxu0 %v2986_v24  ;;  %2524 = vmatprep.mubr.bf16.mxu1 %v3237_v53 }
  0x67   : > { %2652 = vmatprep.mubr.bf16.mxu0 %v3506_v56 }
  0x68   : > { %2539 = vmatpush3.bf16.msra.mxu1 %v2985_v6  ;;  %v3015_v6 = vld [vmem:[%s3710_s1 + $0xf8] sm:$0xff]  }
  0x69   : > { %2667 = vmatpush3.bf16.msra.mxu0 %v2986_v24  ;;  %2540 = vmatprep.subr.bf16.mxu1 %v2989_v36 }
  0x6a   : > { %2668 = vmatprep.subr.bf16.mxu0 %v2990_v59 }
  0x6b   : > { %2525 = vmatmul.mubr.bf16.gmra.mrb[8].mxu1 %v3256_v63 }
  0x6c   : > { %2653 = vmatmul.mubr.bf16.gmra.mrb[8].mxu0 %v3523_v41  ;;  %2541 = vmatpush3.bf16.msra.mxu1 %v2989_v36 }
  0x6d   : > { %2669 = vmatpush3.bf16.msra.mxu0 %v2990_v59  ;;  %2542 = vmatprep.subr.bf16.mxu1 %v2991_v60 }
  0x6e   : > { %2670 = vmatprep.subr.bf16.mxu0 %v2992_v55  ;;  %2528 = vmatprep.mubr.bf16.mxu1 %v3281_v12 }
  0x6f   : > { %2656 = vmatprep.mubr.bf16.mxu0 %v3540_v47 }
  0x70   : > { %2543 = vmatpush3.bf16.msra.mxu1 %v2991_v60 }
  0x71   : > { %2671 = vmatpush3.bf16.msra.mxu0 %v2992_v55  ;;  %2544 = vmatprep.subr.bf16.mxu1 %v2995_v31 }
  0x72   : > { %2672 = vmatprep.subr.bf16.mxu0 %v2996_v35 }
  0x73   : > { %2529 = vmatmul.mubr.bf16.gmra.mrb[12].mxu1 %v3303_v38 }
  0x74   : > { %2657 = vmatmul.mubr.bf16.gmra.mrb[12].mxu0 %v3553_v52  ;;  %2545 = vmatpush3.bf16.msra.mxu1 %v2995_v31 }
  0x75   : > { %2673 = vmatpush3.bf16.msra.mxu0 %v2996_v35  ;;  %2546 = vmatprep.subr.bf16.mxu1 %v2997_v25 }
  0x76   : > { %2674 = vmatprep.subr.bf16.mxu0 %v2998_v29  ;;  %2548 = vmatprep.mubr.bf16.mxu1 %v700_v10  ;;  %v3006_v10 = vld [vmem:[%s3710_s1 + $0x1d8] sm:$0xff]  }
  0x77   : > { %2676 = vmatprep.mubr.bf16.mxu0 %v3184_v23 }
  0x78   : > { %2547 = vmatpush3.bf16.msra.mxu1 %v2997_v25 }
  0x79   : > { %2675 = vmatpush3.bf16.msra.mxu0 %v2998_v29  ;;  %2564 = vmatprep.subr.bf16.mxu1 %v2999_v13 }
  0x7a   : > { %2692 = vmatprep.subr.bf16.mxu0 %v3000_v20 }
  0x7b   : > { %2549 = vmatmul.mubr.bf16.vlgmr.msra.gmra.mrb[0].mxu1 %v3424_v16  ;;  %v3005_v16 = vld [vmem:[%s3710_s1 + $0xd8] sm:$0xff]  }
  0x7c   : > { %2677 = vmatmul.mubr.bf16.vlgmr.msra.gmra.mrb[0].mxu0 %v3217_v42  ;;  %2565 = vmatpush3.bf16.msra.mxu1 %v2999_v13 }
  0x7d   : > { %2693 = vmatpush3.bf16.msra.mxu0 %v3000_v20  ;;  %2566 = vmatprep.subr.bf16.mxu1 %v3001_v46 }
  0x7e   : > { %2694 = vmatprep.subr.bf16.mxu0 %v3002_v28  ;;  %2552 = vmatprep.mubr.bf16.mxu1 %v3451_v50 }
  0x7f   : > { %2680 = vmatprep.mubr.bf16.mxu0 %v3237_v53 }
  0x80   : > { %2567 = vmatpush3.bf16.msra.mxu1 %v3001_v46 }
  0x81   : > { %2695 = vmatpush3.bf16.msra.mxu0 %v3002_v28  ;;  %2568 = vmatprep.subr.bf16.mxu1 %v3003_v45 }
  0x82   : > { %2696 = vmatprep.subr.bf16.mxu0 %v3004_v18 }
  0x83   : > { %2553 = vmatmul.mubr.bf16.gmra.mrb[4].mxu1 %v3468_v19 }
  0x84   : > { %2681 = vmatmul.mubr.bf16.gmra.mrb[4].mxu0 %v3256_v63  ;;  %2569 = vmatpush3.bf16.msra.mxu1 %v3003_v45 }
  0x85   : > { %2697 = vmatpush3.bf16.msra.mxu0 %v3004_v18  ;;  %2570 = vmatprep.subr.bf16.mxu1 %v3005_v16 }
  0x86   : > { %2698 = vmatprep.subr.bf16.mxu0 %v3006_v10  ;;  %2556 = vmatprep.mubr.bf16.mxu1 %v3487_v2 }
  0x87   : > { %2684 = vmatprep.mubr.bf16.mxu0 %v3281_v12 }
  0x88   : > { %2571 = vmatpush3.bf16.msra.mxu1 %v3005_v16 }
  0x89   : > { %2699 = vmatpush3.bf16.msra.mxu0 %v3006_v10  ;;  %2572 = vmatprep.subr.bf16.mxu1 %v3007_v58 }
  0x8a   : > { %2700 = vmatprep.subr.bf16.mxu0 %v3008_v61 }
  0x8b   : > { %2557 = vmatmul.mubr.bf16.gmra.mrb[8].mxu1 %v3506_v56 }
  0x8c   : > { %2685 = vmatmul.mubr.bf16.gmra.mrb[8].mxu0 %v3303_v38  ;;  %2573 = vmatpush3.bf16.msra.mxu1 %v3007_v58 }
  0x8d   : > { %2701 = vmatpush3.bf16.msra.mxu0 %v3008_v61  ;;  %2574 = vmatprep.subr.bf16.mxu1 %v3009_v54 }
  0x8e   : > { %2702 = vmatprep.subr.bf16.mxu0 %v3010_v62  ;;  %2560 = vmatprep.mubr.bf16.mxu1 %v3523_v41 }
  0x8f   : > { %2688 = vmatprep.mubr.bf16.mxu0 %v3337_v3 }
  0x90   : > { %2575 = vmatpush3.bf16.msra.mxu1 %v3009_v54 }
  0x91   : > { %2703 = vmatpush3.bf16.msra.mxu0 %v3010_v62  ;;  %2576 = vmatprep.subr.bf16.mxu1 %v3012_v21 }
  0x92   : > { %2704 = vmatprep.subr.bf16.mxu0 %v3014_v5 }
  0x93   : > { %2561 = vmatmul.mubr.bf16.gmra.mrb[12].mxu1 %v3540_v47 }
  0x94   : > { %2689 = vmatmul.mubr.bf16.gmra.mrb[12].mxu0 %v3617_v22  ;;  %2577 = vmatpush3.bf16.msra.mxu1 %v3012_v21 }
  0x95   : > { %2705 = vmatpush3.bf16.msra.mxu0 %v3014_v5  ;;  %2578 = vmatprep.subr.bf16.mxu1 %v3015_v6 }
  0x96   : > { %2706 = vmatprep.subr.bf16.mxu0 %v3016_v11  ;;  %2580 = vmatprep.mubr.bf16.mxu1 %v3172_v15  ;;  %v3019_v15 = vld [vmem:[%s3710_s1 + $0x210] sm:$0xff]  }
  0x97   : > { %2708 = vmatprep.mubr.bf16.mxu0 %v3258_v0  ;;  %v192_v0 = vld [vmem:[%s3124_s22 + $0x74] sm:$0x1] }
  0x98   : > { %2579 = vmatpush3.bf16.msra.mxu1 %v3015_v6  ;;  %v222_v57 = vunpack.c.l.bf16 %v192_v0 }
  0x99   : > { %2707 = vmatpush3.bf16.msra.mxu0 %v3016_v11  ;;  %2756 = vmatprep.subr.bf16.mxu1 %v3017_v33 }
  0x9a   : > { %2724 = vmatprep.subr.bf16.mxu0 %v3017_v33  ;;  %v1625_v24 = vrot.slane %v222_v57, 1  ;;  %v1811_v30 = vrot.slane %v222_v57, 2 }
  0x9b   : > { %2581 = vmatmul.mubr.bf16.vlgmr.msra.gmra.mrb[0].mxu1 %v3184_v23  ;;  %v3020_v23 = vld [vmem:[%s3710_s1 + $0x218] sm:$0xff]  }
  0x9c   : > { %2709 = vmatmul.mubr.bf16.vlgmr.msra.gmra.mrb[0].mxu0 %v3289_v27  ;;  %2764 = vmatpush3.bf16.msra.mxu1 %v3017_v33  ;;  %v220_v27 = vunpack.c.l.bf16 %v3617_v22 }
  0x9d   : > { %2725 = vmatpush3.bf16.msra.mxu0 %v3017_v33  ;;  %2757 = vmatprep.subr.bf16.mxu1 %v3018_v48 }
  0x9e   : > { %2726 = vmatprep.subr.bf16.mxu0 %v3018_v48  ;;  %2584 = vmatprep.mubr.bf16.mxu1 %v3217_v42  ;;  %v221_v42 = vunpack.c.h.bf16 %v3617_v22 }
  0x9f   : > { %2712 = vmatprep.mubr.bf16.mxu0 %v3317_v44  ;;  %v3021_v44 = vld [vmem:[%s3710_s1 + $0x220] sm:$0xff]  }
  0xa0   : > { %2765 = vmatpush3.bf16.msra.mxu1 %v3018_v48 }
  0xa1   : > { %2727 = vmatpush3.bf16.msra.mxu0 %v3018_v48  ;;  %2758 = vmatprep.subr.bf16.mxu1 %v3019_v15 }
  0xa2   : > { %2728 = vmatprep.subr.bf16.mxu0 %v3019_v15 }
  0xa3   : > { %2585 = vmatmul.mubr.bf16.gmra.mrb[4].mxu1 %v3237_v53  ;;  %v1622_v53 = vrot.slane %v220_v27, 1 }
  0xa4   : > { %2713 = vmatmul.mubr.bf16.gmra.mrb[4].mxu0 %v3343_v7  ;;  %2766 = vmatpush3.bf16.msra.mxu1 %v3019_v15  ;;  %v1623_v7 = vrot.slane %v221_v42, 1 }
  0xa5   : > { %2729 = vmatpush3.bf16.msra.mxu0 %v3019_v15  ;;  %2759 = vmatprep.subr.bf16.mxu1 %v3020_v23 }
  0xa6   : > { %2730 = vmatprep.subr.bf16.mxu0 %v3020_v23  ;;  %2588 = vmatprep.mubr.bf16.mxu1 %v3256_v63  ;;  %v1624_v63 = vsel %vm271_vm0, %v1622_v53, %v1623_v7 }
  0xa7   : > { %2716 = vmatprep.mubr.bf16.mxu0 %v3365_v43  ;;  %v1626_v43 = vsel %vm271_vm0, %v1623_v7, %v1625_v24 }
  0xa8   : > { %2767 = vmatpush3.bf16.msra.mxu1 %v3020_v23 }
  0xa9   : > { %2731 = vmatpush3.bf16.msra.mxu0 %v3020_v23  ;;  %2760 = vmatprep.subr.bf16.mxu1 %v3021_v44 }
  0xaa   : > { %2732 = vmatprep.subr.bf16.mxu0 %v3021_v44 }
  0xab   : > { %2589 = vmatmul.mubr.bf16.gmra.mrb[8].mxu1 %v3281_v12  ;;  %v1629_v12 = vpack.c.bf16 %v1626_v43, %v1624_v63 }
  0xac   : > { %2717 = vmatmul.mubr.bf16.gmra.mrb[8].mxu0 %v3384_v9  ;;  %2768 = vmatpush3.bf16.msra.mxu1 %v3021_v44  ;;  %v3024_v9 = vld [vmem:[%s3710_s1 + $0x238] sm:$0xff]  }
  0xad   : > { %2733 = vmatpush3.bf16.msra.mxu0 %v3021_v44  ;;  %2761 = vmatprep.subr.bf16.mxu1 %v3022_v34 }
  0xae   : > { %2734 = vmatprep.subr.bf16.mxu0 %v3022_v34  ;;  %2592 = vmatprep.mubr.bf16.mxu1 %v3303_v38  ;;  %v1808_v38 = vrot.slane %v220_v27, 2 }
  0xaf   : > { %2720 = vmatprep.mubr.bf16.mxu0 %v3407_v39  ;;  %v1809_v39 = vrot.slane %v221_v42, 2 }
  0xb0   : > { %2769 = vmatpush3.bf16.msra.mxu1 %v3022_v34 }
  0xb1   : > { %2735 = vmatpush3.bf16.msra.mxu0 %v3022_v34  ;;  %2762 = vmatprep.subr.bf16.mxu1 %v3023_v37  ;;  %v1812_v26 = vsel %vm643_vm1, %v1809_v39, %v1811_v30 }
  0xb2   : > { %2736 = vmatprep.subr.bf16.mxu0 %v3023_v37 }
  0xb3   : > { %2593 = vmatmul.mubr.bf16.gmra.mrb[12].mxu1 %v3337_v3  ;;  %v1810_v3 = vsel %vm643_vm1, %v1808_v38, %v1809_v39 }
  0xb4   : > { %2721 = vmatmul.mubr.bf16.gmra.mrb[12].mxu0 %v1629_v12  ;;  %2770 = vmatpush3.bf16.msra.mxu1 %v3023_v37 }
  0xb5   : > { %2737 = vmatpush3.bf16.msra.mxu0 %v3023_v37  ;;  %2763 = vmatprep.subr.bf16.mxu1 %v3024_v9 }
  0xb6   : > { %2738 = vmatprep.subr.bf16.mxu0 %v3024_v9  ;;  %2740 = vmatprep.mubr.bf16.mxu0 %v3451_v50  ;;  %v1815_v50 = vpack.c.bf16 %v1812_v26, %v1810_v3 }
  0xb7   : > { %2748 = vmatprep.mubr.bf16.mxu1 %v3523_v41 }
  0xb8   : > { %2771 = vmatpush3.bf16.msra.mxu1 %v3024_v9 }
  0xb9   : > { %2739 = vmatpush3.bf16.msra.mxu0 %v3024_v9 }
  0xbb   : > { %2749 = vmatmul.mubr.bf16.vlgmr.msra.gmra.mrb[16].mxu1 %v3540_v47 }
  0xbc   : > { %2741 = vmatmul.mubr.bf16.vlgmr.msra.gmra.mrb[0].mxu0 %v3468_v19  ;;  %2752 = vmatprep.mubr.bf16.mxu1 %v3553_v52 }
  0xbd   : > { %2744 = vmatprep.mubr.bf16.mxu0 %v3487_v2 }
  0xc3   : > { %2753 = vmatmul.mubr.bf16.gmra.mrb[20].mxu1 %v1815_v50 }
  0xc4   : > { %2745 = vmatmul.mubr.bf16.gmra.mrb[4].mxu0 %v3506_v56 }
 0x16e   : > { %v2582_v36 = vpop.f32.mrb[0].mxu1 }
 0x16f   : > { %v986_v40 = vpop.f32.mrb[1].mxu1 }
 0x170   : > { %v2583_v51 = vpop.f32.mrb[2].mxu1 }
 0x171   : > { %v989_v59 = vpop.f32.mrb[3].mxu1 }
 0x176   : > { %v2586_v41 = vpop.f32.mrb[4].mxu1 }
 0x177   : > { %v1002_v60 = vpop.f32.mrb[5].mxu1 }
 0x178   : > { %v2587_v1 = vpop.f32.mrb[6].mxu1 }
 0x179   : > { %v3685_v19 = vpop.f32.mrb[7].mxu1 }
 0x17e   : > { %v2590_v17 = vpop.f32.mrb[8].mxu1 }
 0x17f   : > { %v2718_v14 = vpop.f32.mrb[8].mxu0  ;;  %v1018_v49 = vpop.f32.mrb[9].mxu1 }
 0x180   : > { %v2780_v8 = vadd.f32 %v2718_v14, %v2590_v17  ;;  %v1761_v55 = vpop.f32.mrb[9].mxu0  ;;  %v2591_v47 = vpop.f32.mrb[10].mxu1 }
 0x181   : > { %v2782_v2 = vadd.f32 %v1761_v55, %v1018_v49  ;;  %v2719_v31 = vpop.f32.mrb[10].mxu0  ;;  %v1021_v4 = vpop.f32.mrb[11].mxu1 }
 0x182   : > { %v2784_v32 = vadd.f32 %v2719_v31, %v2591_v47  ;;  %v1764_v56 = vpop.f32.mrb[11].mxu0 }
 0x183   : > { %v2786_v35 = vadd.f32 %v1764_v56, %v1021_v4 }
 0x186   : > { %v2594_v52 = vpop.f32.mrb[12].mxu1 }
 0x187   : > { %v2722_v25 = vpop.f32.mrb[12].mxu0  ;;  %v1034_v29 = vpop.f32.mrb[13].mxu1 }
 0x188   : > { %v2788_v13 = vadd.f32 %v2722_v25, %v2594_v52  ;;  %v1777_v20 = vpop.f32.mrb[13].mxu0  ;;  %v2595_v46 = vpop.f32.mrb[14].mxu1 }
 0x189   : > { %v2790_v28 = vadd.f32 %v1777_v20, %v1034_v29  ;;  %v2723_v45 = vpop.f32.mrb[14].mxu0  ;;  %v1037_v18 = vpop.f32.mrb[15].mxu1 }
 0x18a   : > { %v2792_v16 = vadd.f32 %v2723_v45, %v2595_v46  ;;  %v1780_v10 = vpop.f32.mrb[15].mxu0 }
 0x18b   : > { %v2794_v58 = vadd.f32 %v1780_v10, %v1037_v18 }
 0x18e   : > { %v2750_v61 = vpop.f32.mrb[16].mxu1 }
 0x18f   : > { %v2742_v54 = vpop.f32.mrb[0].mxu0  ;;  %v2781_v62 = vadd.f32 %v2780_v8, %v2750_v61  ;;  %v1947_v21 = vpop.f32.mrb[17].mxu1 }
 0x190   : > { %v2772_v22 = vadd.f32 %v2742_v54, %v2582_v36  ;;  %v1915_v5 = vpop.f32.mrb[1].mxu0  ;;  %v2783_v6 = vadd.f32 %v2782_v2, %v1947_v21  ;;  %v2751_v11 = vpop.f32.mrb[18].mxu1 }
 0x191   : > { %v2773_v33 = vadd.f32 %v1915_v5, %v986_v40  ;;  %v2743_v48 = vpop.f32.mrb[2].mxu0  ;;  %v2785_v15 = vadd.f32 %v2784_v32, %v2751_v11  ;;  %v1950_v23 = vpop.f32.mrb[19].mxu1  ;;  %v2025_v18 = vmul.f32 %v2781_v62, %v2781_v62 }
 0x192   : > { %v2774_v0 = vadd.f32 %v2743_v48, %v2583_v51  ;;  %v1918_v27 = vpop.f32.mrb[3].mxu0  ;;  %v2787_v42 = vadd.f32 %v2786_v35, %v1950_v23  ;;  %v2017_v24 = vmul.f32 %v2772_v22, %v2772_v22 }
 0x193   : > { %v2775_v44 = vadd.f32 %v1918_v27, %v989_v59  ;;  %v2015_v57 = vmul.f32 %v2773_v33, %v2773_v33 }
 0x194   : > { %v2018_v26 = vmul.f32 %v2774_v0, %v2774_v0  ;;  %v2024_v46 = vmul.f32 %v2787_v42, %v2787_v42 }
 0x195   : > { %v1994_v53 = vadd.f32 %v2775_v44, %v2773_v33  ;;  %v2016_v7 = vmul.f32 %v2775_v44, %v2775_v44 }
 0x196   : > { %v2754_v34 = vpop.f32.mrb[20].mxu1 }
 0x197   : > { %v1995_v63 = vadd.f32 %v2772_v22, %v1994_v53  ;;  %v2031_v43 = vadd.f32 %v2016_v7, %v2015_v57  ;;  %v2746_v37 = vpop.f32.mrb[4].mxu0  ;;  %v2789_v12 = vadd.f32 %v2788_v13, %v2754_v34  ;;  %v1963_v9 = vpop.f32.mrb[21].mxu1  ;;  %v2023_v13 = vmul.f32 %v2783_v6, %v2783_v6 }
 0x198   : > { %v2776_v38 = vadd.f32 %v2746_v37, %v2586_v41  ;;  %v1931_v39 = vpop.f32.mrb[5].mxu0  ;;  %v2791_v30 = vadd.f32 %v2790_v28, %v1963_v9  ;;  %v2755_v3 = vpop.f32.mrb[22].mxu1 }
 0x199   : > { %v2032_v50 = vadd.f32 %v2031_v43, %v2017_v24  ;;  %v2777_v36 = vadd.f32 %v1931_v39, %v1002_v60  ;;  %v1996_v40 = vadd.f32 %v2774_v0, %v1995_v63  ;;  %v2747_v51 = vpop.f32.mrb[6].mxu0  ;;  %v1966_v59 = vpop.f32.mrb[23].mxu1  ;;  %v2793_v14 = vadd.f32 %v2792_v16, %v2755_v3 }
 0x19a   : > { %v2778_v17 = vadd.f32 %v2747_v51, %v2587_v1  ;;  %v1934_v49 = vpop.f32.mrb[7].mxu0  ;;  %v2795_v31 = vadd.f32 %v2794_v58, %v1966_v59  ;;  %v2021_v56 = vmul.f32 %v2776_v38, %v2776_v38  ;;  %v2027_v54 = vmul.f32 %v2791_v30, %v2791_v30 }
 0x19b   : > { %v1997_v8 = vadd.f32 %v2777_v36, %v1996_v40  ;;  %v2019_v55 = vmul.f32 %v2777_v36, %v2777_v36  ;;  %v2033_v47 = vadd.f32 %v2032_v50, %v2018_v26  ;;  %v2779_v2 = vadd.f32 %v1934_v49, %v3685_v19 }
 0x19c   : > { %v2022_v25 = vmul.f32 %v2778_v17, %v2778_v17  ;;  %v2026_v19 = vmul.f32 %v2785_v15, %v2785_v15  ;;  %v2028_v11 = vmul.f32 %v2795_v31, %v2795_v31  ;;  %v2029_v48 = vmul.f32 %v2789_v12, %v2789_v12 }
 0x19d   : > { %v2034_v4 = vadd.f32 %v2033_v47, %v2019_v55  ;;  %v1998_v41 = vadd.f32 %v2779_v2, %v1997_v8  ;;  %v2020_v32 = vmul.f32 %v2779_v2, %v2779_v2 }
 0x19f   : > { %v1999_v35 = vadd.f32 %v2776_v38, %v1998_v41  ;;  %v2035_v52 = vadd.f32 %v2034_v4, %v2020_v32 }
 0x1a1   : > { %v2000_v60 = vadd.f32 %v2778_v17, %v1999_v35  ;;  %v2036_v29 = vadd.f32 %v2035_v52, %v2021_v56 }
 0x1a3   : > { %v2001_v20 = vadd.f32 %v2783_v6, %v2000_v60  ;;  %v2037_v1 = vadd.f32 %v2036_v29, %v2022_v25  ;;  %v2030_v6 = vmul.f32 %v2793_v14, %v2793_v14 }
 0x1a5   : > { %v2038_v28 = vadd.f32 %v2037_v1, %v2023_v13  ;;  %v2002_v45 = vadd.f32 %v2787_v42, %v2001_v20 }
 0x1a7   : > { %v2003_v16 = vadd.f32 %v2781_v62, %v2002_v45  ;;  %v2039_v10 = vadd.f32 %v2038_v28, %v2024_v46 }
 0x1a9   : > { %v2004_v58 = vadd.f32 %v2785_v15, %v2003_v16  ;;  %v2040_v61 = vadd.f32 %v2039_v10, %v2025_v18 }
 0x1ab   : > { %v2005_v21 = vadd.f32 %v2791_v30, %v2004_v58  ;;  %v2041_v22 = vadd.f32 %v2040_v61, %v2026_v19 }
 0x1ad   : > { %v2006_v5 = vadd.f32 %v2795_v31, %v2005_v21  ;;  %v2042_v33 = vadd.f32 %v2041_v22, %v2027_v54 }
 0x1af   : > { %v2007_v23 = vadd.f32 %v2789_v12, %v2006_v5  ;;  %v2043_v0 = vadd.f32 %v2042_v33, %v2028_v11  ;;  %v2056_v12 = vld [vmem:[%s3711_s2] sm:$0xff] }
 0x1b1   : > { %v2008_v27 = vadd.f32 %v2793_v14, %v2007_v23  ;;  %v2044_v44 = vadd.f32 %v2043_v0, %v2029_v48 }
 0x1b3   : > { %v2009_v57 = vrot.slane %v2008_v27, 4  ;;  %v2045_v42 = vadd.f32 %v2044_v44, %v2030_v6 }
 0x1b5   : > { %v2010_v53 = vadd.f32 %v2009_v57, %v2008_v27  ;;  %v2046_v62 = vrot.slane %v2045_v42, 4 }
 0x1b7   : > { %v2011_v7 = vrot.slane %v2010_v53, 2  ;;  %v2047_v34 = vadd.f32 %v2046_v62, %v2045_v42 }
 0x1b9   : > { %v2012_v15 = vadd.f32 %v2011_v7, %v2010_v53  ;;  %v2048_v24 = vrot.slane %v2047_v34, 2 }
 0x1bb   : > { %v2013_v63 = vrot.slane %v2012_v15, 1  ;;  %v2049_v43 = vadd.f32 %v2048_v24, %v2047_v34 }
 0x1bd   : > { %v2050_v37 = vrot.slane %v2049_v43, 1  ;;  %v2014_v9 = vadd.f32 %v2013_v63, %v2012_v15 }
 0x1bf   : > { %v2051_v38 = vadd.f32 %v2050_v37, %v2049_v43 }
 0x1c1   : > { %v2053_v39 = vsel %vm2052_vm2, %v2014_v9, %v2051_v38 }
 0x1c2   : > { %v2055_v30 = vsel %vm2054_vm3, %v2053_v39, 0.0 }
 0x1c3   : > { %v2057_v3 = vadd.f32 %v2056_v12, %v2055_v30 }
 0x1c5   : > { %2058 = vst [vmem:[%s3711_s2] sm:$0xff] %v2057_v3 }
 0x1c6 PF: > { %s12_s13 = sadd.s32 1, %s3073_s13   ;;  %s3712_s9 = smov %s3065_s11 }
 0x1c7   : > { %p9_p10 = scmp.ge.s32.totalorder %s12_s13, 6   ;;  %s3713_s10 = smov %s3069_s12 }
 0x1c8   : > { %s3714_s11 = smov %s3717_s14  ;;  %s3715_s12 = smov %s3721_s15 }
 0x1c9   :  { %11 = sbr.rel (!%p9_p10) target bundleno = 3 (0x3), region = 66 }

// kernel: conv_block_forward.7
= control target key start
LH: loop header
LB: loop body
LE: loop exit
PB: predicated region body
PF: predicated region fallthrough
CT: control target
= control target key end

     0   :  { %s3237_s15 = smov 0   ;;  %s3239_s16 = smov 0   ;;  %s3950_s0 = inlined_call_operand.vmem [shape: bf16[2,2,10,18,128], index: 0, kind: input, shape index: {}]   ;;  %s3951_s1 = inlined_call_operand.vmem [shape: bf16[9,128,128], index: 1, kind: input, shape index: {}]   ;;  %s3952_s2 = inlined_call_operand.vmem [shape: f32[1,128], index: 2, kind: input, shape index: {}]   ;;  %s3953_s3 = inlined_call_operand.vmem [shape: f32[1,128], index: 3, kind: input, shape index: {}]   ;;  %s3954_s4 = inlined_call_operand.vmem [shape: f32[2,2,128,128], index: 4, kind: output, shape index: {}]  }
   0x1   :  { %s3241_s17 = smov 0   ;;  %s3243_s18 = smov 0  }
   0x2   :  { %s3245_s19 = smov 0  }
   0x3 LB: > { %s23_s20 = sadd.s32 1, %s3202_s17  ;;  %s26_s21 = sadd.s32 1, %s3206_s18  ;;  %s3210_s19 = sphi %s3245_s19, %s14_s19   ;;  %s3206_s18 = sphi %s3243_s18, %s3958_s18   ;;  %s3202_s17 = sphi %s3241_s17, %s3957_s17   ;;  %s3198_s16 = sphi %s3239_s16, %s3956_s16   ;;  %s3194_s15 = sphi %s3237_s15, %s3955_s15  }
   0x4   : > { %p24_p0 = scmp.ge.s32.totalorder %s23_s20, 2  ;;  %p2243_p1 = scmp.ge.s32.totalorder %s3210_s19, 1 }
   0x5   : > { %p182_p2 = scmp.lt.s32.totalorder %s3210_s19, 5 }
   0x6   : > { %s3960_s20 = smov (%p24_p0, %s23_s20), 0  ;;  %s3962_s21 = smov (!%p24_p0, %s26_s21), %s3206_s18 }
   0x7   : > { %p183_p3 = pnand %p2243_p1, %p182_p2  ;;  %p28_p4 = scmp.ge.s32.totalorder %s3962_s21, 2 }
   0x8   : > { %v3080_v0 = vld [vmem:[%s3951_s1 + $0x40] sm:$0xff] (!%p183_p3)   ;;  %p216_p5 = scmp.lt.s32.totalorder (!%p183_p3), %s3198_s16, 1  ;;  %p218_p6 = scmp.lt.s32.totalorder (!%p183_p3), %s3194_s15, 1  ;;  %v3082_v2 = vld [vmem:[%s3951_s1 + $0x48] sm:$0xff] (!%p183_p3)   ;;  %v3084_v4 = vld [vmem:[%s3951_s1 + $0x50] sm:$0xff] (!%p183_p3)   ;;  %vm343_vm0 = vcmask (!%p183_p3), 1046528  }
   0x9   : > { %s3964_s21 = smov (%p28_p4, %s3962_s21), 0  ;;  %186 = sbr.rel (%p183_p3) target bundleno = 404 (0x194), region = 36 }
   0xa   : > { %v3081_v1 = vld [vmem:[%s3951_s1 + $0x100] sm:$0xff] (!%p183_p3)   ;;  %2606 = vmatprep.subr.bf16.mxu1 (!%p183_p3), %v3080_v0  ;;  %v3083_v3 = vld [vmem:[%s3951_s1 + $0x108] sm:$0xff] (!%p183_p3)   ;;  %v3085_v5 = vld [vmem:[%s3951_s1 + $0x110] sm:$0xff] (!%p183_p3)   ;;  %vm715_vm1 = vcmask (!%p183_p3), 1045504  }
   0xb   : > { %2734 = vmatprep.subr.bf16.mxu0 (!%p183_p3), %v3081_v1  ;;  %2607 = vmatpush3.bf16.msra.mxu1 (!%p183_p3), %v3080_v0  ;;  %v3086_v6 = vld [vmem:[%s3951_s1 + $0x58] sm:$0xff] (!%p183_p3)   ;;  %v3088_v8 = vld [vmem:[%s3951_s1 + $0x60] sm:$0xff] (!%p183_p3)   ;;  %v3090_v10 = vld [vmem:[%s3951_s1 + $0x68] sm:$0xff] (!%p183_p3)  }
   0xc   : > { %2735 = vmatpush3.bf16.msra.mxu0 (!%p183_p3), %v3081_v1  ;;  %2608 = vmatprep.subr.bf16.mxu1 (!%p183_p3), %v3082_v2  ;;  %v3087_v7 = vld [vmem:[%s3951_s1 + $0x118] sm:$0xff] (!%p183_p3)   ;;  %v3089_v9 = vld [vmem:[%s3951_s1 + $0x120] sm:$0xff] (!%p183_p3)   ;;  %v3091_v11 = vld [vmem:[%s3951_s1 + $0x128] sm:$0xff] (!%p183_p3)  }
   0xd   : > { %2736 = vmatprep.subr.bf16.mxu0 (!%p183_p3), %v3083_v3  ;;  %v3092_v28 = vld [vmem:[%s3951_s1 + $0x70] sm:$0xff] (!%p183_p3)   ;;  %v3094_v42 = vld [vmem:[%s3951_s1 + $0x78] sm:$0xff] (!%p183_p3)   ;;  %v3097_v58 = vld [vmem:[%s3951_s1] sm:$0xff] (!%p183_p3)  }
   0xe   : > { %v3093_v29 = vld [vmem:[%s3951_s1 + $0x130] sm:$0xff] (!%p183_p3)   ;;  %v3095_v47 = vld [vmem:[%s3951_s1 + $0x138] sm:$0xff] (!%p183_p3)   ;;  %v3098_v0 = vld [vmem:[%s3951_s1 + $0x140] sm:$0xff] (!%p183_p3)  }
   0xf   : > { %2609 = vmatpush3.bf16.msra.mxu1 (!%p183_p3), %v3082_v2 }
  0x10   : > { %s3966_s16 = smov (!%p216_p5, %s3198_s16), 1  ;;  %s3968_s15 = smov (!%p218_p6, %s3194_s15), 1  ;;  %2737 = vmatpush3.bf16.msra.mxu0 %v3083_v3  ;;  %2610 = vmatprep.subr.bf16.mxu1 %v3084_v4 }
  0x11   : > { %s3039_s6 = smul.u32 60, %s3966_s16  ;;  %2738 = vmatprep.subr.bf16.mxu0 %v3085_v5  ;;  %s2245_s24 = sshll.u32 %s3968_s15, 4 }
  0x12   : > { %s3038_s9 = smul.u32 30, %s3968_s15 }
  0x13   : > { %2611 = vmatpush3.bf16.msra.mxu1 %v3084_v4 }
  0x14   : > { %s222_s10 = sadd.s32 %s3039_s6, %s3038_s9  ;;  %2739 = vmatpush3.bf16.msra.mxu0 %v3085_v5  ;;  %2612 = vmatprep.subr.bf16.mxu1 %v3086_v6 }
  0x15   : > { %s2244_s22 = sshll.u32 %s222_s10, 2  ;;  %2740 = vmatprep.subr.bf16.mxu0 %v3087_v7 }
  0x16   : > { %s3306_s29 = scalar_lea.vmem %s3950_s0, %s2244_s22 }
  0x17   : > { %2613 = vmatpush3.bf16.msra.mxu1 %v3086_v6  ;;  %v3315_v12 = vld [vmem:[%s3306_s29] sm:$0xff]   ;;  %v3318_v13 = vld [vmem:[%s3306_s29 + $0x8] sm:$0x1]  ;;  %v3321_v14 = vld [vmem:[%s3306_s29 + $0xc] sm:$0xff]  }
  0x18   : > { %2741 = vmatpush3.bf16.msra.mxu0 %v3087_v7  ;;  %2614 = vmatprep.subr.bf16.mxu1 %v3088_v8  ;;  %v265_v15 = vunpack.c.l.bf16 %v3315_v12  ;;  %v266_v16 = vunpack.c.h.bf16 %v3315_v12  ;;  %v267_v17 = vunpack.c.l.bf16 %v3318_v13  ;;  %v3327_v18 = vld [vmem:[%s3306_s29 + $0x14] sm:$0x1]  ;;  %v268_v19 = vunpack.c.l.bf16 %v3321_v14  ;;  %v3333_v22 = vld [vmem:[%s3306_s29 + $0x18] sm:$0xff]   ;;  %v3336_v23 = vld [vmem:[%s3306_s29 + $0x20] sm:$0x1] }
  0x19   : > { %2742 = vmatprep.subr.bf16.mxu0 %v3089_v9  ;;  %v269_v20 = vunpack.c.h.bf16 %v3321_v14  ;;  %v270_v21 = vunpack.c.l.bf16 %v3327_v18  ;;  %v271_v32 = vunpack.c.l.bf16 %v3333_v22  ;;  %v272_v33 = vunpack.c.h.bf16 %v3333_v22  ;;  %v3366_v41 = vld [vmem:[%s3306_s29 + $0x24] sm:$0xff]   ;;  %v3376_v46 = vld [vmem:[%s3306_s29 + $0x2c] sm:$0x1]  ;;  %v3386_v52 = vld [vmem:[%s3306_s29 + $0x30] sm:$0xff]  }
  0x1a   : > { %v344_v24 = vrot.slane %v265_v15, 1  ;;  %v345_v25 = vrot.slane %v266_v16, 1  ;;  %v347_v26 = vrot.slane %v267_v17, 1  ;;  %v349_v27 = vrot.slane %v268_v19, 1  ;;  %v3389_v53 = vld [vmem:[%s3306_s29 + $0x38] sm:$0x1] }
  0x1b   : > { %2615 = vmatpush3.bf16.msra.mxu1 %v3088_v8  ;;  %v350_v30 = vrot.slane %v269_v20, 1  ;;  %v352_v31 = vrot.slane %v270_v21, 1  ;;  %v273_v36 = vunpack.c.l.bf16 %v3336_v23  ;;  %v354_v40 = vrot.slane %v271_v32, 1  ;;  %v3405_v62 = vld [vmem:[%s3306_s29 + $0x3c] sm:$0xff]   ;;  %v3413_v1 = vld [vmem:[%s3306_s29 + $0x44] sm:$0x1] }
  0x1c   : > { %2743 = vmatpush3.bf16.msra.mxu0 %v3089_v9  ;;  %2616 = vmatprep.subr.bf16.mxu1 %v3090_v10  ;;  %v346_v34 = vsel %vm343_vm0, %v344_v24, %v345_v25  ;;  %v348_v35 = vsel %vm343_vm0, %v345_v25, %v347_v26  ;;  %v355_v44 = vrot.slane %v272_v33, 1  ;;  %v274_v48 = vunpack.c.l.bf16 %v3366_v41  ;;  %v3099_v6 = vld [vmem:[%s3951_s1 + $0x8] sm:$0xff]   ;;  %v3436_v25 = vld [vmem:[%s3306_s29 + $0x50] sm:$0x1] }
  0x1d   : > { %2744 = vmatprep.subr.bf16.mxu0 %v3091_v11  ;;  %v400_v37 = vpack.c.bf16 %v348_v35, %v346_v34  ;;  %v351_v38 = vsel %vm343_vm0, %v349_v27, %v350_v30  ;;  %v353_v39 = vsel %vm343_vm0, %v350_v30, %v352_v31  ;;  %v357_v45 = vrot.slane %v273_v36, 1  ;;  %v3100_v24 = vld [vmem:[%s3951_s1 + $0x148] sm:$0xff]   ;;  %v3110_v18 = vld [vmem:[%s3951_s1 + $0x170] sm:$0xff]  }
  0x1e   : > { %v401_v43 = vpack.c.bf16 %v353_v39, %v351_v38  ;;  %v275_v49 = vunpack.c.h.bf16 %v3366_v41  ;;  %v356_v50 = vsel %vm343_vm0, %v354_v40, %v355_v44  ;;  %v276_v51 = vunpack.c.l.bf16 %v3376_v46  ;;  %v3101_v38 = vld [vmem:[%s3951_s1 + $0x10] sm:$0xff]   ;;  %v3459_v40 = vld [vmem:[%s3306_s29 + $0x5c] sm:$0x1]  ;;  %v3115_v46 = vld [vmem:[%s3951_s1 + $0x180] sm:$0xff]  }
  0x1f   : > { %2617 = vmatpush3.bf16.msra.mxu1 %v3090_v10  ;;  %2622 = vmatprep.mubr.bf16.mxu1 %v400_v37  ;;  %v358_v54 = vsel %vm343_vm0, %v355_v44, %v357_v45  ;;  %v359_v55 = vrot.slane %v274_v48, 1  ;;  %v277_v57 = vunpack.c.l.bf16 %v3386_v52  ;;  %v278_v60 = vunpack.c.h.bf16 %v3386_v52  ;;  %v3452_v37 = vld [vmem:[%s3306_s29 + $0x54] sm:$0xff]  }
  0x20   : > { %2745 = vmatpush3.bf16.msra.mxu0 %v3091_v11  ;;  %2618 = vmatprep.subr.bf16.mxu1 %v3092_v28  ;;  %v360_v56 = vrot.slane %v275_v49, 1  ;;  %v362_v59 = vrot.slane %v276_v51, 1  ;;  %v279_v61 = vunpack.c.l.bf16 %v3389_v53  ;;  %v3407_v63 = vpack.c.bf16 %v358_v54, %v356_v50  ;;  %v3430_v11 = vld [vmem:[%s3306_s29 + $0x48] sm:$0xff]   ;;  %v3103_v44 = vld [vmem:[%s3951_s1 + $0x18] sm:$0xff]   ;;  %v3120_v53 = vld [vmem:[%s3951_s1 + $0x90] sm:$0xff]  }
  0x21   : > { %2746 = vmatprep.subr.bf16.mxu0 %v3093_v29  ;;  %2750 = vmatprep.mubr.bf16.mxu0 %v401_v43  ;;  %v364_v3 = vrot.slane %v277_v57, 1  ;;  %v280_v4 = vunpack.c.l.bf16 %v3405_v62  ;;  %v281_v5 = vunpack.c.h.bf16 %v3405_v62  ;;  %v365_v8 = vrot.slane %v278_v60, 1  ;;  %v3104_v54 = vld [vmem:[%s3951_s1 + $0x158] sm:$0xff]  }
  0x22   : > { %v361_v2 = vsel %vm343_vm0, %v359_v55, %v360_v56  ;;  %v363_v7 = vsel %vm343_vm0, %v360_v56, %v362_v59  ;;  %v367_v9 = vrot.slane %v279_v61, 1  ;;  %v282_v10 = vunpack.c.l.bf16 %v3413_v1 }
  0x23   : > { %2619 = vmatpush3.bf16.msra.mxu1 %v3092_v28  ;;  %v3438_v26 = vpack.c.bf16 %v363_v7, %v361_v2  ;;  %v369_v27 = vrot.slane %v280_v4, 1  ;;  %v370_v28 = vrot.slane %v281_v5, 1  ;;  %v366_v30 = vsel %vm343_vm0, %v364_v3, %v365_v8  ;;  %v3486_v2 = vld [vmem:[%s3306_s29 + $0x60] sm:$0xff]   ;;  %v3489_v3 = vld [vmem:[%s3306_s29 + $0x68] sm:$0x1] }
  0x24   : > { %2747 = vmatpush3.bf16.msra.mxu0 %v3093_v29  ;;  %2620 = vmatprep.subr.bf16.mxu1 %v3094_v42  ;;  %v283_v29 = vunpack.c.l.bf16 %v3430_v11  ;;  %v368_v31 = vsel %vm343_vm0, %v365_v8, %v367_v9  ;;  %v372_v34 = vrot.slane %v282_v10, 1  ;;  %v284_v35 = vunpack.c.h.bf16 %v3430_v11 }
  0x25   : > { %2748 = vmatprep.subr.bf16.mxu0 %v3095_v47  ;;  %v285_v39 = vunpack.c.l.bf16 %v3436_v25  ;;  %v371_v45 = vsel %vm343_vm0, %v369_v27, %v370_v28  ;;  %v286_v50 = vunpack.c.l.bf16 %v3452_v37  ;;  %v288_v59 = vunpack.c.l.bf16 %v3459_v40  ;;  %v3105_v27 = vld [vmem:[%s3951_s1 + $0x20] sm:$0xff]  }
  0x26   : > { %v373_v55 = vsel %vm343_vm0, %v370_v28, %v372_v34  ;;  %v375_v56 = vrot.slane %v284_v35, 1  ;;  %v291_v34 = vunpack.c.l.bf16 %v3489_v3  ;;  %v717_v23 = vrot.slane %v266_v16, 2  ;;  %v3127_v40 = vld [vmem:[%s3951_s1 + $0x1a0] sm:$0xff]   ;;  %v3132_v3 = vld [vmem:[%s3951_s1 + $0xb0] sm:$0xff]  }
  0x27   : > { %2621 = vmatpush3.bf16.msra.mxu1 %v3094_v42  ;;  %v3102_v42 = vld [vmem:[%s3951_s1 + $0x150] sm:$0xff]   ;;  %v379_v7 = vrot.slane %v286_v50, 1  ;;  %v732_v13 = vrot.slane %v275_v49, 2  ;;  %v749_v1 = vrot.slane %v285_v39, 2  ;;  %v751_v25 = vrot.slane %v286_v50, 2 }
  0x28   : > { %2749 = vmatpush3.bf16.msra.mxu0 %v3095_v47  ;;  %2638 = vmatprep.subr.bf16.mxu1 %v3097_v58  ;;  %v374_v47 = vrot.slane %v283_v29, 1 }
  0x29   : > { %2766 = vmatprep.subr.bf16.mxu0 %v3098_v0 }
  0x2a   : > { %2623 = vmatmul.mubr.bf16.vlgmr.msra.gmra.mrb[0].mxu1 %v401_v43  ;;  %v3466_v43 = vpack.c.bf16 %v368_v31, %v366_v30  ;;  %v376_v8 = vsel %vm343_vm0, %v374_v47, %v375_v56  ;;  %v289_v30 = vunpack.c.l.bf16 %v3486_v2  ;;  %v290_v31 = vunpack.c.h.bf16 %v3486_v2 }
  0x2b   : > { %2751 = vmatmul.mubr.bf16.vlgmr.msra.gmra.mrb[0].mxu0 %v3407_v63  ;;  %2639 = vmatpush3.bf16.msra.mxu1 %v3097_v58  ;;  %v287_v58 = vunpack.c.h.bf16 %v3452_v37 }
  0x2c   : > { %2767 = vmatpush3.bf16.msra.mxu0 %v3098_v0  ;;  %2640 = vmatprep.subr.bf16.mxu1 %v3099_v6  ;;  %v377_v0 = vrot.slane %v285_v39, 1  ;;  %v3123_v39 = vld [vmem:[%s3951_s1 + $0x198] sm:$0xff]  }
  0x2d   : > { %2768 = vmatprep.subr.bf16.mxu0 %v3100_v24  ;;  %2626 = vmatprep.mubr.bf16.mxu1 %v3407_v63  ;;  %v380_v9 = vrot.slane %v287_v58, 1  ;;  %v752_v50 = vrot.slane %v287_v58, 2 }
  0x2e   : > { %2754 = vmatprep.mubr.bf16.mxu0 %v3438_v26  ;;  %v378_v28 = vsel %vm343_vm0, %v375_v56, %v377_v0  ;;  %v1140_v56 = vrot.slane %v289_v30, 1  ;;  %v1141_v0 = vrot.slane %v290_v31, 1 }
  0x2f   : > { %2641 = vmatpush3.bf16.msra.mxu1 %v3099_v6  ;;  %v3492_v6 = vpack.c.bf16 %v373_v55, %v371_v45  ;;  %v381_v45 = vsel %vm343_vm0, %v379_v7, %v380_v9  ;;  %v3107_v55 = vld [vmem:[%s3951_s1 + $0x28] sm:$0xff]  }
  0x30   : > { %2769 = vmatpush3.bf16.msra.mxu0 %v3100_v24  ;;  %2642 = vmatprep.subr.bf16.mxu1 %v3101_v38  ;;  %v382_v24 = vrot.slane %v288_v59, 1  ;;  %v3108_v7 = vld [vmem:[%s3951_s1 + $0x168] sm:$0xff]  }
  0x31   : > { %2770 = vmatprep.subr.bf16.mxu0 %v3102_v42 }
  0x32   : > { %2627 = vmatmul.mubr.bf16.gmra.mrb[4].mxu1 %v3438_v26  ;;  %v383_v47 = vsel %vm343_vm0, %v380_v9, %v382_v24  ;;  %v722_v9 = vrot.slane %v269_v20, 2  ;;  %v724_v24 = vrot.slane %v270_v21, 2  ;;  %v727_v20 = vrot.slane %v272_v33, 2  ;;  %v3111_v33 = vld [vmem:[%s3951_s1 + $0x38] sm:$0xff]  }
  0x33   : > { %2755 = vmatmul.mubr.bf16.gmra.mrb[4].mxu0 %v3466_v43  ;;  %2643 = vmatpush3.bf16.msra.mxu1 %v3101_v38  ;;  %v3106_v38 = vld [vmem:[%s3951_s1 + $0x160] sm:$0xff]   ;;  %v729_v21 = vrot.slane %v273_v36, 2  ;;  %v3112_v36 = vld [vmem:[%s3951_s1 + $0x178] sm:$0xff]  }
  0x34   : > { %2771 = vmatpush3.bf16.msra.mxu0 %v3102_v42  ;;  %2644 = vmatprep.subr.bf16.mxu1 %v3103_v44  ;;  %v3514_v42 = vpack.c.bf16 %v378_v28, %v376_v8  ;;  %v3533_v8 = vpack.c.bf16 %v383_v47, %v381_v45  ;;  %v3109_v28 = vld [vmem:[%s3951_s1 + $0x30] sm:$0xff]   ;;  %v725_v47 = vsel %vm715_vm1, %v722_v9, %v724_v24 }
  0x35   : > { %2772 = vmatprep.subr.bf16.mxu0 %v3104_v54  ;;  %2630 = vmatprep.mubr.bf16.mxu1 %v3466_v43  ;;  %v730_v16 = vsel %vm715_vm1, %v727_v20, %v729_v21  ;;  %v744_v21 = vrot.slane %v282_v10, 2  ;;  %v3645_v10 = vld [vmem:[%s3306_s29 + $0x6c] sm:$0xff]  }
  0x36   : > { %2758 = vmatprep.mubr.bf16.mxu0 %v3492_v6 }
  0x37   : > { %2645 = vmatpush3.bf16.msra.mxu1 %v3103_v44  ;;  %v1143_v44 = vrot.slane %v291_v34, 1 }
  0x38   : > { %2773 = vmatpush3.bf16.msra.mxu0 %v3104_v54  ;;  %2646 = vmatprep.subr.bf16.mxu1 %v3105_v27  ;;  %v721_v54 = vrot.slane %v268_v19, 2  ;;  %v1142_v19 = vsel %vm343_vm0, %v1140_v56, %v1141_v0  ;;  %v716_v56 = vrot.slane %v265_v15, 2 }
  0x39   : > { %2774 = vmatprep.subr.bf16.mxu0 %v3106_v38  ;;  %v1144_v45 = vsel %vm343_vm0, %v1141_v0, %v1143_v44  ;;  %v731_v44 = vrot.slane %v274_v48, 2  ;;  %v3114_v48 = vld [vmem:[%s3951_s1 + $0x80] sm:$0xff]  }
  0x3a   : > { %2631 = vmatmul.mubr.bf16.gmra.mrb[8].mxu1 %v3492_v6 }
  0x3b   : > { %2759 = vmatmul.mubr.bf16.gmra.mrb[8].mxu0 %v3514_v42  ;;  %2647 = vmatpush3.bf16.msra.mxu1 %v3105_v27  ;;  %v726_v27 = vrot.slane %v271_v32, 2  ;;  %v723_v32 = vsel %vm715_vm1, %v721_v54, %v722_v9  ;;  %v733_v24 = vsel %vm715_vm1, %v731_v44, %v732_v13 }
  0x3c   : > { %2775 = vmatpush3.bf16.msra.mxu0 %v3106_v38  ;;  %2648 = vmatprep.subr.bf16.mxu1 %v3107_v55  ;;  %v3556_v38 = vpack.c.bf16 %v1144_v45, %v1142_v19  ;;  %v3573_v15 = vpack.c.bf16 %v725_v47, %v723_v32  ;;  %v737_v19 = vrot.slane %v278_v60, 2  ;;  %v3116_v45 = vld [vmem:[%s3951_s1 + $0x88] sm:$0xff]   ;;  %v741_v60 = vrot.slane %v280_v4, 2  ;;  %v3121_v4 = vld [vmem:[%s3951_s1 + $0x190] sm:$0xff]  }
  0x3d   : > { %2776 = vmatprep.subr.bf16.mxu0 %v3108_v7  ;;  %2634 = vmatprep.mubr.bf16.mxu1 %v3514_v42  ;;  %v728_v0 = vsel %vm715_vm1, %v726_v27, %v727_v20  ;;  %v742_v20 = vrot.slane %v281_v5, 2  ;;  %v746_v32 = vrot.slane %v283_v29, 2  ;;  %v747_v47 = vrot.slane %v284_v35, 2  ;;  %v3122_v35 = vld [vmem:[%s3951_s1 + $0x98] sm:$0xff]  }
  0x3e   : > { %2762 = vmatprep.mubr.bf16.mxu0 %v3533_v8  ;;  %v3600_v49 = vpack.c.bf16 %v730_v16, %v728_v0  ;;  %v293_v29 = vunpack.c.h.bf16 %v3645_v10 }
  0x3f   : > { %2649 = vmatpush3.bf16.msra.mxu1 %v3107_v55  ;;  %v719_v55 = vrot.slane %v267_v17, 2  ;;  %v734_v17 = vrot.slane %v276_v51, 2  ;;  %v736_v51 = vrot.slane %v277_v57, 2  ;;  %v3117_v57 = vld [vmem:[%s3951_s1 + $0x188] sm:$0xff]  }
  0x40   : > { %2777 = vmatpush3.bf16.msra.mxu0 %v3108_v7  ;;  %2650 = vmatprep.subr.bf16.mxu1 %v3109_v28  ;;  %v3579_v7 = vsel %vm715_vm1, %v716_v56, %v717_v23  ;;  %v743_v56 = vsel %vm715_vm1, %v741_v60, %v742_v20  ;;  %v1881_v44 = vrot.slane %v293_v29, 2 }
  0x41   : > { %2778 = vmatprep.subr.bf16.mxu0 %v3110_v18  ;;  %v3588_v54 = vsel %vm715_vm1, %v717_v23, %v719_v55  ;;  %v292_v23 = vunpack.c.l.bf16 %v3645_v10  ;;  %v1695_v55 = vrot.slane %v293_v29, 1  ;;  %v3136_v29 = vld [vmem:[%s3951_s1 + $0xc0] sm:$0xff]  }
  0x42   : > { %2635 = vmatmul.mubr.bf16.gmra.mrb[12].mxu1 %v3533_v8  ;;  %v772_v9 = vpack.c.bf16 %v3588_v54, %v3579_v7  ;;  %v3140_v7 = vld [vmem:[%s3951_s1 + $0xd0] sm:$0xff]  }
  0x43   : > { %2763 = vmatmul.mubr.bf16.gmra.mrb[12].mxu0 %v3556_v38  ;;  %2651 = vmatpush3.bf16.msra.mxu1 %v3109_v28  ;;  %v735_v28 = vsel %vm715_vm1, %v732_v13, %v734_v17  ;;  %v1880_v0 = vrot.slane %v292_v23, 2  ;;  %v748_v13 = vsel %vm715_vm1, %v746_v32, %v747_v47  ;;  %v750_v17 = vsel %vm715_vm1, %v747_v47, %v749_v1  ;;  %v3133_v32 = vld [vmem:[%s3951_s1 + $0x1b0] sm:$0xff]  }
  0x44   : > { %2779 = vmatpush3.bf16.msra.mxu0 %v3110_v18  ;;  %2652 = vmatprep.subr.bf16.mxu1 %v3111_v33  ;;  %v3617_v27 = vpack.c.bf16 %v735_v28, %v733_v24  ;;  %v3126_v24 = vld [vmem:[%s3951_s1 + $0xa0] sm:$0xff]   ;;  %v3683_v58 = vpack.c.bf16 %v750_v17, %v748_v13  ;;  %v3141_v54 = vld [vmem:[%s3951_s1 + $0x1d0] sm:$0xff]  }
  0x45   : > { %2780 = vmatprep.subr.bf16.mxu0 %v3112_v36  ;;  %2654 = vmatprep.mubr.bf16.mxu1 %v3315_v12  ;;  %v739_v12 = vrot.slane %v279_v61, 2  ;;  %v738_v61 = vsel %vm715_vm1, %v736_v51, %v737_v19  ;;  %v3673_v51 = vsel %vm715_vm1, %v1880_v0, %v1881_v44  ;;  %v3146_v0 = vld [vmem:[%s3951_s1 + $0xe8] sm:$0xff]   ;;  %v3149_v13 = vld [vmem:[%s3951_s1 + $0xf0] sm:$0xff]  }
  0x46   : > { %2782 = vmatprep.mubr.bf16.mxu0 %v3573_v15  ;;  %v3151_v17 = vld [vmem:[%s3951_s1 + $0x1f0] sm:$0xff]  }
  0x47   : > { %2653 = vmatpush3.bf16.msra.mxu1 %v3111_v33  ;;  %v740_v18 = vsel %vm715_vm1, %v737_v19, %v739_v12  ;;  %v745_v33 = vsel %vm715_vm1, %v742_v20, %v744_v21  ;;  %v1326_v19 = vrot.slane %v289_v30, 2  ;;  %v1327_v12 = vrot.slane %v290_v31, 2 }
  0x48   : > { %2781 = vmatpush3.bf16.msra.mxu0 %v3112_v36  ;;  %2670 = vmatprep.subr.bf16.mxu1 %v3114_v48  ;;  %v3640_v5 = vpack.c.bf16 %v740_v18, %v738_v61  ;;  %v1694_v36 = vrot.slane %v292_v23, 1  ;;  %v3660_v16 = vpack.c.bf16 %v745_v33, %v743_v56  ;;  %v3129_v61 = vld [vmem:[%s3951_s1 + $0x1a8] sm:$0xff]   ;;  %v3134_v33 = vld [vmem:[%s3951_s1 + $0xb8] sm:$0xff]  }
  0x49   : > { %2798 = vmatprep.subr.bf16.mxu0 %v3115_v46  ;;  %v1328_v20 = vsel %vm715_vm1, %v1326_v19, %v1327_v12  ;;  %v3135_v23 = vld [vmem:[%s3951_s1 + $0x1b8] sm:$0xff]  }
  0x4a   : > { %2655 = vmatmul.mubr.bf16.vlgmr.msra.gmra.mrb[0].mxu1 %v3321_v14 }
  0x4b   : > { %2783 = vmatmul.mubr.bf16.vlgmr.msra.gmra.mrb[0].mxu0 %v3600_v49  ;;  %2671 = vmatpush3.bf16.msra.mxu1 %v3114_v48  ;;  %v754_v48 = vrot.slane %v288_v59, 2  ;;  %v753_v59 = vsel %vm715_vm1, %v751_v25, %v752_v50  ;;  %v3138_v25 = vld [vmem:[%s3951_s1 + $0xc8] sm:$0xff]  }
  0x4c   : > { %2799 = vmatpush3.bf16.msra.mxu0 %v3115_v46  ;;  %2672 = vmatprep.subr.bf16.mxu1 %v3116_v45  ;;  %v3670_v46 = vsel %vm343_vm0, %v1694_v36, %v1695_v55  ;;  %v3144_v36 = vld [vmem:[%s3951_s1 + $0xe0] sm:$0xff]  }
  0x4d   : > { %2800 = vmatprep.subr.bf16.mxu0 %v3117_v57  ;;  %2658 = vmatprep.mubr.bf16.mxu1 %v3333_v22  ;;  %v755_v28 = vsel %vm715_vm1, %v752_v50, %v754_v48  ;;  %v3152_v50 = vld [vmem:[%s3951_s1 + $0xf8] sm:$0xff]  }
  0x4e   : > { %2786 = vmatprep.mubr.bf16.mxu0 %v3617_v27  ;;  %v3701_v30 = vpack.c.bf16 %v755_v28, %v753_v59  ;;  %v3153_v48 = vld [vmem:[%s3951_s1 + $0x1f8] sm:$0xff]  }
  0x4f   : > { %2673 = vmatpush3.bf16.msra.mxu1 %v3116_v45  ;;  %v264_v45 = vld [vmem:[%s3306_s29 + $0x74] sm:$0x1]  ;;  %s2246_s29 = sshll.u32 %s3966_s16, 5 }
  0x50   : > { %2801 = vmatpush3.bf16.msra.mxu0 %v3117_v57  ;;  %2674 = vmatprep.subr.bf16.mxu1 %v3120_v53  ;;  %v3128_v57 = vld [vmem:[%s3951_s1 + $0xa8] sm:$0xff]   ;;  %v294_v60 = vunpack.c.l.bf16 %v264_v45  ;;  %s231_s25 = sadd.s32 %s2246_s29, %s2245_s24 }
  0x51   : > { %2802 = vmatprep.subr.bf16.mxu0 %v3121_v4  ;;  %s2247_s15 = sshll.u32 %s231_s25, 3 }
  0x52   : > { %2659 = vmatmul.mubr.bf16.gmra.mrb[4].mxu1 %v3366_v41  ;;  %v1697_v31 = vrot.slane %v294_v60, 1  ;;  %v1883_v18 = vrot.slane %v294_v60, 2  ;;  %s3885_s6 = scalar_lea.vmem %s3954_s4, %s2247_s15 }
  0x53   : > { %2787 = vmatmul.mubr.bf16.gmra.mrb[4].mxu0 %v3640_v5  ;;  %2675 = vmatpush3.bf16.msra.mxu1 %v3120_v53  ;;  %v1329_v53 = vrot.slane %v291_v34, 2 }
  0x54   : > { %2803 = vmatpush3.bf16.msra.mxu0 %v3121_v4  ;;  %2676 = vmatprep.subr.bf16.mxu1 %v3122_v35  ;;  %v3710_v21 = vsel %vm343_vm0, %v1695_v55, %v1697_v31  ;;  %v3713_v4 = vsel %vm715_vm1, %v1881_v44, %v1883_v18  ;;  %v3145_v55 = vld [vmem:[%s3951_s1 + $0x1e0] sm:$0xff]   ;;  %v3147_v44 = vld [vmem:[%s3951_s1 + $0x1e8] sm:$0xff]  }
  0x55   : > { %2804 = vmatprep.subr.bf16.mxu0 %v3123_v39  ;;  %2662 = vmatprep.mubr.bf16.mxu1 %v3386_v52  ;;  %v1330_v34 = vsel %vm715_vm1, %v1327_v12, %v1329_v53  ;;  %v1701_v47 = vpack.c.bf16 %v3710_v21, %v3670_v46  ;;  %v1887_v1 = vpack.c.bf16 %v3713_v4, %v3673_v51  ;;  %v3869_v21 = vld [vmem:[%s3952_s2] ss:$0 sm:$0xff] }
  0x56   : > { %2790 = vmatprep.mubr.bf16.mxu0 %v3660_v16  ;;  %v3724_v56 = vpack.c.bf16 %v1330_v34, %v1328_v20 }
  0x57   : > { %2677 = vmatpush3.bf16.msra.mxu1 %v3122_v35  ;;  %v3137_v35 = vld [vmem:[%s3951_s1 + $0x1c0] sm:$0xff]  }
  0x58   : > { %2805 = vmatpush3.bf16.msra.mxu0 %v3123_v39  ;;  %2678 = vmatprep.subr.bf16.mxu1 %v3126_v24  ;;  %v3139_v39 = vld [vmem:[%s3951_s1 + $0x1c8] sm:$0xff]  }
  0x59   : > { %2806 = vmatprep.subr.bf16.mxu0 %v3127_v40 }
  0x5a   : > { %2663 = vmatmul.mubr.bf16.gmra.mrb[8].mxu1 %v3405_v62 }
  0x5b   : > { %2791 = vmatmul.mubr.bf16.gmra.mrb[8].mxu0 %v3683_v58  ;;  %2679 = vmatpush3.bf16.msra.mxu1 %v3126_v24  ;;  %v3154_v24 = vld [vmem:[%s3951_s1 + $0x200] sm:$0xff]  }
  0x5c   : > { %2807 = vmatpush3.bf16.msra.mxu0 %v3127_v40  ;;  %2680 = vmatprep.subr.bf16.mxu1 %v3128_v57  ;;  %v3155_v40 = vld [vmem:[%s3951_s1 + $0x208] sm:$0xff]  }
  0x5d   : > { %2808 = vmatprep.subr.bf16.mxu0 %v3129_v61  ;;  %2666 = vmatprep.mubr.bf16.mxu1 %v3430_v11 }
  0x5e   : > { %2794 = vmatprep.mubr.bf16.mxu0 %v3701_v30 }
  0x5f   : > { %2681 = vmatpush3.bf16.msra.mxu1 %v3128_v57 }
  0x60   : > { %2809 = vmatpush3.bf16.msra.mxu0 %v3129_v61  ;;  %2682 = vmatprep.subr.bf16.mxu1 %v3132_v3 }
  0x61   : > { %2810 = vmatprep.subr.bf16.mxu0 %v3133_v32 }
  0x62   : > { %2667 = vmatmul.mubr.bf16.gmra.mrb[12].mxu1 %v3452_v37 }
  0x63   : > { %2795 = vmatmul.mubr.bf16.gmra.mrb[12].mxu0 %v3724_v56  ;;  %2683 = vmatpush3.bf16.msra.mxu1 %v3132_v3 }
  0x64   : > { %2811 = vmatpush3.bf16.msra.mxu0 %v3133_v32  ;;  %2684 = vmatprep.subr.bf16.mxu1 %v3134_v33 }
  0x65   : > { %2812 = vmatprep.subr.bf16.mxu0 %v3135_v23  ;;  %2686 = vmatprep.mubr.bf16.mxu1 %v772_v9  ;;  %v3143_v9 = vld [vmem:[%s3951_s1 + $0x1d8] sm:$0xff]  }
  0x66   : > { %2814 = vmatprep.mubr.bf16.mxu0 %v3333_v22 }
  0x67   : > { %2685 = vmatpush3.bf16.msra.mxu1 %v3134_v33  ;;  %v3874_v33 = vld [vmem:[%s3953_s3] ss:$0 sm:$0xff] }
  0x68   : > { %2813 = vmatpush3.bf16.msra.mxu0 %v3135_v23  ;;  %2702 = vmatprep.subr.bf16.mxu1 %v3136_v29 }
  0x69   : > { %2830 = vmatprep.subr.bf16.mxu0 %v3137_v35 }
  0x6a   : > { %2687 = vmatmul.mubr.bf16.vlgmr.msra.gmra.mrb[0].mxu1 %v3573_v15  ;;  %v3142_v15 = vld [vmem:[%s3951_s1 + $0xd8] sm:$0xff]  }
  0x6b   : > { %2815 = vmatmul.mubr.bf16.vlgmr.msra.gmra.mrb[0].mxu0 %v3366_v41  ;;  %2703 = vmatpush3.bf16.msra.mxu1 %v3136_v29 }
  0x6c   : > { %2831 = vmatpush3.bf16.msra.mxu0 %v3137_v35  ;;  %2704 = vmatprep.subr.bf16.mxu1 %v3138_v25 }
  0x6d   : > { %2832 = vmatprep.subr.bf16.mxu0 %v3139_v39  ;;  %2690 = vmatprep.mubr.bf16.mxu1 %v3600_v49 }
  0x6e   : > { %2818 = vmatprep.mubr.bf16.mxu0 %v3386_v52 }
  0x6f   : > { %2705 = vmatpush3.bf16.msra.mxu1 %v3138_v25 }
  0x70   : > { %2833 = vmatpush3.bf16.msra.mxu0 %v3139_v39  ;;  %2706 = vmatprep.subr.bf16.mxu1 %v3140_v7 }
  0x71   : > { %2834 = vmatprep.subr.bf16.mxu0 %v3141_v54 }
  0x72   : > { %2691 = vmatmul.mubr.bf16.gmra.mrb[4].mxu1 %v3617_v27 }
  0x73   : > { %2819 = vmatmul.mubr.bf16.gmra.mrb[4].mxu0 %v3405_v62  ;;  %2707 = vmatpush3.bf16.msra.mxu1 %v3140_v7 }
  0x74   : > { %2835 = vmatpush3.bf16.msra.mxu0 %v3141_v54  ;;  %2708 = vmatprep.subr.bf16.mxu1 %v3142_v15 }
  0x75   : > { %2836 = vmatprep.subr.bf16.mxu0 %v3143_v9  ;;  %2694 = vmatprep.mubr.bf16.mxu1 %v3640_v5 }
  0x76   : > { %2822 = vmatprep.mubr.bf16.mxu0 %v3430_v11 }
  0x77   : > { %2709 = vmatpush3.bf16.msra.mxu1 %v3142_v15 }
  0x78   : > { %2837 = vmatpush3.bf16.msra.mxu0 %v3143_v9  ;;  %2710 = vmatprep.subr.bf16.mxu1 %v3144_v36 }
  0x79   : > { %2838 = vmatprep.subr.bf16.mxu0 %v3145_v55 }
  0x7a   : > { %2695 = vmatmul.mubr.bf16.gmra.mrb[8].mxu1 %v3660_v16 }
  0x7b   : > { %2823 = vmatmul.mubr.bf16.gmra.mrb[8].mxu0 %v3452_v37  ;;  %2711 = vmatpush3.bf16.msra.mxu1 %v3144_v36 }
  0x7c   : > { %2839 = vmatpush3.bf16.msra.mxu0 %v3145_v55  ;;  %2712 = vmatprep.subr.bf16.mxu1 %v3146_v0 }
  0x7d   : > { %2840 = vmatprep.subr.bf16.mxu0 %v3147_v44  ;;  %2698 = vmatprep.mubr.bf16.mxu1 %v3683_v58 }
  0x7e   : > { %2826 = vmatprep.mubr.bf16.mxu0 %v3486_v2 }
  0x7f   : > { %2713 = vmatpush3.bf16.msra.mxu1 %v3146_v0 }
  0x80   : > { %2841 = vmatpush3.bf16.msra.mxu0 %v3147_v44  ;;  %2714 = vmatprep.subr.bf16.mxu1 %v3149_v13 }
  0x81   : > { %2842 = vmatprep.subr.bf16.mxu0 %v3151_v17 }
  0x82   : > { %2699 = vmatmul.mubr.bf16.gmra.mrb[12].mxu1 %v3701_v30 }
  0x83   : > { %2827 = vmatmul.mubr.bf16.gmra.mrb[12].mxu0 %v3645_v10  ;;  %2715 = vmatpush3.bf16.msra.mxu1 %v3149_v13 }
  0x84   : > { %2843 = vmatpush3.bf16.msra.mxu0 %v3151_v17  ;;  %2716 = vmatprep.subr.bf16.mxu1 %v3152_v50 }
  0x85   : > { %2844 = vmatprep.subr.bf16.mxu0 %v3153_v48  ;;  %2718 = vmatprep.mubr.bf16.mxu1 %v3321_v14  ;;  %v3156_v14 = vld [vmem:[%s3951_s1 + $0x210] sm:$0xff]  }
  0x86   : > { %2846 = vmatprep.mubr.bf16.mxu0 %v3407_v63  ;;  %v3161_v63 = vld [vmem:[%s3951_s1 + $0x238] sm:$0xff]  }
  0x87   : > { %2717 = vmatpush3.bf16.msra.mxu1 %v3152_v50 }
  0x88   : > { %2845 = vmatpush3.bf16.msra.mxu0 %v3153_v48  ;;  %2894 = vmatprep.subr.bf16.mxu1 %v3154_v24 }
  0x89   : > { %2862 = vmatprep.subr.bf16.mxu0 %v3154_v24 }
  0x8a   : > { %2719 = vmatmul.mubr.bf16.vlgmr.msra.gmra.mrb[0].mxu1 %v3333_v22  ;;  %v3157_v22 = vld [vmem:[%s3951_s1 + $0x218] sm:$0xff]  }
  0x8b   : > { %2847 = vmatmul.mubr.bf16.vlgmr.msra.gmra.mrb[0].mxu0 %v3438_v26  ;;  %2902 = vmatpush3.bf16.msra.mxu1 %v3154_v24 }
  0x8c   : > { %2863 = vmatpush3.bf16.msra.mxu0 %v3154_v24  ;;  %2895 = vmatprep.subr.bf16.mxu1 %v3155_v40 }
  0x8d   : > { %2864 = vmatprep.subr.bf16.mxu0 %v3155_v40  ;;  %2722 = vmatprep.mubr.bf16.mxu1 %v3366_v41  ;;  %v3158_v41 = vld [vmem:[%s3951_s1 + $0x220] sm:$0xff]  }
  0x8e   : > { %2850 = vmatprep.mubr.bf16.mxu0 %v3466_v43 }
  0x8f   : > { %2903 = vmatpush3.bf16.msra.mxu1 %v3155_v40 }
  0x90   : > { %2865 = vmatpush3.bf16.msra.mxu0 %v3155_v40  ;;  %2896 = vmatprep.subr.bf16.mxu1 %v3156_v14 }
  0x91   : > { %2866 = vmatprep.subr.bf16.mxu0 %v3156_v14 }
  0x92   : > { %2723 = vmatmul.mubr.bf16.gmra.mrb[4].mxu1 %v3386_v52  ;;  %v3159_v52 = vld [vmem:[%s3951_s1 + $0x228] sm:$0xff]  }
  0x93   : > { %2851 = vmatmul.mubr.bf16.gmra.mrb[4].mxu0 %v3492_v6  ;;  %2904 = vmatpush3.bf16.msra.mxu1 %v3156_v14 }
  0x94   : > { %2867 = vmatpush3.bf16.msra.mxu0 %v3156_v14  ;;  %2897 = vmatprep.subr.bf16.mxu1 %v3157_v22 }
  0x95   : > { %2868 = vmatprep.subr.bf16.mxu0 %v3157_v22  ;;  %2726 = vmatprep.mubr.bf16.mxu1 %v3405_v62  ;;  %v3160_v62 = vld [vmem:[%s3951_s1 + $0x230] sm:$0xff]  }
  0x96   : > { %2854 = vmatprep.mubr.bf16.mxu0 %v3514_v42 }
  0x97   : > { %2905 = vmatpush3.bf16.msra.mxu1 %v3157_v22 }
  0x98   : > { %2869 = vmatpush3.bf16.msra.mxu0 %v3157_v22  ;;  %2898 = vmatprep.subr.bf16.mxu1 %v3158_v41 }
  0x99   : > { %2870 = vmatprep.subr.bf16.mxu0 %v3158_v41 }
  0x9a   : > { %2727 = vmatmul.mubr.bf16.gmra.mrb[8].mxu1 %v3430_v11 }
  0x9b   : > { %2855 = vmatmul.mubr.bf16.gmra.mrb[8].mxu0 %v3533_v8  ;;  %2906 = vmatpush3.bf16.msra.mxu1 %v3158_v41 }
  0x9c   : > { %2871 = vmatpush3.bf16.msra.mxu0 %v3158_v41  ;;  %2899 = vmatprep.subr.bf16.mxu1 %v3159_v52 }
  0x9d   : > { %2872 = vmatprep.subr.bf16.mxu0 %v3159_v52  ;;  %2730 = vmatprep.mubr.bf16.mxu1 %v3452_v37 }
  0x9e   : > { %2858 = vmatprep.mubr.bf16.mxu0 %v3556_v38 }
  0x9f   : > { %2907 = vmatpush3.bf16.msra.mxu1 %v3159_v52 }
  0xa0   : > { %2873 = vmatpush3.bf16.msra.mxu0 %v3159_v52  ;;  %2900 = vmatprep.subr.bf16.mxu1 %v3160_v62 }
  0xa1   : > { %2874 = vmatprep.subr.bf16.mxu0 %v3160_v62 }
  0xa2   : > { %2731 = vmatmul.mubr.bf16.gmra.mrb[12].mxu1 %v3486_v2 }
  0xa3   : > { %2859 = vmatmul.mubr.bf16.gmra.mrb[12].mxu0 %v1701_v47  ;;  %2908 = vmatpush3.bf16.msra.mxu1 %v3160_v62 }
  0xa4   : > { %2875 = vmatpush3.bf16.msra.mxu0 %v3160_v62  ;;  %2901 = vmatprep.subr.bf16.mxu1 %v3161_v63 }
  0xa5   : > { %2876 = vmatprep.subr.bf16.mxu0 %v3161_v63  ;;  %2878 = vmatprep.mubr.bf16.mxu0 %v3600_v49 }
  0xa6   : > { %2886 = vmatprep.mubr.bf16.mxu1 %v3683_v58 }
  0xa7   : > { %2909 = vmatpush3.bf16.msra.mxu1 %v3161_v63 }
  0xa8   : > { %2877 = vmatpush3.bf16.msra.mxu0 %v3161_v63 }
  0xaa   : > { %2887 = vmatmul.mubr.bf16.vlgmr.msra.gmra.mrb[16].mxu1 %v3701_v30 }
  0xab   : > { %2879 = vmatmul.mubr.bf16.vlgmr.msra.gmra.mrb[0].mxu0 %v3617_v27  ;;  %2890 = vmatprep.mubr.bf16.mxu1 %v3724_v56 }
  0xac   : > { %2882 = vmatprep.mubr.bf16.mxu0 %v3640_v5 }
  0xb2   : > { %2891 = vmatmul.mubr.bf16.gmra.mrb[20].mxu1 %v1887_v1 }
  0xb3   : > { %2883 = vmatmul.mubr.bf16.gmra.mrb[4].mxu0 %v3660_v16 }
 0x15d   : > { %v2720_v11 = vpop.f32.mrb[0].mxu1 }
 0x15e   : > { %v1058_v26 = vpop.f32.mrb[1].mxu1 }
 0x15f   : > { %v2721_v37 = vpop.f32.mrb[2].mxu1 }
 0x160   : > { %v1061_v43 = vpop.f32.mrb[3].mxu1 }
 0x165   : > { %v3852_v2 = vpop.f32.mrb[4].mxu1 }
 0x166   : > { %v3854_v6 = vpop.f32.mrb[5].mxu1 }
 0x167   : > { %v3856_v42 = vpop.f32.mrb[6].mxu1 }
 0x168   : > { %v3858_v8 = vpop.f32.mrb[7].mxu1 }
 0x16d   : > { %v2728_v38 = vpop.f32.mrb[8].mxu1 }
 0x16e   : > { %v2856_v49 = vpop.f32.mrb[8].mxu0  ;;  %v1090_v27 = vpop.f32.mrb[9].mxu1 }
 0x16f   : > { %v2918_v5 = vadd.f32 %v2856_v49, %v2728_v38  ;;  %v1833_v10 = vpop.f32.mrb[9].mxu0  ;;  %v2729_v46 = vpop.f32.mrb[10].mxu1 }
 0x170   : > { %v2920_v51 = vadd.f32 %v1833_v10, %v1090_v27  ;;  %v2857_v16 = vpop.f32.mrb[10].mxu0  ;;  %v1093_v58 = vpop.f32.mrb[11].mxu1 }
 0x171   : > { %v2922_v59 = vadd.f32 %v2857_v16, %v2729_v46  ;;  %v1836_v28 = vpop.f32.mrb[11].mxu0 }
 0x172   : > { %v2924_v19 = vadd.f32 %v1836_v28, %v1093_v58 }
 0x175   : > { %v2732_v12 = vpop.f32.mrb[12].mxu1 }
 0x176   : > { %v2860_v45 = vpop.f32.mrb[12].mxu0  ;;  %v1106_v57 = vpop.f32.mrb[13].mxu1 }
 0x177   : > { %v2926_v53 = vadd.f32 %v2860_v45, %v2732_v12  ;;  %v1849_v60 = vpop.f32.mrb[13].mxu0  ;;  %v2733_v61 = vpop.f32.mrb[14].mxu1 }
 0x178   : > { %v2928_v30 = vadd.f32 %v1849_v60, %v1106_v57  ;;  %v2861_v31 = vpop.f32.mrb[14].mxu0  ;;  %v1109_v18 = vpop.f32.mrb[15].mxu1 }
 0x179   : > { %v3860_v20 = vadd.f32 %v2861_v31, %v2733_v61  ;;  %v1852_v3 = vpop.f32.mrb[15].mxu0 }
 0x17a   : > { %v3862_v34 = vadd.f32 %v1852_v3, %v1109_v18 }
 0x17d   : > { %v2888_v4 = vpop.f32.mrb[16].mxu1 }
 0x17e   : > { %v2880_v32 = vpop.f32.mrb[0].mxu0  ;;  %v2919_v47 = vadd.f32 %v2918_v5, %v2888_v4  ;;  %v2019_v1 = vpop.f32.mrb[17].mxu1 }
 0x17f   : > { %v2910_v56 = vadd.f32 %v2880_v32, %v2720_v11  ;;  %v1987_v23 = vpop.f32.mrb[1].mxu0  ;;  %v2921_v29 = vadd.f32 %v2920_v51, %v2019_v1  ;;  %v2889_v35 = vpop.f32.mrb[18].mxu1 }
 0x180   : > { %v2083_v25 = vmul.f32 %v2919_v47, %v3869_v21  ;;  %v2911_v39 = vadd.f32 %v1987_v23, %v1058_v26  ;;  %v2881_v7 = vpop.f32.mrb[2].mxu0  ;;  %v2923_v54 = vadd.f32 %v2922_v59, %v2889_v35  ;;  %v2022_v15 = vpop.f32.mrb[19].mxu1 }
 0x181   : > { %v2075_v9 = vmul.f32 %v2910_v56, %v3869_v21  ;;  %v2081_v36 = vmul.f32 %v2921_v29, %v3869_v21  ;;  %v2912_v55 = vadd.f32 %v2881_v7, %v2721_v37  ;;  %v1990_v0 = vpop.f32.mrb[3].mxu0  ;;  %v2925_v44 = vadd.f32 %v2924_v19, %v2022_v15 }
 0x182   : > { %v2106_v13 = vadd.f32 %v3874_v33, %v2083_v25  ;;  %v2073_v17 = vmul.f32 %v2911_v39, %v3869_v21  ;;  %v2084_v50 = vmul.f32 %v2923_v54, %v3869_v21  ;;  %v2913_v48 = vadd.f32 %v1990_v0, %v1061_v43 }
 0x183   : > { %v2098_v24 = vadd.f32 %v3874_v33, %v2075_v9  ;;  %v2104_v40 = vadd.f32 %v3874_v33, %v2081_v36  ;;  %v2076_v14 = vmul.f32 %v2912_v55, %v3869_v21  ;;  %v2082_v22 = vmul.f32 %v2925_v44, %v3869_v21 }
 0x184   : > { %v2122_v41 = vmax.f32 %v2106_v13, 0.0  ;;  %v2096_v52 = vadd.f32 %v3874_v33, %v2073_v17  ;;  %v2107_v62 = vadd.f32 %v3874_v33, %v2084_v50  ;;  %v2074_v63 = vmul.f32 %v2913_v48, %v3869_v21 }
 0x185   : > { %v2114_v11 = vmax.f32 %v2098_v24, 0.0  ;;  %v2120_v26 = vmax.f32 %v2104_v40, 0.0  ;;  %v2099_v37 = vadd.f32 %v3874_v33, %v2076_v14  ;;  %v2105_v43 = vadd.f32 %v3874_v33, %v2082_v22  ;;  %v2892_v38 = vpop.f32.mrb[20].mxu1 }
 0x186   : > { %2138 = vst [vmem:[%s3885_s6 + $0x50] sm:$0xff] %v2122_v41  ;;  %v2112_v49 = vmax.f32 %v2096_v52, 0.0  ;;  %v2123_v27 = vmax.f32 %v2107_v62, 0.0  ;;  %v2097_v5 = vadd.f32 %v3874_v33, %v2074_v63  ;;  %v2884_v10 = vpop.f32.mrb[4].mxu0  ;;  %v2927_v46 = vadd.f32 %v2926_v53, %v2892_v38  ;;  %v2035_v51 = vpop.f32.mrb[21].mxu1 }
 0x187   : > { %2130 = vst [vmem:[%s3885_s6 + $0x10] sm:$0xff] %v2114_v11  ;;  %2136 = vst [vmem:[%s3885_s6 + $0x40] sm:$0xff] %v2120_v26  ;;  %v2115_v16 = vmax.f32 %v2099_v37, 0.0  ;;  %v2121_v58 = vmax.f32 %v2105_v43, 0.0  ;;  %v2914_v59 = vadd.f32 %v2884_v10, %v3852_v2  ;;  %v2003_v28 = vpop.f32.mrb[5].mxu0  ;;  %v2929_v19 = vadd.f32 %v2928_v30, %v2035_v51  ;;  %v2893_v12 = vpop.f32.mrb[22].mxu1 }
 0x188   : > { %2128 = vst [vmem:[%s3885_s6] sm:$0xff] %v2112_v49  ;;  %2139 = vst [vmem:[%s3885_s6 + $0x58] sm:$0xff] %v2123_v27  ;;  %v2113_v45 = vmax.f32 %v2097_v5, 0.0  ;;  %v2087_v57 = vmul.f32 %v2927_v46, %v3869_v21  ;;  %v2915_v53 = vadd.f32 %v2003_v28, %v3854_v6  ;;  %v2885_v60 = vpop.f32.mrb[6].mxu0  ;;  %v2931_v61 = vadd.f32 %v3860_v20, %v2893_v12  ;;  %v2038_v31 = vpop.f32.mrb[23].mxu1 }
 0x189   : > { %2131 = vst [vmem:[%s3885_s6 + $0x18] sm:$0xff] %v2115_v16  ;;  %2137 = vst [vmem:[%s3885_s6 + $0x48] sm:$0xff] %v2121_v58  ;;  %v2079_v18 = vmul.f32 %v2914_v59, %v3869_v21  ;;  %v2085_v2 = vmul.f32 %v2929_v19, %v3869_v21  ;;  %v2916_v30 = vadd.f32 %v2885_v60, %v3856_v42  ;;  %v2006_v3 = vpop.f32.mrb[7].mxu0 }
 0x18a   : > { %v2933_v4 = vadd.f32 %v3862_v34, %v2038_v31  ;;  %2129 = vst [vmem:[%s3885_s6 + $0x8] sm:$0xff] %v2113_v45  ;;  %v2110_v32 = vadd.f32 %v3874_v33, %v2087_v57  ;;  %v2077_v6 = vmul.f32 %v2915_v53, %v3869_v21  ;;  %v2088_v20 = vmul.f32 %v2931_v61, %v3869_v21 }
 0x18b   : > { %v2917_v47 = vadd.f32 %v2006_v3, %v3858_v8  ;;  %v2102_v1 = vadd.f32 %v3874_v33, %v2079_v18  ;;  %v2108_v56 = vadd.f32 %v3874_v33, %v2085_v2  ;;  %v2080_v42 = vmul.f32 %v2916_v30, %v3869_v21 }
 0x18c   : > { %v2086_v34 = vmul.f32 %v2933_v4, %v3869_v21  ;;  %v2126_v23 = vmax.f32 %v2110_v32, 0.0  ;;  %v2100_v29 = vadd.f32 %v3874_v33, %v2077_v6  ;;  %v2111_v35 = vadd.f32 %v3874_v33, %v2088_v20 }
 0x18d   : > { %v2078_v25 = vmul.f32 %v2917_v47, %v3869_v21  ;;  %v2118_v8 = vmax.f32 %v2102_v1, 0.0  ;;  %v2124_v39 = vmax.f32 %v2108_v56, 0.0  ;;  %v2103_v7 = vadd.f32 %v3874_v33, %v2080_v42 }
 0x18e   : > { %v2109_v54 = vadd.f32 %v3874_v33, %v2086_v34  ;;  %2142 = vst [vmem:[%s3885_s6 + $0x70] sm:$0xff] %v2126_v23  ;;  %v2116_v15 = vmax.f32 %v2100_v29, 0.0  ;;  %v2127_v9 = vmax.f32 %v2111_v35, 0.0 }
 0x18f   : > { %v2101_v36 = vadd.f32 %v3874_v33, %v2078_v25  ;;  %2134 = vst [vmem:[%s3885_s6 + $0x30] sm:$0xff] %v2118_v8  ;;  %2140 = vst [vmem:[%s3885_s6 + $0x60] sm:$0xff] %v2124_v39  ;;  %v2119_v55 = vmax.f32 %v2103_v7, 0.0 }
 0x190   : > { %v2125_v0 = vmax.f32 %v2109_v54, 0.0  ;;  %2132 = vst [vmem:[%s3885_s6 + $0x20] sm:$0xff] %v2116_v15  ;;  %2143 = vst [vmem:[%s3885_s6 + $0x78] sm:$0xff] %v2127_v9 }
 0x191   : > { %v2117_v21 = vmax.f32 %v2101_v36, 0.0  ;;  %2135 = vst [vmem:[%s3885_s6 + $0x38] sm:$0xff] %v2119_v55 }
 0x192   : > { %2141 = vst [vmem:[%s3885_s6 + $0x68] sm:$0xff] %v2125_v0 }
 0x193   : > { %2133 = vst [vmem:[%s3885_s6 + $0x28] sm:$0xff] %v2117_v21 }
 0x194 PF: > { %s14_s19 = sadd.s32 1, %s3210_s19   ;;  %s3955_s15 = smov %s3202_s17 }
 0x195   : > { %p11_p7 = scmp.ge.s32.totalorder %s14_s19, 6   ;;  %s3956_s16 = smov %s3206_s18 }
 0x196   : > { %s3957_s17 = smov %s3960_s20  ;;  %s3958_s18 = smov %s3964_s21 }
 0x197   :  { %13 = sbr.rel (!%p11_p7) target bundleno = 3 (0x3), region = 74 }

</bundles_post_ra>
